<compile_context>
chip_gen: v6e
topology: v6e:2x2x1
jax: 0.10.0
libtpu: 0.0.40
codegen_flags: <defaults>
</compile_context>

<pallas_src>
import functools

import jax
import jax.numpy as jnp
from jax.experimental import pallas as pl
from jax.experimental.pallas import tpu as pltpu

BN_EPS = 1e-5
LANE = 128
VMEM_LIMIT_BYTES = 32 * 1024 * 1024


def _round_up(x, m):
    return (x + m - 1) // m * m


def _conv_taps(x_ref, w_ref, *, k, stride, dilation, h_out, w_out):
    """Direct conv as K*K shifted matmuls (no im2col in HBM).

    x_ref: (Hp, Wp, C_in) f32 VMEM ref -- one zero-padded image, NHWC.
    w_ref: (K*K, C_in, C_pad) bf16 VMEM ref (C_pad = C_out zero-padded to 128).
    Returns (h_out*w_out, C_pad) float32.
    """
    c_in = x_ref.shape[-1]
    c_pad = w_ref.shape[-1]
    m = h_out * w_out
    acc = jnp.zeros((m, c_pad), dtype=jnp.float32)
    for kh in range(k):                       # K*K static taps, trace-time unrolled
        for kw in range(k):
            h0 = kh * dilation
            w0 = kw * dilation
            if stride == 1:
                patch = x_ref[h0:h0 + h_out, w0:w0 + w_out, :]
            else:
                patch = x_ref[pl.ds(h0, h_out, stride),
                              pl.ds(w0, w_out, stride), :]
            patch2d = patch.reshape(m, c_in).astype(jnp.bfloat16)
            acc = acc + jnp.dot(patch2d, w_ref[kh * k + kw],
                                preferred_element_type=jnp.float32)
    return acc


def _stats_kernel(x_ref, w_ref, sum_ref, sumsq_ref, *,
                  k, stride, dilation, h_out, w_out):
    """Pass 1: conv + accumulate global per-channel sum / sum-of-squares."""
    @pl.when(pl.program_id(0) == 0)
    def _init():
        sum_ref[...] = jnp.zeros_like(sum_ref)
        sumsq_ref[...] = jnp.zeros_like(sumsq_ref)

    y = _conv_taps(x_ref, w_ref, k=k, stride=stride, dilation=dilation,
                   h_out=h_out, w_out=w_out)
    sum_ref[...] += jnp.sum(y, axis=0, keepdims=True)
    sumsq_ref[...] += jnp.sum(y * y, axis=0, keepdims=True)


def _apply_kernel(x_ref, w_ref, scale_ref, shift_ref, o_ref, *,
                  k, stride, dilation, h_out, w_out, c_out):
    """Pass 2: conv + fused BN affine + ReLU, lane-dense NCHW-contiguous store."""
    y = _conv_taps(x_ref, w_ref, k=k, stride=stride, dilation=dilation,
                   h_out=h_out, w_out=w_out)
    y = jnp.maximum(y * scale_ref[...] + shift_ref[...], 0.0)
    # (H*W, C_pad) -> (C_pad, H*W) -> first C_out rows: the store is H*W lanes
    # wide (unmasked) and already in NCHW-contiguous order.
    o_ref[...] = jnp.transpose(y)[:c_out, :].astype(o_ref.dtype)


@functools.partial(jax.jit,
                   static_argnames=("kernel_size", "stride", "padding", "dilation"))
def basic_conv_forward(x, weight, gamma, beta, *,
                       kernel_size, stride, padding, dilation):
    """x: (N, C_in, H, W) NCHW f32. weight: (C_out, C_in, K, K). Returns NCHW f32."""
    n, c_in, h, w = x.shape
    c_out = weight.shape[0]
    k = kernel_size

    # ZeroPad2d + NCHW -> NHWC (channels-minor) for the in-kernel tap gather.
    x_nhwc = jnp.transpose(x, (0, 2, 3, 1)).astype(jnp.float32)
    if padding > 0:
        x_nhwc = jnp.pad(
            x_nhwc, ((0, 0), (padding, padding), (padding, padding), (0, 0)))
    hp, wp = h + 2 * padding, w + 2 * padding
    h_out = (hp - dilation * (k - 1) - 1) // stride + 1
    w_out = (wp - dilation * (k - 1) - 1) // stride + 1
    m = h_out * w_out

    # Weights: (C_out, C_in, K, K) -> (K*K, C_in, C_pad), zero-padded to 128
    # output lanes (dense MXU result tiles), bf16 MXU operands.
    c_pad = _round_up(max(c_out, LANE), LANE)
    w_taps = jnp.transpose(weight, (2, 3, 1, 0)).reshape(k * k, c_in, c_out)
    w_taps = jnp.pad(w_taps, ((0, 0), (0, 0), (0, c_pad - c_out)))
    w_taps = w_taps.astype(jnp.bfloat16)

    x_spec = pl.BlockSpec((None, hp, wp, c_in), lambda i: (i, 0, 0, 0))
    w_spec = pl.BlockSpec((k * k, c_in, c_pad), lambda i: (0, 0, 0))

    # ---- pass 1: conv + global BN statistics (resident accumulators) ----
    stats_kernel = functools.partial(
        _stats_kernel, k=k, stride=stride, dilation=dilation,
        h_out=h_out, w_out=w_out)
    ch_sum, ch_sumsq = pl.pallas_call(
        stats_kernel,
        out_shape=(jax.ShapeDtypeStruct((1, c_pad), jnp.float32),
                   jax.ShapeDtypeStruct((1, c_pad), jnp.float32)),
        grid=(n,),
        in_specs=[x_spec, w_spec],
        out_specs=(pl.BlockSpec((1, c_pad), lambda i: (0, 0)),
                   pl.BlockSpec((1, c_pad), lambda i: (0, 0))),
        compiler_params=pltpu.CompilerParams(
            dimension_semantics=("arbitrary",),          # cross-image reduction
            vmem_limit_bytes=VMEM_LIMIT_BYTES),
    )(x_nhwc, w_taps)

    # ---- tiny glue: fold training-mode BN into per-channel scale/shift ----
    count = float(n * m)
    mean = ch_sum / count
    var = jnp.maximum(ch_sumsq / count - mean * mean, 0.0)   # biased variance
    gamma_p = jnp.pad(gamma.astype(jnp.float32), (0, c_pad - c_out)).reshape(1, c_pad)
    beta_p = jnp.pad(beta.astype(jnp.float32), (0, c_pad - c_out)).reshape(1, c_pad)
    scale = gamma_p * jax.lax.rsqrt(var + BN_EPS)
    shift = beta_p - mean * scale

    # ---- pass 2: conv + fused BN + ReLU, NCHW-contiguous lane-dense output ----
    apply_kernel = functools.partial(
        _apply_kernel, k=k, stride=stride, dilation=dilation,
        h_out=h_out, w_out=w_out, c_out=c_out)
    out = pl.pallas_call(
        apply_kernel,
        out_shape=jax.ShapeDtypeStruct((n, c_out, m), jnp.float32),
        grid=(n,),
        in_specs=[
            x_spec,
            w_spec,
            pl.BlockSpec((1, c_pad), lambda i: (0, 0)),
            pl.BlockSpec((1, c_pad), lambda i: (0, 0)),
        ],
        out_specs=pl.BlockSpec((None, c_out, m), lambda i: (i, 0, 0)),
        compiler_params=pltpu.CompilerParams(
            dimension_semantics=("parallel",),           # v7x: both TensorCores
            vmem_limit_bytes=VMEM_LIMIT_BYTES),
    )(x_nhwc, w_taps, scale, shift)

    # (N, C_out, H_out*W_out) is already NCHW-contiguous: free reshape, no transpose.
    return out.reshape(n, c_out, h_out, w_out)


def _reference(x, weight, gamma, beta, *, kernel_size, stride, padding, dilation,
               match_bf16=False):
    """Pure-JAX reference (lax conv + training-mode BN + ReLU).

    match_bf16=True rounds the conv inputs to bf16 first, matching the kernel's
    MXU operand precision (the intentional precision trade-off from the review).
    """
    del kernel_size
    if match_bf16:
        x = x.astype(jnp.bfloat16).astype(jnp.float32)
        weight = weight.astype(jnp.bfloat16).astype(jnp.float32)
    if padding > 0:
        x = jnp.pad(x, ((0, 0), (0, 0), (padding, padding), (padding, padding)))
    y = jax.lax.conv_general_dilated(
        x.astype(jnp.float32), weight.astype(jnp.float32),
        window_strides=(stride, stride), padding="VALID",
        rhs_dilation=(dilation, dilation),
        dimension_numbers=("NCHW", "OIHW", "NCHW"),
        precision=jax.lax.Precision.HIGHEST)
    mean = jnp.mean(y, axis=(0, 2, 3), keepdims=True)
    var = jnp.mean((y - mean) ** 2, axis=(0, 2, 3), keepdims=True)
    y = (y - mean) * jax.lax.rsqrt(var + BN_EPS)
    y = y * gamma.reshape(1, -1, 1, 1) + beta.reshape(1, -1, 1, 1)
    return jnp.maximum(y, 0.0)


if __name__ == "__main__":
    # BasicConv(in_channels=4, out_channels=8, kernel_size=3, stride=1,
    #           padding=1, dilation=1, relu=True, bn=True)
    N, C_IN, C_OUT, H, W, K = 2, 4, 8, 16, 16, 3
    STRIDE, PADDING, DILATION = 1, 1, 1

    key = jax.random.PRNGKey(0)
    kx, kw = jax.random.split(key)
    x = jax.random.normal(kx, (N, C_IN, H, W), dtype=jnp.float32)
    weight = jax.random.normal(kw, (C_OUT, C_IN, K, K), dtype=jnp.float32) * 0.1
    # Deterministic, non-trivial BN affine params (bn=True -> conv has no bias).
    gamma = 1.0 + 0.1 * jnp.arange(C_OUT, dtype=jnp.float32)
    beta = 0.05 * jnp.arange(C_OUT, dtype=jnp.float32)

    out = basic_conv_forward(
        x, weight, gamma, beta,
        kernel_size=K, stride=STRIDE, padding=PADDING, dilation=DILATION)
    out = jax.block_until_ready(out)
    assert out.shape == (N, C_OUT, H, W), out.shape

    # Tight check against a reference using the same bf16-rounded conv inputs
    # (isolates kernel structure from the intentional bf16 MXU precision choice).
    ref_bf16 = _reference(
        x, weight, gamma, beta, kernel_size=K, stride=STRIDE,
        padding=PADDING, dilation=DILATION, match_bf16=True)
    err_t = float(jnp.max(jnp.abs(out - ref_bf16)))
    assert jnp.allclose(out, ref_bf16, atol=2e-3, rtol=2e-3), err_t

    # End-to-end check against exact f32 module semantics; tolerance reflects
    # the ~1e-2-level relative error from bf16 MXU operands.
    ref_f32 = _reference(
        x, weight, gamma, beta, kernel_size=K, stride=STRIDE,
        padding=PADDING, dilation=DILATION, match_bf16=False)
    err_f = float(jnp.max(jnp.abs(out - ref_f32)))
    assert jnp.allclose(out, ref_f32, atol=2e-2, rtol=2e-2), err_f

    print("KERNEL_OK")
</pallas_src>

<mosaic_0001>
module attributes {stable_mosaic.version = 11 : i64} {
  func.func @_stats_kernel(%arg0: i32, %arg1: memref<1x18x18x4xf32, #tpu.memory_space<vmem>>, %arg2: memref<9x4x128xbf16, #tpu.memory_space<vmem>>, %arg3: memref<1x128xf32, #tpu.memory_space<vmem>>, %arg4: memref<1x128xf32, #tpu.memory_space<vmem>>) attributes {dimension_semantics = [#tpu.dimension_semantics<arbitrary>], iteration_bounds = array<i64: 2>, scalar_prefetch = 0 : i64, scratch_operands = 0 : i64, tpu.core_type = #tpu.core_type<tc>, window_params = [{transform_indices = @transform_0, window_bounds = array<i64: 1, 18, 18, 4>}, {pipeline_mode = #tpu.pipeline_mode<synchronous>, transform_indices = @transform_1, window_bounds = array<i64: 9, 4, 128>}, {pipeline_mode = #tpu.pipeline_mode<synchronous>, transform_indices = @transform_2, window_bounds = array<i64: 1, 128>}, {pipeline_mode = #tpu.pipeline_mode<synchronous>, transform_indices = @transform_3, window_bounds = array<i64: 1, 128>}]} {
    %c0_i32 = arith.constant 0 : i32
    %0 = arith.cmpi eq, %arg0, %c0_i32 : i32
    %1 = arith.extui %0 : i1 to i32
    %c0_i32_0 = arith.constant 0 : i32
    %2 = arith.cmpi ne, %1, %c0_i32_0 : i32
    scf.if %2 {
      %cst_74 = arith.constant 0.000000e+00 : f32
      %87 = vector.broadcast %cst_74 : f32 to vector<1x128xf32>
      %c0_75 = arith.constant 0 : index
      %c0_76 = arith.constant 0 : index
      %88 = vector.load %arg3[%c0_75, %c0_76] : memref<1x128xf32, #tpu.memory_space<vmem>>, vector<1x128xf32>
      tpu.vector_store %arg3[%c0_75, %c0_76], %87 {strides = array<i32>} : memref<1x128xf32, #tpu.memory_space<vmem>>, vector<1x128xf32>,
      %cst_77 = arith.constant 0.000000e+00 : f32
      %89 = vector.broadcast %cst_77 : f32 to vector<1x128xf32>
      %c0_78 = arith.constant 0 : index
      %c0_79 = arith.constant 0 : index
      %90 = vector.load %arg4[%c0_78, %c0_79] : memref<1x128xf32, #tpu.memory_space<vmem>>, vector<1x128xf32>
      tpu.vector_store %arg4[%c0_78, %c0_79], %89 {strides = array<i32>} : memref<1x128xf32, #tpu.memory_space<vmem>>, vector<1x128xf32>,
    } else {
    }
    %cst = arith.constant 0.000000e+00 : f32
    %3 = vector.broadcast %cst : f32 to vector<256x128xf32>
    %c0 = arith.constant 0 : index
    %c0_1 = arith.constant 0 : index
    %c0_2 = arith.constant 0 : index
    %c0_3 = arith.constant 0 : index
    %4 = vector.load %arg1[%c0, %c0_1, %c0_2, %c0_3] : memref<1x18x18x4xf32, #tpu.memory_space<vmem>>, vector<1x16x16x4xf32>
    %5 = vector.shape_cast %4 : vector<1x16x16x4xf32> to vector<16x16x4xf32>
    %6 = vector.shape_cast %5 : vector<16x16x4xf32> to vector<256x4xf32>
    %7 = arith.truncf %6 : vector<256x4xf32> to vector<256x4xbf16>
    %c0_4 = arith.constant 0 : index
    %c0_5 = arith.constant 0 : index
    %c0_6 = arith.constant 0 : index
    %8 = vector.load %arg2[%c0_4, %c0_5, %c0_6] : memref<9x4x128xbf16, #tpu.memory_space<vmem>>, vector<1x4x128xbf16>
    %9 = vector.shape_cast %8 : vector<1x4x128xbf16> to vector<4x128xbf16>
    %cst_7 = arith.constant dense<0.000000e+00> : vector<256x128xf32>
    %10 = tpu.matmul %7, %9, %cst_7 {dimension_numbers = #tpu.dot_dimension_numbers<[1], [0], [0], [1], [0, 0, 1, 1], [], []>} : vector<256x4xbf16>, vector<4x128xbf16>, vector<256x128xf32> -> vector<256x128xf32>
    %11 = arith.addf %3, %10 : vector<256x128xf32>
    %c0_8 = arith.constant 0 : index
    %c0_9 = arith.constant 0 : index
    %c1 = arith.constant 1 : index
    %c0_10 = arith.constant 0 : index
    %12 = vector.load %arg1[%c0_8, %c0_9, %c1, %c0_10] : memref<1x18x18x4xf32, #tpu.memory_space<vmem>>, vector<1x16x16x4xf32>
    %13 = vector.shape_cast %12 : vector<1x16x16x4xf32> to vector<16x16x4xf32>
    %14 = vector.shape_cast %13 : vector<16x16x4xf32> to vector<256x4xf32>
    %15 = arith.truncf %14 : vector<256x4xf32> to vector<256x4xbf16>
    %c1_11 = arith.constant 1 : index
    %c0_12 = arith.constant 0 : index
    %c0_13 = arith.constant 0 : index
    %16 = vector.load %arg2[%c1_11, %c0_12, %c0_13] : memref<9x4x128xbf16, #tpu.memory_space<vmem>>, vector<1x4x128xbf16>
    %17 = vector.shape_cast %16 : vector<1x4x128xbf16> to vector<4x128xbf16>
    %cst_14 = arith.constant dense<0.000000e+00> : vector<256x128xf32>
    %18 = tpu.matmul %15, %17, %cst_14 {dimension_numbers = #tpu.dot_dimension_numbers<[1], [0], [0], [1], [0, 0, 1, 1], [], []>} : vector<256x4xbf16>, vector<4x128xbf16>, vector<256x128xf32> -> vector<256x128xf32>
    %19 = arith.addf %11, %18 : vector<256x128xf32>
    %c0_15 = arith.constant 0 : index
    %c0_16 = arith.constant 0 : index
    %c2 = arith.constant 2 : index
    %c0_17 = arith.constant 0 : index
    %20 = vector.load %arg1[%c0_15, %c0_16, %c2, %c0_17] : memref<1x18x18x4xf32, #tpu.memory_space<vmem>>, vector<1x16x16x4xf32>
    %21 = vector.shape_cast %20 : vector<1x16x16x4xf32> to vector<16x16x4xf32>
    %22 = vector.shape_cast %21 : vector<16x16x4xf32> to vector<256x4xf32>
    %23 = arith.truncf %22 : vector<256x4xf32> to vector<256x4xbf16>
    %c2_18 = arith.constant 2 : index
    %c0_19 = arith.constant 0 : index
    %c0_20 = arith.constant 0 : index
    %24 = vector.load %arg2[%c2_18, %c0_19, %c0_20] : memref<9x4x128xbf16, #tpu.memory_space<vmem>>, vector<1x4x128xbf16>
    %25 = vector.shape_cast %24 : vector<1x4x128xbf16> to vector<4x128xbf16>
    %cst_21 = arith.constant dense<0.000000e+00> : vector<256x128xf32>
    %26 = tpu.matmul %23, %25, %cst_21 {dimension_numbers = #tpu.dot_dimension_numbers<[1], [0], [0], [1], [0, 0, 1, 1], [], []>} : vector<256x4xbf16>, vector<4x128xbf16>, vector<256x128xf32> -> vector<256x128xf32>
    %27 = arith.addf %19, %26 : vector<256x128xf32>
    %c0_22 = arith.constant 0 : index
    %c1_23 = arith.constant 1 : index
    %c0_24 = arith.constant 0 : index
    %c0_25 = arith.constant 0 : index
    %28 = vector.load %arg1[%c0_22, %c1_23, %c0_24, %c0_25] : memref<1x18x18x4xf32, #tpu.memory_space<vmem>>, vector<1x16x16x4xf32>
    %29 = vector.shape_cast %28 : vector<1x16x16x4xf32> to vector<16x16x4xf32>
    %30 = vector.shape_cast %29 : vector<16x16x4xf32> to vector<256x4xf32>
    %31 = arith.truncf %30 : vector<256x4xf32> to vector<256x4xbf16>
    %c3 = arith.constant 3 : index
    %c0_26 = arith.constant 0 : index
    %c0_27 = arith.constant 0 : index
    %32 = vector.load %arg2[%c3, %c0_26, %c0_27] : memref<9x4x128xbf16, #tpu.memory_space<vmem>>, vector<1x4x128xbf16>
    %33 = vector.shape_cast %32 : vector<1x4x128xbf16> to vector<4x128xbf16>
    %cst_28 = arith.constant dense<0.000000e+00> : vector<256x128xf32>
    %34 = tpu.matmul %31, %33, %cst_28 {dimension_numbers = #tpu.dot_dimension_numbers<[1], [0], [0], [1], [0, 0, 1, 1], [], []>} : vector<256x4xbf16>, vector<4x128xbf16>, vector<256x128xf32> -> vector<256x128xf32>
    %35 = arith.addf %27, %34 : vector<256x128xf32>
    %c0_29 = arith.constant 0 : index
    %c1_30 = arith.constant 1 : index
    %c1_31 = arith.constant 1 : index
    %c0_32 = arith.constant 0 : index
    %36 = vector.load %arg1[%c0_29, %c1_30, %c1_31, %c0_32] : memref<1x18x18x4xf32, #tpu.memory_space<vmem>>, vector<1x16x16x4xf32>
    %37 = vector.shape_cast %36 : vector<1x16x16x4xf32> to vector<16x16x4xf32>
    %38 = vector.shape_cast %37 : vector<16x16x4xf32> to vector<256x4xf32>
    %39 = arith.truncf %38 : vector<256x4xf32> to vector<256x4xbf16>
    %c4 = arith.constant 4 : index
    %c0_33 = arith.constant 0 : index
    %c0_34 = arith.constant 0 : index
    %40 = vector.load %arg2[%c4, %c0_33, %c0_34] : memref<9x4x128xbf16, #tpu.memory_space<vmem>>, vector<1x4x128xbf16>
    %41 = vector.shape_cast %40 : vector<1x4x128xbf16> to vector<4x128xbf16>
    %cst_35 = arith.constant dense<0.000000e+00> : vector<256x128xf32>
    %42 = tpu.matmul %39, %41, %cst_35 {dimension_numbers = #tpu.dot_dimension_numbers<[1], [0], [0], [1], [0, 0, 1, 1], [], []>} : vector<256x4xbf16>, vector<4x128xbf16>, vector<256x128xf32> -> vector<256x128xf32>
    %43 = arith.addf %35, %42 : vector<256x128xf32>
    %c0_36 = arith.constant 0 : index
    %c1_37 = arith.constant 1 : index
    %c2_38 = arith.constant 2 : index
    %c0_39 = arith.constant 0 : index
    %44 = vector.load %arg1[%c0_36, %c1_37, %c2_38, %c0_39] : memref<1x18x18x4xf32, #tpu.memory_space<vmem>>, vector<1x16x16x4xf32>
    %45 = vector.shape_cast %44 : vector<1x16x16x4xf32> to vector<16x16x4xf32>
    %46 = vector.shape_cast %45 : vector<16x16x4xf32> to vector<256x4xf32>
    %47 = arith.truncf %46 : vector<256x4xf32> to vector<256x4xbf16>
    %c5 = arith.constant 5 : index
    %c0_40 = arith.constant 0 : index
    %c0_41 = arith.constant 0 : index
    %48 = vector.load %arg2[%c5, %c0_40, %c0_41] : memref<9x4x128xbf16, #tpu.memory_space<vmem>>, vector<1x4x128xbf16>
    %49 = vector.shape_cast %48 : vector<1x4x128xbf16> to vector<4x128xbf16>
    %cst_42 = arith.constant dense<0.000000e+00> : vector<256x128xf32>
    %50 = tpu.matmul %47, %49, %cst_42 {dimension_numbers = #tpu.dot_dimension_numbers<[1], [0], [0], [1], [0, 0, 1, 1], [], []>} : vector<256x4xbf16>, vector<4x128xbf16>, vector<256x128xf32> -> vector<256x128xf32>
    %51 = arith.addf %43, %50 : vector<256x128xf32>
    %c0_43 = arith.constant 0 : index
    %c2_44 = arith.constant 2 : index
    %c0_45 = arith.constant 0 : index
    %c0_46 = arith.constant 0 : index
    %52 = vector.load %arg1[%c0_43, %c2_44, %c0_45, %c0_46] : memref<1x18x18x4xf32, #tpu.memory_space<vmem>>, vector<1x16x16x4xf32>
    %53 = vector.shape_cast %52 : vector<1x16x16x4xf32> to vector<16x16x4xf32>
    %54 = vector.shape_cast %53 : vector<16x16x4xf32> to vector<256x4xf32>
    %55 = arith.truncf %54 : vector<256x4xf32> to vector<256x4xbf16>
    %c6 = arith.constant 6 : index
    %c0_47 = arith.constant 0 : index
    %c0_48 = arith.constant 0 : index
    %56 = vector.load %arg2[%c6, %c0_47, %c0_48] : memref<9x4x128xbf16, #tpu.memory_space<vmem>>, vector<1x4x128xbf16>
    %57 = vector.shape_cast %56 : vector<1x4x128xbf16> to vector<4x128xbf16>
    %cst_49 = arith.constant dense<0.000000e+00> : vector<256x128xf32>
    %58 = tpu.matmul %55, %57, %cst_49 {dimension_numbers = #tpu.dot_dimension_numbers<[1], [0], [0], [1], [0, 0, 1, 1], [], []>} : vector<256x4xbf16>, vector<4x128xbf16>, vector<256x128xf32> -> vector<256x128xf32>
    %59 = arith.addf %51, %58 : vector<256x128xf32>
    %c0_50 = arith.constant 0 : index
    %c2_51 = arith.constant 2 : index
    %c1_52 = arith.constant 1 : index
    %c0_53 = arith.constant 0 : index
    %60 = vector.load %arg1[%c0_50, %c2_51, %c1_52, %c0_53] : memref<1x18x18x4xf32, #tpu.memory_space<vmem>>, vector<1x16x16x4xf32>
    %61 = vector.shape_cast %60 : vector<1x16x16x4xf32> to vector<16x16x4xf32>
    %62 = vector.shape_cast %61 : vector<16x16x4xf32> to vector<256x4xf32>
    %63 = arith.truncf %62 : vector<256x4xf32> to vector<256x4xbf16>
    %c7 = arith.constant 7 : index
    %c0_54 = arith.constant 0 : index
    %c0_55 = arith.constant 0 : index
    %64 = vector.load %arg2[%c7, %c0_54, %c0_55] : memref<9x4x128xbf16, #tpu.memory_space<vmem>>, vector<1x4x128xbf16>
    %65 = vector.shape_cast %64 : vector<1x4x128xbf16> to vector<4x128xbf16>
    %cst_56 = arith.constant dense<0.000000e+00> : vector<256x128xf32>
    %66 = tpu.matmul %63, %65, %cst_56 {dimension_numbers = #tpu.dot_dimension_numbers<[1], [0], [0], [1], [0, 0, 1, 1], [], []>} : vector<256x4xbf16>, vector<4x128xbf16>, vector<256x128xf32> -> vector<256x128xf32>
    %67 = arith.addf %59, %66 : vector<256x128xf32>
    %c0_57 = arith.constant 0 : index
    %c2_58 = arith.constant 2 : index
    %c2_59 = arith.constant 2 : index
    %c0_60 = arith.constant 0 : index
    %68 = vector.load %arg1[%c0_57, %c2_58, %c2_59, %c0_60] : memref<1x18x18x4xf32, #tpu.memory_space<vmem>>, vector<1x16x16x4xf32>
    %69 = vector.shape_cast %68 : vector<1x16x16x4xf32> to vector<16x16x4xf32>
    %70 = vector.shape_cast %69 : vector<16x16x4xf32> to vector<256x4xf32>
    %71 = arith.truncf %70 : vector<256x4xf32> to vector<256x4xbf16>
    %c8 = arith.constant 8 : index
    %c0_61 = arith.constant 0 : index
    %c0_62 = arith.constant 0 : index
    %72 = vector.load %arg2[%c8, %c0_61, %c0_62] : memref<9x4x128xbf16, #tpu.memory_space<vmem>>, vector<1x4x128xbf16>
    %73 = vector.shape_cast %72 : vector<1x4x128xbf16> to vector<4x128xbf16>
    %cst_63 = arith.constant dense<0.000000e+00> : vector<256x128xf32>
    %74 = tpu.matmul %71, %73, %cst_63 {dimension_numbers = #tpu.dot_dimension_numbers<[1], [0], [0], [1], [0, 0, 1, 1], [], []>} : vector<256x4xbf16>, vector<4x128xbf16>, vector<256x128xf32> -> vector<256x128xf32>
    %75 = arith.addf %67, %74 : vector<256x128xf32>
    %c0_64 = arith.constant 0 : index
    %c0_65 = arith.constant 0 : index
    %76 = vector.load %arg3[%c0_64, %c0_65] : memref<1x128xf32, #tpu.memory_space<vmem>>, vector<1x128xf32>
    %cst_66 = arith.constant dense<0.000000e+00> : vector<128xf32>
    %77 = vector.multi_reduction <add>, %75, %cst_66 [0] : vector<256x128xf32> to vector<128xf32>
    %78 = vector.shape_cast %77 : vector<128xf32> to vector<1x128xf32>
    %79 = arith.addf %76, %78 : vector<1x128xf32>
    %c0_67 = arith.constant 0 : index
    %c0_68 = arith.constant 0 : index
    %80 = vector.load %arg3[%c0_67, %c0_68] : memref<1x128xf32, #tpu.memory_space<vmem>>, vector<1x128xf32>
    tpu.vector_store %arg3[%c0_67, %c0_68], %79 {strides = array<i32>} : memref<1x128xf32, #tpu.memory_space<vmem>>, vector<1x128xf32>,
    %c0_69 = arith.constant 0 : index
    %c0_70 = arith.constant 0 : index
    %81 = vector.load %arg4[%c0_69, %c0_70] : memref<1x128xf32, #tpu.memory_space<vmem>>, vector<1x128xf32>
    %82 = arith.mulf %75, %75 : vector<256x128xf32>
    %cst_71 = arith.constant dense<0.000000e+00> : vector<128xf32>
    %83 = vector.multi_reduction <add>, %82, %cst_71 [0] : vector<256x128xf32> to vector<128xf32>
    %84 = vector.shape_cast %83 : vector<128xf32> to vector<1x128xf32>
    %85 = arith.addf %81, %84 : vector<1x128xf32>
    %c0_72 = arith.constant 0 : index
    %c0_73 = arith.constant 0 : index
    %86 = vector.load %arg4[%c0_72, %c0_73] : memref<1x128xf32, #tpu.memory_space<vmem>>, vector<1x128xf32>
    tpu.vector_store %arg4[%c0_72, %c0_73], %85 {strides = array<i32>} : memref<1x128xf32, #tpu.memory_space<vmem>>, vector<1x128xf32>,
    return
  }
  func.func @transform_0(%arg0: i32) -> (i32, i32, i32, i32) {
    %c0_i32 = arith.constant 0 : i32
    %c0_i32_0 = arith.constant 0 : i32
    %c0_i32_1 = arith.constant 0 : i32
    %c0_i32_2 = arith.constant 0 : i32
    return %arg0, %c0_i32, %c0_i32_0, %c0_i32_1 : i32, i32, i32, i32
  }
  func.func @transform_1(%arg0: i32) -> (i32, i32, i32) {
    %c0_i32 = arith.constant 0 : i32
    %c0_i32_0 = arith.constant 0 : i32
    %c0_i32_1 = arith.constant 0 : i32
    %c0_i32_2 = arith.constant 0 : i32
    return %c0_i32, %c0_i32_0, %c0_i32_1 : i32, i32, i32
  }
  func.func @transform_2(%arg0: i32) -> (i32, i32) {
    %c0_i32 = arith.constant 0 : i32
    %c0_i32_0 = arith.constant 0 : i32
    %c0_i32_1 = arith.constant 0 : i32
    return %c0_i32, %c0_i32_0 : i32, i32
  }
  func.func @transform_3(%arg0: i32) -> (i32, i32) {
    %c0_i32 = arith.constant 0 : i32
    %c0_i32_0 = arith.constant 0 : i32
    %c0_i32_1 = arith.constant 0 : i32
    return %c0_i32, %c0_i32_0 : i32, i32
  }
}

module attributes {stable_mosaic.version = 11 : i64} {
  func.func @_apply_kernel(%arg0: i32, %arg1: memref<1x18x18x4xf32, #tpu.memory_space<vmem>>, %arg2: memref<9x4x128xbf16, #tpu.memory_space<vmem>>, %arg3: memref<1x128xf32, #tpu.memory_space<vmem>>, %arg4: memref<1x128xf32, #tpu.memory_space<vmem>>, %arg5: memref<1x8x256xf32, #tpu.memory_space<vmem>>) attributes {dimension_semantics = [#tpu.dimension_semantics<parallel>], iteration_bounds = array<i64: 2>, scalar_prefetch = 0 : i64, scratch_operands = 0 : i64, tpu.core_type = #tpu.core_type<tc>, window_params = [{transform_indices = @transform_0, window_bounds = array<i64: 1, 18, 18, 4>}, {pipeline_mode = #tpu.pipeline_mode<synchronous>, transform_indices = @transform_1, window_bounds = array<i64: 9, 4, 128>}, {pipeline_mode = #tpu.pipeline_mode<synchronous>, transform_indices = @transform_2, window_bounds = array<i64: 1, 128>}, {pipeline_mode = #tpu.pipeline_mode<synchronous>, transform_indices = @transform_3, window_bounds = array<i64: 1, 128>}, {transform_indices = @transform_4, window_bounds = array<i64: 1, 8, 256>}]} {
    %cst = arith.constant 0.000000e+00 : f32
    %0 = vector.broadcast %cst : f32 to vector<256x128xf32>
    %c0 = arith.constant 0 : index
    %c0_0 = arith.constant 0 : index
    %c0_1 = arith.constant 0 : index
    %c0_2 = arith.constant 0 : index
    %1 = vector.load %arg1[%c0, %c0_0, %c0_1, %c0_2] : memref<1x18x18x4xf32, #tpu.memory_space<vmem>>, vector<1x16x16x4xf32>
    %2 = vector.shape_cast %1 : vector<1x16x16x4xf32> to vector<16x16x4xf32>
    %3 = vector.shape_cast %2 : vector<16x16x4xf32> to vector<256x4xf32>
    %4 = arith.truncf %3 : vector<256x4xf32> to vector<256x4xbf16>
    %c0_3 = arith.constant 0 : index
    %c0_4 = arith.constant 0 : index
    %c0_5 = arith.constant 0 : index
    %5 = vector.load %arg2[%c0_3, %c0_4, %c0_5] : memref<9x4x128xbf16, #tpu.memory_space<vmem>>, vector<1x4x128xbf16>
    %6 = vector.shape_cast %5 : vector<1x4x128xbf16> to vector<4x128xbf16>
    %cst_6 = arith.constant dense<0.000000e+00> : vector<256x128xf32>
    %7 = tpu.matmul %4, %6, %cst_6 {dimension_numbers = #tpu.dot_dimension_numbers<[1], [0], [0], [1], [0, 0, 1, 1], [], []>} : vector<256x4xbf16>, vector<4x128xbf16>, vector<256x128xf32> -> vector<256x128xf32>
    %8 = arith.addf %0, %7 : vector<256x128xf32>
    %c0_7 = arith.constant 0 : index
    %c0_8 = arith.constant 0 : index
    %c1 = arith.constant 1 : index
    %c0_9 = arith.constant 0 : index
    %9 = vector.load %arg1[%c0_7, %c0_8, %c1, %c0_9] : memref<1x18x18x4xf32, #tpu.memory_space<vmem>>, vector<1x16x16x4xf32>
    %10 = vector.shape_cast %9 : vector<1x16x16x4xf32> to vector<16x16x4xf32>
    %11 = vector.shape_cast %10 : vector<16x16x4xf32> to vector<256x4xf32>
    %12 = arith.truncf %11 : vector<256x4xf32> to vector<256x4xbf16>
    %c1_10 = arith.constant 1 : index
    %c0_11 = arith.constant 0 : index
    %c0_12 = arith.constant 0 : index
    %13 = vector.load %arg2[%c1_10, %c0_11, %c0_12] : memref<9x4x128xbf16, #tpu.memory_space<vmem>>, vector<1x4x128xbf16>
    %14 = vector.shape_cast %13 : vector<1x4x128xbf16> to vector<4x128xbf16>
    %cst_13 = arith.constant dense<0.000000e+00> : vector<256x128xf32>
    %15 = tpu.matmul %12, %14, %cst_13 {dimension_numbers = #tpu.dot_dimension_numbers<[1], [0], [0], [1], [0, 0, 1, 1], [], []>} : vector<256x4xbf16>, vector<4x128xbf16>, vector<256x128xf32> -> vector<256x128xf32>
    %16 = arith.addf %8, %15 : vector<256x128xf32>
    %c0_14 = arith.constant 0 : index
    %c0_15 = arith.constant 0 : index
    %c2 = arith.constant 2 : index
    %c0_16 = arith.constant 0 : index
    %17 = vector.load %arg1[%c0_14, %c0_15, %c2, %c0_16] : memref<1x18x18x4xf32, #tpu.memory_space<vmem>>, vector<1x16x16x4xf32>
    %18 = vector.shape_cast %17 : vector<1x16x16x4xf32> to vector<16x16x4xf32>
    %19 = vector.shape_cast %18 : vector<16x16x4xf32> to vector<256x4xf32>
    %20 = arith.truncf %19 : vector<256x4xf32> to vector<256x4xbf16>
    %c2_17 = arith.constant 2 : index
    %c0_18 = arith.constant 0 : index
    %c0_19 = arith.constant 0 : index
    %21 = vector.load %arg2[%c2_17, %c0_18, %c0_19] : memref<9x4x128xbf16, #tpu.memory_space<vmem>>, vector<1x4x128xbf16>
    %22 = vector.shape_cast %21 : vector<1x4x128xbf16> to vector<4x128xbf16>
    %cst_20 = arith.constant dense<0.000000e+00> : vector<256x128xf32>
    %23 = tpu.matmul %20, %22, %cst_20 {dimension_numbers = #tpu.dot_dimension_numbers<[1], [0], [0], [1], [0, 0, 1, 1], [], []>} : vector<256x4xbf16>, vector<4x128xbf16>, vector<256x128xf32> -> vector<256x128xf32>
    %24 = arith.addf %16, %23 : vector<256x128xf32>
    %c0_21 = arith.constant 0 : index
    %c1_22 = arith.constant 1 : index
    %c0_23 = arith.constant 0 : index
    %c0_24 = arith.constant 0 : index
    %25 = vector.load %arg1[%c0_21, %c1_22, %c0_23, %c0_24] : memref<1x18x18x4xf32, #tpu.memory_space<vmem>>, vector<1x16x16x4xf32>
    %26 = vector.shape_cast %25 : vector<1x16x16x4xf32> to vector<16x16x4xf32>
    %27 = vector.shape_cast %26 : vector<16x16x4xf32> to vector<256x4xf32>
    %28 = arith.truncf %27 : vector<256x4xf32> to vector<256x4xbf16>
    %c3 = arith.constant 3 : index
    %c0_25 = arith.constant 0 : index
    %c0_26 = arith.constant 0 : index
    %29 = vector.load %arg2[%c3, %c0_25, %c0_26] : memref<9x4x128xbf16, #tpu.memory_space<vmem>>, vector<1x4x128xbf16>
    %30 = vector.shape_cast %29 : vector<1x4x128xbf16> to vector<4x128xbf16>
    %cst_27 = arith.constant dense<0.000000e+00> : vector<256x128xf32>
    %31 = tpu.matmul %28, %30, %cst_27 {dimension_numbers = #tpu.dot_dimension_numbers<[1], [0], [0], [1], [0, 0, 1, 1], [], []>} : vector<256x4xbf16>, vector<4x128xbf16>, vector<256x128xf32> -> vector<256x128xf32>
    %32 = arith.addf %24, %31 : vector<256x128xf32>
    %c0_28 = arith.constant 0 : index
    %c1_29 = arith.constant 1 : index
    %c1_30 = arith.constant 1 : index
    %c0_31 = arith.constant 0 : index
    %33 = vector.load %arg1[%c0_28, %c1_29, %c1_30, %c0_31] : memref<1x18x18x4xf32, #tpu.memory_space<vmem>>, vector<1x16x16x4xf32>
    %34 = vector.shape_cast %33 : vector<1x16x16x4xf32> to vector<16x16x4xf32>
    %35 = vector.shape_cast %34 : vector<16x16x4xf32> to vector<256x4xf32>
    %36 = arith.truncf %35 : vector<256x4xf32> to vector<256x4xbf16>
    %c4 = arith.constant 4 : index
    %c0_32 = arith.constant 0 : index
    %c0_33 = arith.constant 0 : index
    %37 = vector.load %arg2[%c4, %c0_32, %c0_33] : memref<9x4x128xbf16, #tpu.memory_space<vmem>>, vector<1x4x128xbf16>
    %38 = vector.shape_cast %37 : vector<1x4x128xbf16> to vector<4x128xbf16>
    %cst_34 = arith.constant dense<0.000000e+00> : vector<256x128xf32>
    %39 = tpu.matmul %36, %38, %cst_34 {dimension_numbers = #tpu.dot_dimension_numbers<[1], [0], [0], [1], [0, 0, 1, 1], [], []>} : vector<256x4xbf16>, vector<4x128xbf16>, vector<256x128xf32> -> vector<256x128xf32>
    %40 = arith.addf %32, %39 : vector<256x128xf32>
    %c0_35 = arith.constant 0 : index
    %c1_36 = arith.constant 1 : index
    %c2_37 = arith.constant 2 : index
    %c0_38 = arith.constant 0 : index
    %41 = vector.load %arg1[%c0_35, %c1_36, %c2_37, %c0_38] : memref<1x18x18x4xf32, #tpu.memory_space<vmem>>, vector<1x16x16x4xf32>
    %42 = vector.shape_cast %41 : vector<1x16x16x4xf32> to vector<16x16x4xf32>
    %43 = vector.shape_cast %42 : vector<16x16x4xf32> to vector<256x4xf32>
    %44 = arith.truncf %43 : vector<256x4xf32> to vector<256x4xbf16>
    %c5 = arith.constant 5 : index
    %c0_39 = arith.constant 0 : index
    %c0_40 = arith.constant 0 : index
    %45 = vector.load %arg2[%c5, %c0_39, %c0_40] : memref<9x4x128xbf16, #tpu.memory_space<vmem>>, vector<1x4x128xbf16>
    %46 = vector.shape_cast %45 : vector<1x4x128xbf16> to vector<4x128xbf16>
    %cst_41 = arith.constant dense<0.000000e+00> : vector<256x128xf32>
    %47 = tpu.matmul %44, %46, %cst_41 {dimension_numbers = #tpu.dot_dimension_numbers<[1], [0], [0], [1], [0, 0, 1, 1], [], []>} : vector<256x4xbf16>, vector<4x128xbf16>, vector<256x128xf32> -> vector<256x128xf32>
    %48 = arith.addf %40, %47 : vector<256x128xf32>
    %c0_42 = arith.constant 0 : index
    %c2_43 = arith.constant 2 : index
    %c0_44 = arith.constant 0 : index
    %c0_45 = arith.constant 0 : index
    %49 = vector.load %arg1[%c0_42, %c2_43, %c0_44, %c0_45] : memref<1x18x18x4xf32, #tpu.memory_space<vmem>>, vector<1x16x16x4xf32>
    %50 = vector.shape_cast %49 : vector<1x16x16x4xf32> to vector<16x16x4xf32>
    %51 = vector.shape_cast %50 : vector<16x16x4xf32> to vector<256x4xf32>
    %52 = arith.truncf %51 : vector<256x4xf32> to vector<256x4xbf16>
    %c6 = arith.constant 6 : index
    %c0_46 = arith.constant 0 : index
    %c0_47 = arith.constant 0 : index
    %53 = vector.load %arg2[%c6, %c0_46, %c0_47] : memref<9x4x128xbf16, #tpu.memory_space<vmem>>, vector<1x4x128xbf16>
    %54 = vector.shape_cast %53 : vector<1x4x128xbf16> to vector<4x128xbf16>
    %cst_48 = arith.constant dense<0.000000e+00> : vector<256x128xf32>
    %55 = tpu.matmul %52, %54, %cst_48 {dimension_numbers = #tpu.dot_dimension_numbers<[1], [0], [0], [1], [0, 0, 1, 1], [], []>} : vector<256x4xbf16>, vector<4x128xbf16>, vector<256x128xf32> -> vector<256x128xf32>
    %56 = arith.addf %48, %55 : vector<256x128xf32>
    %c0_49 = arith.constant 0 : index
    %c2_50 = arith.constant 2 : index
    %c1_51 = arith.constant 1 : index
    %c0_52 = arith.constant 0 : index
    %57 = vector.load %arg1[%c0_49, %c2_50, %c1_51, %c0_52] : memref<1x18x18x4xf32, #tpu.memory_space<vmem>>, vector<1x16x16x4xf32>
    %58 = vector.shape_cast %57 : vector<1x16x16x4xf32> to vector<16x16x4xf32>
    %59 = vector.shape_cast %58 : vector<16x16x4xf32> to vector<256x4xf32>
    %60 = arith.truncf %59 : vector<256x4xf32> to vector<256x4xbf16>
    %c7 = arith.constant 7 : index
    %c0_53 = arith.constant 0 : index
    %c0_54 = arith.constant 0 : index
    %61 = vector.load %arg2[%c7, %c0_53, %c0_54] : memref<9x4x128xbf16, #tpu.memory_space<vmem>>, vector<1x4x128xbf16>
    %62 = vector.shape_cast %61 : vector<1x4x128xbf16> to vector<4x128xbf16>
    %cst_55 = arith.constant dense<0.000000e+00> : vector<256x128xf32>
    %63 = tpu.matmul %60, %62, %cst_55 {dimension_numbers = #tpu.dot_dimension_numbers<[1], [0], [0], [1], [0, 0, 1, 1], [], []>} : vector<256x4xbf16>, vector<4x128xbf16>, vector<256x128xf32> -> vector<256x128xf32>
    %64 = arith.addf %56, %63 : vector<256x128xf32>
    %c0_56 = arith.constant 0 : index
    %c2_57 = arith.constant 2 : index
    %c2_58 = arith.constant 2 : index
    %c0_59 = arith.constant 0 : index
    %65 = vector.load %arg1[%c0_56, %c2_57, %c2_58, %c0_59] : memref<1x18x18x4xf32, #tpu.memory_space<vmem>>, vector<1x16x16x4xf32>
    %66 = vector.shape_cast %65 : vector<1x16x16x4xf32> to vector<16x16x4xf32>
    %67 = vector.shape_cast %66 : vector<16x16x4xf32> to vector<256x4xf32>
    %68 = arith.truncf %67 : vector<256x4xf32> to vector<256x4xbf16>
    %c8 = arith.constant 8 : index
    %c0_60 = arith.constant 0 : index
    %c0_61 = arith.constant 0 : index
    %69 = vector.load %arg2[%c8, %c0_60, %c0_61] : memref<9x4x128xbf16, #tpu.memory_space<vmem>>, vector<1x4x128xbf16>
    %70 = vector.shape_cast %69 : vector<1x4x128xbf16> to vector<4x128xbf16>
    %cst_62 = arith.constant dense<0.000000e+00> : vector<256x128xf32>
    %71 = tpu.matmul %68, %70, %cst_62 {dimension_numbers = #tpu.dot_dimension_numbers<[1], [0], [0], [1], [0, 0, 1, 1], [], []>} : vector<256x4xbf16>, vector<4x128xbf16>, vector<256x128xf32> -> vector<256x128xf32>
    %72 = arith.addf %64, %71 : vector<256x128xf32>
    %c0_63 = arith.constant 0 : index
    %c0_64 = arith.constant 0 : index
    %73 = vector.load %arg3[%c0_63, %c0_64] : memref<1x128xf32, #tpu.memory_space<vmem>>, vector<1x128xf32>
    %74 = vector.broadcast %73 : vector<1x128xf32> to vector<256x128xf32>
    %75 = arith.mulf %72, %74 : vector<256x128xf32>
    %c0_65 = arith.constant 0 : index
    %c0_66 = arith.constant 0 : index
    %76 = vector.load %arg4[%c0_65, %c0_66] : memref<1x128xf32, #tpu.memory_space<vmem>>, vector<1x128xf32>
    %77 = vector.broadcast %76 : vector<1x128xf32> to vector<256x128xf32>
    %78 = arith.addf %75, %77 : vector<256x128xf32>
    %cst_67 = arith.constant 0.000000e+00 : f32
    %79 = vector.broadcast %cst_67 : f32 to vector<256x128xf32>
    %80 = arith.maximumf %78, %79 : vector<256x128xf32>
    %81 = tpu.transpose %80, [1, 0] : vector<256x128xf32> -> vector<128x256xf32>
    %82 = vector.extract_strided_slice %81 {offsets = [0, 0], sizes = [8, 256], strides = [1, 1]} : vector<128x256xf32> to vector<8x256xf32>
    %c0_68 = arith.constant 0 : index
    %c0_69 = arith.constant 0 : index
    %c0_70 = arith.constant 0 : index
    %83 = vector.load %arg5[%c0_68, %c0_69, %c0_70] : memref<1x8x256xf32, #tpu.memory_space<vmem>>, vector<1x8x256xf32>
    %84 = vector.shape_cast %83 : vector<1x8x256xf32> to vector<8x256xf32>
    %85 = vector.shape_cast %82 : vector<8x256xf32> to vector<1x8x256xf32>
    tpu.vector_store %arg5[%c0_68, %c0_69, %c0_70], %85 {strides = array<i32>} : memref<1x8x256xf32, #tpu.memory_space<vmem>>, vector<1x8x256xf32>,
    return
  }
  func.func @transform_0(%arg0: i32) -> (i32, i32, i32, i32) {
    %c0_i32 = arith.constant 0 : i32
    %c0_i32_0 = arith.constant 0 : i32
    %c0_i32_1 = arith.constant 0 : i32
    %c0_i32_2 = arith.constant 0 : i32
    return %arg0, %c0_i32, %c0_i32_0, %c0_i32_1 : i32, i32, i32, i32
  }
  func.func @transform_1(%arg0: i32) -> (i32, i32, i32) {
    %c0_i32 = arith.constant 0 : i32
    %c0_i32_0 = arith.constant 0 : i32
    %c0_i32_1 = arith.constant 0 : i32
    %c0_i32_2 = arith.constant 0 : i32
    return %c0_i32, %c0_i32_0, %c0_i32_1 : i32, i32, i32
  }
  func.func @transform_2(%arg0: i32) -> (i32, i32) {
    %c0_i32 = arith.constant 0 : i32
    %c0_i32_0 = arith.constant 0 : i32
    %c0_i32_1 = arith.constant 0 : i32
    return %c0_i32, %c0_i32_0 : i32, i32
  }
  func.func @transform_3(%arg0: i32) -> (i32, i32) {
    %c0_i32 = arith.constant 0 : i32
    %c0_i32_0 = arith.constant 0 : i32
    %c0_i32_1 = arith.constant 0 : i32
    return %c0_i32, %c0_i32_0 : i32, i32
  }
  func.func @transform_4(%arg0: i32) -> (i32, i32, i32) {
    %c0_i32 = arith.constant 0 : i32
    %c0_i32_0 = arith.constant 0 : i32
    %c0_i32_1 = arith.constant 0 : i32
    return %arg0, %c0_i32, %c0_i32_0 : i32, i32, i32
  }
}

</mosaic_0001>

<bundles_post_ra>
// kernel: basic_conv_forward.3
= control target key start
LH: loop header
LB: loop body
LE: loop exit
PB: predicated region body
PF: predicated region fallthrough
CT: control target
= control target key end

     0   :  { %s3885_s15 = smov 0   ;;  %s4955_s0 = inlined_call_operand.vmem [shape: f32[2,18,18,4], index: 0, kind: input, shape index: {}]   ;;  %s4956_s1 = inlined_call_operand.vmem [shape: bf16[9,4,128], index: 1, kind: input, shape index: {}]   ;;  %s4957_s2 = inlined_call_operand.vmem [shape: f32[1,128], index: 2, kind: input, shape index: {}]   ;;  %s4958_s3 = inlined_call_operand.vmem [shape: f32[1,128], index: 3, kind: input, shape index: {}]   ;;  %s4959_s4 = inlined_call_operand.vmem [shape: f32[2,8,256], index: 4, kind: output, shape index: {}]  }
   0x1 LB: > { %s3015_s16 = sadd.s32 4294967295, %s3858_s15   ;;  %p3019_p0 = scmp.ge.s32.totalorder %s3858_s15, 1  ;;  %s3858_s15 = sphi %s3885_s15, %s14_s15  }
   0x2   : > { %p162_p1 = scmp.lt.s32.totalorder %s3858_s15, 3 }
   0x4   : > { %p163_p2 = pnand %p3019_p0, %p162_p1 }
   0x5   : > { %p188_p3 = scmp.lt.s32.totalorder (!%p163_p2), %s3015_s16, 1 }
   0x6   : > { %166 = sbr.rel (%p163_p2) target bundleno = 609 (0x261), region = 36 }
   0xb   : > { %v3023_v0 = vld [vmem:[%s4956_s1 + $0x2] sm:$0x3]  ;;  %vm347_vm0 = vcmask 1041408   ;;  %v247_v2 = vld [vmem:[%s4956_s1] sm:$0x3]  ;;  %s4961_s16 = smov (!%p188_p3, %s3015_s16), 1 }
   0xc   : > { %3834 = vmatprep.subr.msk.bf16.mxu1 %vm347_vm0, %v3023_v0  ;;  %3833 = vmatprep.subr.msk.bf16.mxu0 %vm347_vm0, %v3023_v0  ;;  %v349_v1 = vsel %vm347_vm0, %v3023_v0, 0  ;;  %v3056_v3 = vld [vmem:[%s4956_s1 + $0x4] sm:$0x3]  ;;  %s3843_s23 = smul.u32 432, %s4961_s16  ;;  %vm298_vm1 = vcmask 31744   ;;  %v561_v18 = vsel %vm347_vm0, %v247_v2, 0 }
   0xd   : > { %3832 = vmatpush3.bf16.msra.mxu1 %v349_v1  ;;  %3526 = vmatpush3.bf16.msra.mxu0 %v349_v1  ;;  %v823_v15 = vsel %vm347_vm0, %v3056_v3, 0  ;;  %v3947_v24 = vld [vmem:[%s4956_s1 + $0x6] sm:$0x3]  ;;  %v3952_v25 = vld [vmem:[%s4956_s1 + $0x8] sm:$0x3]  ;;  %s3371_s19 = sshll.u32 %s4961_s16, 4 }
   0xe   : > { %3835 = vmatprep.subr.msk.bf16.mxu1 %vm347_vm0, %v247_v2  ;;  %3836 = vmatprep.subr.msk.bf16.mxu0 %vm347_vm0, %v3056_v3  ;;  %s3913_s26 = scalar_lea.vmem %s4955_s0, %s3843_s23  ;;  %s197_s22 = scalar_lea.vmem %s4959_s4, %s3371_s19 }
   0xf   : > { %v248_v4 = vld [vmem:[%s3913_s26 + $0x1] sm:$0xff]  ;;  %v249_v5 = vld [vmem:[%s3913_s26 + $0x9] sm:$0xff]  ;;  %v250_v9 = vld [vmem:[%s3913_s26 + $0x19] sm:$0xff] }
  0x10   : > { %v264_v6 = vld [vmem:[%s3913_s26 + $0xc1] sm:$0xff]  ;;  %v280_v7 = vpack.c.bf16 %v249_v5, %v248_v4  ;;  %v265_v8 = vld [vmem:[%s3913_s26 + $0xc9] sm:$0xff]  ;;  %v266_v13 = vld [vmem:[%s3913_s26 + $0xd9] sm:$0xff] }
  0x11   : > { %v251_v10 = vld [vmem:[%s3913_s26 + $0x21] sm:$0xff]  ;;  %v3921_v11 = vpack.c.bf16 %v265_v8, %v264_v6  ;;  %v252_v16 = vld [vmem:[%s3913_s26 + $0x31] sm:$0xff]  ;;  %v253_v19 = vld [vmem:[%s3913_s26 + $0x39] sm:$0xff]  ;;  %v1412_v8 = vsel %vm347_vm0, %v3952_v25, 0 }
  0x12   : > { %v3923_v12 = vpack.c.bf16 %v251_v10, %v250_v9  ;;  %v267_v14 = vld [vmem:[%s3913_s26 + $0xe1] sm:$0xff]  ;;  %3527 = vmatprep.mubr.msk.bf16.mxu0 %vm298_vm1, %v280_v7  ;;  %v268_v20 = vld [vmem:[%s3913_s26 + $0xf1] sm:$0xff]  ;;  %v269_v21 = vld [vmem:[%s3913_s26 + $0xf9] sm:$0xff]  ;;  %v3940_v22 = vpack.c.bf16 %v253_v19, %v252_v16  ;;  %v1118_v10 = vsel %vm347_vm0, %v3947_v24, 0 }
  0x13   : > { %v3930_v17 = vpack.c.bf16 %v267_v14, %v266_v13  ;;  %3543 = vmatprep.mubr.msk.bf16.mxu1 %vm298_vm1, %v3921_v11  ;;  %v3942_v23 = vpack.c.bf16 %v269_v21, %v268_v20  ;;  %v254_v26 = vld [vmem:[%s3913_s26 + $0x49] sm:$0xff]  ;;  %v255_v27 = vld [vmem:[%s3913_s26 + $0x51] sm:$0xff]  ;;  %v256_v30 = vld [vmem:[%s3913_s26 + $0x61] sm:$0xff] }
  0x14   : > { %3528 = vmatmul.mubr.msk.bf16.vlgmr.msra.gmra.mxu0 %vm298_vm1, %v3923_v12  ;;  %v270_v28 = vld [vmem:[%s3913_s26 + $0x109] sm:$0xff]  ;;  %v271_v29 = vld [vmem:[%s3913_s26 + $0x111] sm:$0xff]  ;;  %v272_v32 = vld [vmem:[%s3913_s26 + $0x121] sm:$0xff]  ;;  %v3970_v34 = vpack.c.bf16 %v255_v27, %v254_v26 }
  0x15   : > { %3544 = vmatmul.mubr.msk.bf16.vlgmr.msra.gmra.mxu1 %vm298_vm1, %v3930_v17  ;;  %3594 = vmatpush3.bf16.msra.mxu0 %v823_v15  ;;  %v257_v31 = vld [vmem:[%s3913_s26 + $0x69] sm:$0xff]  ;;  %v3974_v35 = vpack.c.bf16 %v271_v29, %v270_v28  ;;  %v258_v38 = vld [vmem:[%s3913_s26 + $0x79] sm:$0xff]  ;;  %v259_v39 = vld [vmem:[%s3913_s26 + $0x81] sm:$0xff] }
  0x16   : > { %3560 = vmatpush3.bf16.msra.mxu1 %v561_v18  ;;  %3531 = vmatprep.mubr.msk.bf16.mxu0 %vm298_vm1, %v3940_v22  ;;  %v273_v33 = vld [vmem:[%s3913_s26 + $0x129] sm:$0xff]  ;;  %v3976_v36 = vpack.c.bf16 %v257_v31, %v256_v30  ;;  %v274_v40 = vld [vmem:[%s3913_s26 + $0x139] sm:$0xff]  ;;  %v275_v41 = vld [vmem:[%s3913_s26 + $0x141] sm:$0xff]  ;;  %v3996_v46 = vpack.c.bf16 %v259_v39, %v258_v38 }
  0x17   : > { %3547 = vmatprep.mubr.msk.bf16.mxu1 %vm298_vm1, %v3942_v23  ;;  %3837 = vmatprep.subr.msk.bf16.mxu1 %vm347_vm0, %v3947_v24  ;;  %v3978_v37 = vpack.c.bf16 %v273_v33, %v272_v32  ;;  %v260_v42 = vld [vmem:[%s3913_s26 + $0x91] sm:$0xff]  ;;  %v261_v43 = vld [vmem:[%s3913_s26 + $0x99] sm:$0xff]  ;;  %v3998_v47 = vpack.c.bf16 %v275_v41, %v274_v40  ;;  %v262_v50 = vld [vmem:[%s3913_s26 + $0xa9] sm:$0xff] }
  0x18   : > { %3838 = vmatprep.subr.msk.bf16.mxu0 %vm347_vm0, %v3952_v25  ;;  %v276_v44 = vld [vmem:[%s3913_s26 + $0x151] sm:$0xff]  ;;  %v277_v45 = vld [vmem:[%s3913_s26 + $0x159] sm:$0xff]  ;;  %v4000_v48 = vpack.c.bf16 %v261_v43, %v260_v42  ;;  %v278_v52 = vld [vmem:[%s3913_s26 + $0x169] sm:$0xff] }
  0x19   : > { %v4002_v49 = vpack.c.bf16 %v277_v45, %v276_v44  ;;  %v263_v51 = vld [vmem:[%s3913_s26 + $0xb1] sm:$0xff]  ;;  %v724_v54 = vld [vmem:[%s3913_s26 + $0x2] sm:$0xff]  ;;  %v726_v62 = vld [vmem:[%s3913_s26 + $0x1a] sm:$0xff] }
  0x1a   : > { %v279_v53 = vld [vmem:[%s3913_s26 + $0x171] sm:$0xff]  ;;  %v199_v56 = vld [vmem:[%s3913_s26] sm:$0xff]  ;;  %v200_v57 = vld [vmem:[%s3913_s26 + $0x8] sm:$0xff]  ;;  %v4020_v58 = vpack.c.bf16 %v263_v51, %v262_v50 }
  0x1b   : > { %v725_v55 = vld [vmem:[%s3913_s26 + $0xa] sm:$0xff]  ;;  %v4022_v59 = vpack.c.bf16 %v279_v53, %v278_v52  ;;  %v231_v61 = vpack.c.bf16 %v200_v57, %v199_v56  ;;  %v727_v63 = vld [vmem:[%s3913_s26 + $0x22] sm:$0xff]  ;;  %v201_v0 = vld [vmem:[%s3913_s26 + $0x18] sm:$0xff] }
  0x1c   : > { %3532 = vmatmul.mubr.msk.bf16.gmra.mxu0 %vm298_vm1, %v3970_v34  ;;  %v756_v60 = vpack.c.bf16 %v725_v55, %v724_v54  ;;  %v202_v1 = vld [vmem:[%s3913_s26 + $0x20] sm:$0xff]  ;;  %v203_v2 = vld [vmem:[%s3913_s26 + $0x30] sm:$0xff]  ;;  %v204_v3 = vld [vmem:[%s3913_s26 + $0x38] sm:$0xff]  ;;  %v4036_v4 = vpack.c.bf16 %v727_v63, %v726_v62 }
  0x1d   : > { %3548 = vmatmul.mubr.msk.bf16.gmra.mxu1 %vm298_vm1, %v3974_v35  ;;  %3535 = vmatprep.mubr.msk.bf16.mxu0 %vm298_vm1, %v3976_v36  ;;  %v728_v5 = vld [vmem:[%s3913_s26 + $0x32] sm:$0xff]  ;;  %v729_v6 = vld [vmem:[%s3913_s26 + $0x3a] sm:$0xff]  ;;  %v4040_v7 = vpack.c.bf16 %v202_v1, %v201_v0  ;;  %v4044_v9 = vpack.c.bf16 %v204_v3, %v203_v2  ;;  %v4055_v14 = vld [vmem:[%s4956_s1 + $0xa] sm:$0x3] }
  0x1e   : > { %3551 = vmatprep.mubr.msk.bf16.mxu1 %vm298_vm1, %v3978_v37  ;;  %v4048_v13 = vpack.c.bf16 %v729_v6, %v728_v5  ;;  %v4060_v15 = vld [vmem:[%s4956_s1 + $0xc] sm:$0x3]  ;;  %v731_v19 = vld [vmem:[%s3913_s26 + $0x52] sm:$0xff]  ;;  %v732_v21 = vld [vmem:[%s3913_s26 + $0x62] sm:$0xff] }
  0x1f   : > { %v205_v16 = vld [vmem:[%s3913_s26 + $0x48] sm:$0xff]  ;;  %v206_v20 = vld [vmem:[%s3913_s26 + $0x50] sm:$0xff]  ;;  %v207_v25 = vld [vmem:[%s3913_s26 + $0x60] sm:$0xff] }
  0x20   : > { %v730_v18 = vld [vmem:[%s3913_s26 + $0x4a] sm:$0xff]  ;;  %v4082_v28 = vpack.c.bf16 %v206_v20, %v205_v16  ;;  %v209_v31 = vld [vmem:[%s3913_s26 + $0x78] sm:$0xff]  ;;  %v735_v33 = vld [vmem:[%s3913_s26 + $0x82] sm:$0xff] }
  0x21   : > { %v733_v24 = vld [vmem:[%s3913_s26 + $0x6a] sm:$0xff]  ;;  %v4078_v27 = vpack.c.bf16 %v731_v19, %v730_v18  ;;  %v734_v32 = vld [vmem:[%s3913_s26 + $0x7a] sm:$0xff]  ;;  %v736_v39 = vld [vmem:[%s3913_s26 + $0x92] sm:$0xff] }
  0x22   : > { %v208_v26 = vld [vmem:[%s3913_s26 + $0x68] sm:$0xff]  ;;  %v4084_v29 = vpack.c.bf16 %v733_v24, %v732_v21  ;;  %v210_v38 = vld [vmem:[%s3913_s26 + $0x80] sm:$0xff]  ;;  %v211_v41 = vld [vmem:[%s3913_s26 + $0x90] sm:$0xff]  ;;  %v4104_v43 = vpack.c.bf16 %v735_v33, %v734_v32 }
  0x23   : > { %v4086_v30 = vpack.c.bf16 %v208_v26, %v207_v25  ;;  %v737_v40 = vld [vmem:[%s3913_s26 + $0x9a] sm:$0xff]  ;;  %v4106_v44 = vpack.c.bf16 %v210_v38, %v209_v31  ;;  %v213_v51 = vld [vmem:[%s3913_s26 + $0xa8] sm:$0xff]  ;;  %v739_v53 = vld [vmem:[%s3913_s26 + $0xb2] sm:$0xff] }
  0x24   : > { %3536 = vmatmul.mubr.msk.bf16.gmra.mxu0 %vm298_vm1, %v3996_v46  ;;  %v212_v42 = vld [vmem:[%s3913_s26 + $0x98] sm:$0xff]  ;;  %v4108_v45 = vpack.c.bf16 %v737_v40, %v736_v39  ;;  %v738_v52 = vld [vmem:[%s3913_s26 + $0xaa] sm:$0xff]  ;;  %v740_v55 = vld [vmem:[%s3913_s26 + $0xc2] sm:$0xff] }
  0x25   : > { %3552 = vmatmul.mubr.msk.bf16.gmra.mxu1 %vm298_vm1, %v3998_v47  ;;  %3539 = vmatprep.mubr.msk.bf16.mxu0 %vm298_vm1, %v4000_v48  ;;  %v4110_v50 = vpack.c.bf16 %v212_v42, %v211_v41  ;;  %v214_v54 = vld [vmem:[%s3913_s26 + $0xb0] sm:$0xff]  ;;  %v215_v57 = vld [vmem:[%s3913_s26 + $0xc0] sm:$0xff]  ;;  %v217_v1 = vld [vmem:[%s3913_s26 + $0xd8] sm:$0xff] }
  0x26   : > { %3555 = vmatprep.mubr.msk.bf16.mxu1 %vm298_vm1, %v4002_v49  ;;  %v741_v56 = vld [vmem:[%s3913_s26 + $0xca] sm:$0xff]  ;;  %v4130_v62 = vpack.c.bf16 %v214_v54, %v213_v51  ;;  %v742_v2 = vld [vmem:[%s3913_s26 + $0xda] sm:$0xff]  ;;  %v743_v3 = vld [vmem:[%s3913_s26 + $0xe2] sm:$0xff] }
  0x27   : > { %v4132_v63 = vpack.c.bf16 %v741_v56, %v740_v55  ;;  %v218_v5 = vld [vmem:[%s3913_s26 + $0xe0] sm:$0xff]  ;;  %v744_v6 = vld [vmem:[%s3913_s26 + $0xf2] sm:$0xff]  ;;  %v4152_v18 = vpack.c.bf16 %v743_v3, %v742_v2  ;;  %v221_v24 = vld [vmem:[%s3913_s26 + $0x108] sm:$0xff] }
  0x28   : > { %v220_v16 = vld [vmem:[%s3913_s26 + $0xf8] sm:$0xff]  ;;  %v4154_v19 = vpack.c.bf16 %v218_v5, %v217_v1  ;;  %v746_v25 = vld [vmem:[%s3913_s26 + $0x10a] sm:$0xff]  ;;  %v748_v32 = vld [vmem:[%s3913_s26 + $0x122] sm:$0xff] }
  0x29   : > { %v747_v26 = vld [vmem:[%s3913_s26 + $0x112] sm:$0xff]  ;;  %v749_v33 = vld [vmem:[%s3913_s26 + $0x12a] sm:$0xff]  ;;  %v223_v38 = vld [vmem:[%s3913_s26 + $0x120] sm:$0xff] }
  0x2a   : > { %v222_v31 = vld [vmem:[%s3913_s26 + $0x110] sm:$0xff]  ;;  %v224_v39 = vld [vmem:[%s3913_s26 + $0x128] sm:$0xff]  ;;  %v4176_v40 = vpack.c.bf16 %v747_v26, %v746_v25  ;;  %v4180_v42 = vpack.c.bf16 %v749_v33, %v748_v32  ;;  %v226_v55 = vld [vmem:[%s3913_s26 + $0x140] sm:$0xff]  ;;  %v1706_v32 = vsel %vm347_vm0, %v4055_v14, 0 }
  0x2b   : > { %v4178_v41 = vpack.c.bf16 %v222_v31, %v221_v24  ;;  %v4182_v51 = vpack.c.bf16 %v224_v39, %v223_v38  ;;  %v751_v54 = vld [vmem:[%s3913_s26 + $0x142] sm:$0xff]  ;;  %v752_v56 = vld [vmem:[%s3913_s26 + $0x152] sm:$0xff]  ;;  %v2001_v31 = vsel %vm347_vm0, %v4060_v15, 0  ;;  %v3301_v33 = vld [vmem:[%s4956_s1 + $0xe] sm:$0x3] }
  0x2c   : > { %3540 = vmatmul.mubr.msk.bf16.gmra.mxu0 %vm298_vm1, %v4020_v58  ;;  %v228_v1 = vld [vmem:[%s3913_s26 + $0x158] sm:$0xff]  ;;  %v230_v24 = vld [vmem:[%s3913_s26 + $0x170] sm:$0xff] }
  0x2d   : > { %3556 = vmatmul.mubr.msk.bf16.gmra.mxu1 %vm298_vm1, %v4022_v59  ;;  %3595 = vmatprep.mubr.msk.bf16.mxu0 %vm298_vm1, %v756_v60  ;;  %v216_v60 = vld [vmem:[%s3913_s26 + $0xc8] sm:$0xff] }
  0x2e   : > { %3561 = vmatprep.mubr.msk.bf16.mxu1 %vm298_vm1, %v231_v61  ;;  %v4128_v61 = vpack.c.bf16 %v739_v53, %v738_v52  ;;  %v4134_v0 = vpack.c.bf16 %v216_v60, %v215_v57  ;;  %v225_v52 = vld [vmem:[%s3913_s26 + $0x138] sm:$0xff]  ;;  %v227_v60 = vld [vmem:[%s3913_s26 + $0x150] sm:$0xff] }
  0x2f   : > { %v750_v53 = vld [vmem:[%s3913_s26 + $0x13a] sm:$0xff]  ;;  %v4202_v3 = vpack.c.bf16 %v226_v55, %v225_v52  ;;  %v3202_v55 = vld [vmem:[%s3913_s26 + $0x18a] sm:$0xff] }
  0x30   : > { %v753_v57 = vld [vmem:[%s3913_s26 + $0x15a] sm:$0xff]  ;;  %v4200_v2 = vpack.c.bf16 %v751_v54, %v750_v53  ;;  %v3201_v54 = vld [vmem:[%s3913_s26 + $0x182] sm:$0xff] }
  0x31   : > { %v4204_v5 = vpack.c.bf16 %v753_v57, %v752_v56  ;;  %v3251_v52 = vld [vmem:[%s3913_s26 + $0x1a0] sm:$0xff] }
  0x34   : > { %3596 = vmatmul.mubr.msk.bf16.vlgmr.msra.gmra.mxu0 %vm298_vm1, %v4036_v4 }
  0x35   : > { %3562 = vmatmul.mubr.msk.bf16.vlgmr.msra.gmra.mxu1 %vm298_vm1, %v4040_v7  ;;  %3662 = vmatpush3.bf16.msra.mxu0 %v1412_v8  ;;  %v745_v8 = vld [vmem:[%s3913_s26 + $0xfa] sm:$0xff] }
  0x36   : > { %3628 = vmatpush3.bf16.msra.mxu1 %v1118_v10  ;;  %3565 = vmatprep.mubr.msk.bf16.mxu1 %vm298_vm1, %v4044_v9  ;;  %v219_v10 = vld [vmem:[%s3913_s26 + $0xf0] sm:$0xff]  ;;  %v4156_v20 = vpack.c.bf16 %v745_v8, %v744_v6  ;;  %v4206_v6 = vpack.c.bf16 %v228_v1, %v227_v60 }
  0x37   : > { %3599 = vmatprep.mubr.msk.bf16.mxu0 %vm298_vm1, %v4048_v13  ;;  %3839 = vmatprep.subr.msk.bf16.mxu1 %vm347_vm0, %v4055_v14  ;;  %v4158_v21 = vpack.c.bf16 %v220_v16, %v219_v10  ;;  %v754_v8 = vld [vmem:[%s3913_s26 + $0x16a] sm:$0xff]  ;;  %v755_v10 = vld [vmem:[%s3913_s26 + $0x172] sm:$0xff] }
  0x38   : > { %3840 = vmatprep.subr.msk.bf16.mxu0 %vm347_vm0, %v4060_v15  ;;  %v229_v16 = vld [vmem:[%s3913_s26 + $0x168] sm:$0xff]  ;;  %v4220_v25 = vpack.c.bf16 %v755_v10, %v754_v8 }
  0x39   : > { %v4222_v26 = vpack.c.bf16 %v230_v24, %v229_v16 }
  0x3c   : > { %3600 = vmatmul.mubr.msk.bf16.gmra.mxu0 %vm298_vm1, %v4078_v27 }
  0x3d   : > { %3566 = vmatmul.mubr.msk.bf16.gmra.mxu1 %vm298_vm1, %v4082_v28  ;;  %3603 = vmatprep.mubr.msk.bf16.mxu0 %vm298_vm1, %v4084_v29 }
  0x3e   : > { %3569 = vmatprep.mubr.msk.bf16.mxu1 %vm298_vm1, %v4086_v30 }
  0x44   : > { %3604 = vmatmul.mubr.msk.bf16.gmra.mxu0 %vm298_vm1, %v4104_v43 }
  0x45   : > { %3570 = vmatmul.mubr.msk.bf16.gmra.mxu1 %vm298_vm1, %v4106_v44  ;;  %3607 = vmatprep.mubr.msk.bf16.mxu0 %vm298_vm1, %v4108_v45 }
  0x46   : > { %3573 = vmatprep.mubr.msk.bf16.mxu1 %vm298_vm1, %v4110_v50 }
  0x4c   : > { %3608 = vmatmul.mubr.msk.bf16.gmra.mxu0 %vm298_vm1, %v4128_v61 }
  0x4d   : > { %3574 = vmatmul.mubr.msk.bf16.gmra.mxu1 %vm298_vm1, %v4130_v62  ;;  %3611 = vmatprep.mubr.msk.bf16.mxu0 %vm298_vm1, %v4132_v63 }
  0x4e   : > { %3577 = vmatprep.mubr.msk.bf16.mxu1 %vm298_vm1, %v4134_v0 }
  0x54   : > { %3612 = vmatmul.mubr.msk.bf16.gmra.mxu0 %vm298_vm1, %v4152_v18 }
  0x55   : > { %3578 = vmatmul.mubr.msk.bf16.gmra.mxu1 %vm298_vm1, %v4154_v19  ;;  %3615 = vmatprep.mubr.msk.bf16.mxu0 %vm298_vm1, %v4156_v20 }
  0x56   : > { %3581 = vmatprep.mubr.msk.bf16.mxu1 %vm298_vm1, %v4158_v21 }
  0x5c   : > { %3616 = vmatmul.mubr.msk.bf16.gmra.mxu0 %vm298_vm1, %v4176_v40 }
  0x5d   : > { %3582 = vmatmul.mubr.msk.bf16.gmra.mxu1 %vm298_vm1, %v4178_v41  ;;  %3619 = vmatprep.mubr.msk.bf16.mxu0 %vm298_vm1, %v4180_v42 }
  0x5e   : > { %3585 = vmatprep.mubr.msk.bf16.mxu1 %vm298_vm1, %v4182_v51 }
  0x64   : > { %3620 = vmatmul.mubr.msk.bf16.gmra.mxu0 %vm298_vm1, %v4200_v2 }
  0x65   : > { %3586 = vmatmul.mubr.msk.bf16.gmra.mxu1 %vm298_vm1, %v4202_v3  ;;  %3623 = vmatprep.mubr.msk.bf16.mxu0 %vm298_vm1, %v4204_v5 }
  0x66   : > { %3589 = vmatprep.mubr.msk.bf16.mxu1 %vm298_vm1, %v4206_v6 }
  0x6c   : > { %3624 = vmatmul.mubr.msk.bf16.gmra.mxu0 %vm298_vm1, %v4220_v25 }
  0x6d   : > { %3590 = vmatmul.mubr.msk.bf16.gmra.mxu1 %vm298_vm1, %v4222_v26  ;;  %3663 = vmatprep.mubr.msk.bf16.mxu0 %vm298_vm1, %v3923_v12  ;;  %v3350_v12 = vld [vmem:[%s4956_s1 + $0x10] sm:$0x3] }
  0x6e   : > { %3629 = vmatprep.mubr.msk.bf16.mxu1 %vm298_vm1, %v4040_v7 }
  0x74   : > { %3664 = vmatmul.mubr.msk.bf16.vlgmr.msra.gmra.mxu0 %vm298_vm1, %v3940_v22 }
  0x75   : > { %3630 = vmatmul.mubr.msk.bf16.vlgmr.msra.gmra.mxu1 %vm298_vm1, %v4044_v9  ;;  %3730 = vmatpush3.bf16.msra.mxu0 %v2001_v31 }
  0x76   : > { %3696 = vmatpush3.bf16.msra.mxu1 %v1706_v32  ;;  %3633 = vmatprep.mubr.msk.bf16.mxu1 %vm298_vm1, %v4082_v28 }
  0x77   : > { %3667 = vmatprep.mubr.msk.bf16.mxu0 %vm298_vm1, %v3970_v34  ;;  %3841 = vmatprep.subr.msk.bf16.mxu1 %vm347_vm0, %v3301_v33 }
  0x78   : > { %3842 = vmatprep.subr.msk.bf16.mxu0 %vm347_vm0, %v3350_v12 }
  0x7c   : > { %3668 = vmatmul.mubr.msk.bf16.gmra.mxu0 %vm298_vm1, %v3976_v36 }
  0x7d   : > { %3634 = vmatmul.mubr.msk.bf16.gmra.mxu1 %vm298_vm1, %v4086_v30  ;;  %3671 = vmatprep.mubr.msk.bf16.mxu0 %vm298_vm1, %v3996_v46 }
  0x7e   : > { %3637 = vmatprep.mubr.msk.bf16.mxu1 %vm298_vm1, %v4106_v44 }
  0x84   : > { %3672 = vmatmul.mubr.msk.bf16.gmra.mxu0 %vm298_vm1, %v4000_v48  ;;  %v2589_v48 = vsel %vm347_vm0, %v3350_v12, 0 }
  0x85   : > { %3638 = vmatmul.mubr.msk.bf16.gmra.mxu1 %vm298_vm1, %v4110_v50  ;;  %3675 = vmatprep.mubr.msk.bf16.mxu0 %vm298_vm1, %v4020_v58 }
  0x86   : > { %3641 = vmatprep.mubr.msk.bf16.mxu1 %vm298_vm1, %v4130_v62 }
  0x8c   : > { %3676 = vmatmul.mubr.msk.bf16.gmra.mxu0 %vm298_vm1, %v3921_v11  ;;  %v3152_v11 = vld [vmem:[%s3913_s26 + $0x181] sm:$0xff] }
  0x8d   : > { %3642 = vmatmul.mubr.msk.bf16.gmra.mxu1 %vm298_vm1, %v4134_v0  ;;  %3679 = vmatprep.mubr.msk.bf16.mxu0 %vm298_vm1, %v3930_v17  ;;  %v3153_v17 = vld [vmem:[%s3913_s26 + $0x189] sm:$0xff] }
  0x8e   : > { %3645 = vmatprep.mubr.msk.bf16.mxu1 %vm298_vm1, %v4154_v19 }
  0x94   : > { %3680 = vmatmul.mubr.msk.bf16.gmra.mxu0 %vm298_vm1, %v3942_v23  ;;  %v3103_v23 = vld [vmem:[%s3913_s26 + $0x180] sm:$0xff] }
  0x95   : > { %3646 = vmatmul.mubr.msk.bf16.gmra.mxu1 %vm298_vm1, %v4158_v21  ;;  %3683 = vmatprep.mubr.msk.bf16.mxu0 %vm298_vm1, %v3974_v35  ;;  %v3104_v35 = vld [vmem:[%s3913_s26 + $0x188] sm:$0xff] }
  0x96   : > { %3649 = vmatprep.mubr.msk.bf16.mxu1 %vm298_vm1, %v4178_v41 }
  0x9c   : > { %3684 = vmatmul.mubr.msk.bf16.gmra.mxu0 %vm298_vm1, %v3978_v37  ;;  %v4304_v37 = vpack.c.bf16 %v3153_v17, %v3152_v11  ;;  %v3277_v17 = vld [vmem:[%s3913_s26 + $0x91] sm:$0xff] }
  0x9d   : > { %3650 = vmatmul.mubr.msk.bf16.gmra.mxu1 %vm298_vm1, %v4182_v51  ;;  %3687 = vmatprep.mubr.msk.bf16.mxu0 %vm298_vm1, %v3998_v47  ;;  %v1066_v47 = vpack.c.bf16 %v3104_v35, %v3103_v23  ;;  %v3278_v23 = vld [vmem:[%s3913_s26 + $0x99] sm:$0xff] }
  0x9e   : > { %3653 = vmatprep.mubr.msk.bf16.mxu1 %vm298_vm1, %v4202_v3 }
  0xa4   : > { %3688 = vmatmul.mubr.msk.bf16.gmra.mxu0 %vm298_vm1, %v4002_v49  ;;  %v2295_v49 = vsel %vm347_vm0, %v3301_v33, 0 }
  0xa5   : > { %3654 = vmatmul.mubr.msk.bf16.gmra.mxu1 %vm298_vm1, %v4206_v6  ;;  %3691 = vmatprep.mubr.msk.bf16.mxu0 %vm298_vm1, %v4022_v59 }
  0xa6   : > { %3657 = vmatprep.mubr.msk.bf16.mxu1 %vm298_vm1, %v4222_v26 }
  0xac   : > { %3692 = vmatmul.mubr.msk.bf16.gmra.mxu0 %vm298_vm1, %v4304_v37 }
  0xad   : > { %3658 = vmatmul.mubr.msk.bf16.gmra.mxu1 %vm298_vm1, %v1066_v47  ;;  %3731 = vmatprep.mubr.msk.bf16.mxu0 %vm298_vm1, %v4044_v9 }
  0xae   : > { %3697 = vmatprep.mubr.msk.bf16.mxu1 %vm298_vm1, %v4036_v4 }
  0xb4   : > { %3732 = vmatmul.mubr.msk.bf16.vlgmr.msra.gmra.mxu0 %vm298_vm1, %v4082_v28 }
  0xb5   : > { %3698 = vmatmul.mubr.msk.bf16.vlgmr.msra.gmra.mxu1 %vm298_vm1, %v4048_v13  ;;  %3798 = vmatpush3.bf16.msra.mxu0 %v2589_v48 }
  0xb6   : > { %3764 = vmatpush3.bf16.msra.mxu1 %v2295_v49  ;;  %3701 = vmatprep.mubr.msk.bf16.mxu1 %vm298_vm1, %v4078_v27 }
  0xb7   : > { %3735 = vmatprep.mubr.msk.bf16.mxu0 %vm298_vm1, %v4086_v30 }
  0xbc   : > { %3736 = vmatmul.mubr.msk.bf16.gmra.mxu0 %vm298_vm1, %v4106_v44 }
  0xbd   : > { %3702 = vmatmul.mubr.msk.bf16.gmra.mxu1 %vm298_vm1, %v4084_v29  ;;  %3739 = vmatprep.mubr.msk.bf16.mxu0 %vm298_vm1, %v4110_v50 }
  0xbe   : > { %3705 = vmatprep.mubr.msk.bf16.mxu1 %vm298_vm1, %v4104_v43 }
  0xc4   : > { %3740 = vmatmul.mubr.msk.bf16.gmra.mxu0 %vm298_vm1, %v4130_v62 }
  0xc5   : > { %3706 = vmatmul.mubr.msk.bf16.gmra.mxu1 %vm298_vm1, %v4108_v45  ;;  %3743 = vmatprep.mubr.msk.bf16.mxu0 %vm298_vm1, %v4134_v0 }
  0xc6   : > { %3709 = vmatprep.mubr.msk.bf16.mxu1 %vm298_vm1, %v4128_v61 }
  0xcc   : > { %3744 = vmatmul.mubr.msk.bf16.gmra.mxu0 %vm298_vm1, %v4154_v19 }
  0xcd   : > { %3710 = vmatmul.mubr.msk.bf16.gmra.mxu1 %vm298_vm1, %v4132_v63  ;;  %3747 = vmatprep.mubr.msk.bf16.mxu0 %vm298_vm1, %v4158_v21 }
  0xce   : > { %3713 = vmatprep.mubr.msk.bf16.mxu1 %vm298_vm1, %v4152_v18 }
  0xd4   : > { %v3529_v58 = vpop.f32.mrf.mxu0  ;;  %3748 = vmatmul.mubr.msk.bf16.gmra.mxu0 %vm298_vm1, %v4178_v41 }
  0xd5   : > { %v4349_v59 = vpop.f32.mrf.mxu1  ;;  %3714 = vmatmul.mubr.msk.bf16.gmra.mxu1 %vm298_vm1, %v4156_v20  ;;  %3751 = vmatprep.mubr.msk.bf16.mxu0 %vm298_vm1, %v4182_v51  ;;  %v3250_v51 = vld [vmem:[%s3913_s26 + $0x198] sm:$0xff] }
  0xd6   : > { %v385_v4 = vpop.f32.mrf.mxu0  ;;  %3717 = vmatprep.mubr.msk.bf16.mxu1 %vm298_vm1, %v4176_v40  ;;  %v1949_v60 = vpack.c.bf16 %v3251_v52, %v3250_v51 }
  0xd7   : > { %v4357_v7 = vpop.f32.mrf.mxu1 }
  0xd8   : > { %v3530_v9 = vpop.f32.mrf.mxu0 }
  0xd9   : > { %v4359_v14 = vpop.f32.mrf.mxu1 }
  0xda   : > { %v4361_v15 = vpop.f32.mrf.mxu0 }
  0xdb   : > { %v4363_v28 = vpop.f32.mrf.mxu1 }
  0xdc   : > { %v4365_v30 = vpop.f32.mrf.mxu0  ;;  %3752 = vmatmul.mubr.msk.bf16.gmra.mxu0 %vm298_vm1, %v4202_v3  ;;  %v4412_v3 = vpack.c.bf16 %v3202_v55, %v3201_v54 }
  0xdd   : > { %v4369_v44 = vpop.f32.mrf.mxu1  ;;  %3718 = vmatmul.mubr.msk.bf16.gmra.mxu1 %vm298_vm1, %v4180_v42  ;;  %3755 = vmatprep.mubr.msk.bf16.mxu0 %vm298_vm1, %v4206_v6 }
  0xde   : > { %v4375_v50 = vpop.f32.mrf.mxu0  ;;  %3721 = vmatprep.mubr.msk.bf16.mxu1 %vm298_vm1, %v4200_v2 }
  0xdf   : > { %v4379_v62 = vpop.f32.mrf.mxu1 }
  0xe0   : > { %v4381_v0 = vpop.f32.mrf.mxu0 }
  0xe1   : > { %v4383_v19 = vpop.f32.mrf.mxu1 }
  0xe2   : > { %v4385_v21 = vpop.f32.mrf.mxu0 }
  0xe3   : > { %v4387_v38 = vpop.f32.mrf.mxu1 }
  0xe4   : > { %v4389_v39 = vpop.f32.mrf.mxu0  ;;  %3756 = vmatmul.mubr.msk.bf16.gmra.mxu0 %vm298_vm1, %v4222_v26 }
  0xe5   : > { %v4393_v41 = vpop.f32.mrf.mxu1  ;;  %3722 = vmatmul.mubr.msk.bf16.gmra.mxu1 %vm298_vm1, %v4204_v5  ;;  %3759 = vmatprep.mubr.msk.bf16.mxu0 %vm298_vm1, %v1066_v47 }
  0xe6   : > { %v4400_v53 = vpop.f32.mrf.mxu0  ;;  %3725 = vmatprep.mubr.msk.bf16.mxu1 %vm298_vm1, %v4220_v25 }
  0xe7   : > { %v4406_v56 = vpop.f32.mrf.mxu1 }
  0xe8   : > { %v4408_v57 = vpop.f32.mrf.mxu0 }
  0xe9   : > { %v4410_v1 = vpop.f32.mrf.mxu1 }
  0xea   : > { %v4414_v5 = vpop.f32.mrf.mxu0 }
  0xeb   : > { %v4416_v6 = vpop.f32.mrf.mxu1 }
  0xec   : > { %v4418_v8 = vpop.f32.mrf.mxu0  ;;  %3760 = vmatmul.mubr.msk.bf16.gmra.mxu0 %vm298_vm1, %v1949_v60 }
  0xed   : > { %v4421_v10 = vpop.f32.mrf.mxu1  ;;  %3726 = vmatmul.mubr.msk.bf16.gmra.mxu1 %vm298_vm1, %v4412_v3  ;;  %3799 = vmatprep.mubr.msk.bf16.mxu0 %vm298_vm1, %v4048_v13 }
  0xee   : > { %v4427_v16 = vpop.f32.mrf.mxu0  ;;  %3765 = vmatprep.mubr.msk.bf16.mxu1 %vm298_vm1, %v3940_v22 }
  0xef   : > { %v4431_v24 = vpop.f32.mrf.mxu1 }
  0xf0   : > { %v4433_v25 = vpop.f32.mrf.mxu0 }
  0xf1   : > { %v4435_v26 = vpop.f32.mrf.mxu1 }
  0xf2   : > { %v4437_v31 = vpop.f32.mrf.mxu0 }
  0xf3   : > { %v4439_v32 = vpop.f32.mrf.mxu1 }
  0xf4   : > { %v3597_v33 = vpop.f32.mrf.mxu0  ;;  %3800 = vmatmul.mubr.msk.bf16.vlgmr.msra.gmra.mxu0 %vm298_vm1, %v4078_v27 }
  0xf5   : > { %v3563_v13 = vpop.f32.mrf.mxu1  ;;  %3766 = vmatmul.mubr.msk.bf16.vlgmr.msra.gmra.mxu1 %vm298_vm1, %v3970_v34  ;;  %3803 = vmatprep.mubr.msk.bf16.mxu0 %vm298_vm1, %v4084_v29  ;;  %v2232_v29 = vpack.c.bf16 %v3278_v23, %v3277_v17 }
  0xf6   : > { %v606_v22 = vadd.f32 %v3563_v13, %v3529_v58  ;;  %v859_v12 = vpop.f32.mrf.mxu0  ;;  %3769 = vmatprep.mubr.msk.bf16.mxu1 %vm298_vm1, %v3976_v36 }
  0xf7   : > { %v597_v11 = vpop.f32.mrf.mxu1 }
  0xf8   : > { %v4451_v35 = vadd.f32 %v3597_v33, %v606_v22  ;;  %v598_v47 = vadd.f32 %v597_v11, %v385_v4  ;;  %v3598_v48 = vpop.f32.mrf.mxu0  ;;  %v3279_v33 = vld [vmem:[%s3913_s26 + $0xa9] sm:$0xff]  ;;  %v3281_v22 = vld [vmem:[%s3913_s26 + $0xc1] sm:$0xff] }
  0xf9   : > { %v3564_v27 = vpop.f32.mrf.mxu1 }
  0xfa   : > { %v4453_v49 = vadd.f32 %v859_v12, %v598_v47  ;;  %v609_v34 = vadd.f32 %v3564_v27, %v3530_v9  ;;  %v862_v51 = vpop.f32.mrf.mxu0  ;;  %v3282_v12 = vld [vmem:[%s3913_s26 + $0xc9] sm:$0xff] }
  0xfb   : > { %v600_v58 = vpop.f32.mrf.mxu1 }
  0xfc   : > { %v4455_v52 = vadd.f32 %v3598_v48, %v609_v34  ;;  %v601_v36 = vadd.f32 %v600_v58, %v4361_v15  ;;  %v3601_v54 = vpop.f32.mrf.mxu0  ;;  %3804 = vmatmul.mubr.msk.bf16.gmra.mxu0 %vm298_vm1, %v4104_v43  ;;  %v3280_v15 = vld [vmem:[%s3913_s26 + $0xb1] sm:$0xff]  ;;  %v2234_v48 = vpack.c.bf16 %v3282_v12, %v3281_v22 }
  0xfd   : > { %v3567_v4 = vpop.f32.mrf.mxu1  ;;  %3770 = vmatmul.mubr.msk.bf16.gmra.mxu1 %vm298_vm1, %v3996_v46  ;;  %3807 = vmatprep.mubr.msk.bf16.mxu0 %vm298_vm1, %v4108_v45  ;;  %v2233_v23 = vpack.c.bf16 %v3280_v15, %v3279_v33 }
  0xfe   : > { %v4464_v9 = vadd.f32 %v862_v51, %v601_v36  ;;  %v622_v55 = vadd.f32 %v3567_v4, %v4365_v30  ;;  %v875_v60 = vpop.f32.mrf.mxu0  ;;  %3773 = vmatprep.mubr.msk.bf16.mxu1 %vm298_vm1, %v2232_v29  ;;  %v3284_v4 = vld [vmem:[%s3913_s26 + $0xe1] sm:$0xff] }
  0xff   : > { %v613_v13 = vpop.f32.mrf.mxu1 }
 0x100   : > { %v4472_v43 = vadd.f32 %v3601_v54, %v622_v55  ;;  %v614_v11 = vadd.f32 %v613_v13, %v4375_v50  ;;  %v3602_v46 = vpop.f32.mrf.mxu0  ;;  %v3283_v54 = vld [vmem:[%s3913_s26 + $0xd9] sm:$0xff]  ;;  %v3285_v55 = vld [vmem:[%s3913_s26 + $0xf1] sm:$0xff] }
 0x101   : > { %v3568_v17 = vpop.f32.mrf.mxu1  ;;  %v2235_v22 = vpack.c.bf16 %v3284_v4, %v3283_v54 }
 0x102   : > { %v4475_v45 = vadd.f32 %v875_v60, %v614_v11  ;;  %v625_v30 = vadd.f32 %v3568_v17, %v4381_v0  ;;  %v878_v47 = vpop.f32.mrf.mxu0  ;;  %v3286_v60 = vld [vmem:[%s3913_s26 + $0xf9] sm:$0xff] }
 0x103   : > { %v616_v27 = vpop.f32.mrf.mxu1  ;;  %v2236_v11 = vpack.c.bf16 %v3286_v60, %v3285_v55 }
 0x104   : > { %v4478_v34 = vadd.f32 %v3602_v46, %v625_v30  ;;  %v617_v51 = vadd.f32 %v616_v27, %v4385_v21  ;;  %v3605_v29 = vpop.f32.mrf.mxu0  ;;  %3808 = vmatmul.mubr.msk.bf16.gmra.mxu0 %vm298_vm1, %v4128_v61  ;;  %v3287_v27 = vld [vmem:[%s3913_s26 + $0x109] sm:$0xff] }
 0x105   : > { %v3571_v50 = vpop.f32.mrf.mxu1  ;;  %3774 = vmatmul.mubr.msk.bf16.gmra.mxu1 %vm298_vm1, %v2233_v23  ;;  %3811 = vmatprep.mubr.msk.bf16.mxu0 %vm298_vm1, %v4132_v63 }
 0x106   : > { %v4486_v0 = vadd.f32 %v878_v47, %v617_v51  ;;  %v638_v58 = vadd.f32 %v3571_v50, %v4389_v39  ;;  %v891_v36 = vpop.f32.mrf.mxu0  ;;  %3777 = vmatprep.mubr.msk.bf16.mxu1 %vm298_vm1, %v2234_v48  ;;  %v3288_v51 = vld [vmem:[%s3913_s26 + $0x111] sm:$0xff]  ;;  %v3290_v50 = vld [vmem:[%s3913_s26 + $0x129] sm:$0xff] }
 0x107   : > { %v629_v21 = vpop.f32.mrf.mxu1 }
 0x108   : > { %v4494_v33 = vadd.f32 %v3605_v29, %v638_v58  ;;  %v630_v61 = vadd.f32 %v629_v21, %v4400_v53  ;;  %v3606_v15 = vpop.f32.mrf.mxu0  ;;  %v3289_v29 = vld [vmem:[%s3913_s26 + $0x121] sm:$0xff] }
 0x109   : > { %v3572_v13 = vpop.f32.mrf.mxu1  ;;  %v2238_v55 = vpack.c.bf16 %v3290_v50, %v3289_v29 }
 0x10a   : > { %v4497_v63 = vadd.f32 %v891_v36, %v630_v61  ;;  %v641_v39 = vadd.f32 %v3572_v13, %v4408_v57  ;;  %v894_v12 = vpop.f32.mrf.mxu0 }
 0x10b   : > { %v632_v46 = vpop.f32.mrf.mxu1 }
 0x10c   : > { %v4500_v17 = vadd.f32 %v3606_v15, %v641_v39  ;;  %v633_v23 = vadd.f32 %v632_v46, %v4414_v5  ;;  %v3609_v30 = vpop.f32.mrf.mxu0  ;;  %3812 = vmatmul.mubr.msk.bf16.gmra.mxu0 %vm298_vm1, %v4152_v18  ;;  %v3343_v46 = vld [vmem:[%s3913_s26 + $0x15a] sm:$0xff] }
 0x10d   : > { %v3575_v53 = vpop.f32.mrf.mxu1  ;;  %3778 = vmatmul.mubr.msk.bf16.gmra.mxu1 %vm298_vm1, %v2235_v22  ;;  %3815 = vmatprep.mubr.msk.bf16.mxu0 %vm298_vm1, %v4156_v20  ;;  %v2237_v20 = vpack.c.bf16 %v3288_v51, %v3287_v27 }
 0x10e   : > { %v4508_v57 = vadd.f32 %v894_v12, %v633_v23  ;;  %v654_v47 = vadd.f32 %v3575_v53, %v4418_v8  ;;  %v907_v48 = vpop.f32.mrf.mxu0  ;;  %3781 = vmatprep.mubr.msk.bf16.mxu1 %vm298_vm1, %v2236_v11  ;;  %v3342_v11 = vld [vmem:[%s3913_s26 + $0x152] sm:$0xff] }
 0x10f   : > { %v645_v5 = vpop.f32.mrf.mxu1  ;;  %v2534_v51 = vpack.c.bf16 %v3343_v46, %v3342_v11 }
 0x110   : > { %v4516_v58 = vadd.f32 %v3609_v30, %v654_v47  ;;  %v646_v18 = vadd.f32 %v645_v5, %v4427_v16  ;;  %v3610_v36 = vpop.f32.mrf.mxu0  ;;  %v3293_v30 = vld [vmem:[%s3913_s26 + $0x151] sm:$0xff] }
 0x111   : > { %v3576_v54 = vpop.f32.mrf.mxu1 }
 0x112   : > { %v4519_v4 = vadd.f32 %v907_v48, %v646_v18  ;;  %v657_v8 = vadd.f32 %v3576_v54, %v4433_v25  ;;  %v910_v21 = vpop.f32.mrf.mxu0  ;;  %v3291_v25 = vld [vmem:[%s3913_s26 + $0x139] sm:$0xff] }
 0x113   : > { %v648_v60 = vpop.f32.mrf.mxu1 }
 0x114   : > { %v4522_v61 = vadd.f32 %v3610_v36, %v657_v8  ;;  %v649_v15 = vadd.f32 %v648_v60, %v4437_v31  ;;  %v3613_v16 = vpop.f32.mrf.mxu0  ;;  %3816 = vmatmul.mubr.msk.bf16.gmra.mxu0 %vm298_vm1, %v4176_v40  ;;  %v3292_v31 = vld [vmem:[%s3913_s26 + $0x141] sm:$0xff]  ;;  %v3294_v40 = vld [vmem:[%s3913_s26 + $0x159] sm:$0xff]  ;;  %v3344_v8 = vld [vmem:[%s3913_s26 + $0x16a] sm:$0xff] }
 0x115   : > { %v3579_v13 = vpop.f32.mrf.mxu1  ;;  %3782 = vmatmul.mubr.msk.bf16.gmra.mxu1 %vm298_vm1, %v2237_v20  ;;  %3819 = vmatprep.mubr.msk.bf16.mxu0 %vm298_vm1, %v4180_v42  ;;  %v2239_v27 = vpack.c.bf16 %v3292_v31, %v3291_v25  ;;  %v2240_v50 = vpack.c.bf16 %v3294_v40, %v3293_v30 }
 0x116   : > { %v4531_v22 = vadd.f32 %v910_v21, %v649_v15  ;;  %v670_v39 = vadd.f32 %v3579_v13, %v4349_v59  ;;  %v923_v12 = vpop.f32.mrf.mxu0  ;;  %3785 = vmatprep.mubr.msk.bf16.mxu1 %vm298_vm1, %v2238_v55  ;;  %v3295_v15 = vld [vmem:[%s3913_s26 + $0x169] sm:$0xff] }
 0x117   : > { %v661_v23 = vpop.f32.mrf.mxu1 }
 0x118   : > { %v4540_v53 = vadd.f32 %v3613_v16, %v670_v39  ;;  %v662_v47 = vadd.f32 %v661_v23, %v4357_v7  ;;  %v3614_v48 = vpop.f32.mrf.mxu0 }
 0x119   : > { %v3580_v42 = vpop.f32.mrf.mxu1 }
 0x11a   : > { %v4543_v59 = vadd.f32 %v923_v12, %v662_v47  ;;  %v673_v5 = vadd.f32 %v3580_v42, %v4359_v14  ;;  %v926_v29 = vpop.f32.mrf.mxu0  ;;  %v3345_v14 = vld [vmem:[%s3913_s26 + $0x172] sm:$0xff]  ;;  %v3349_v42 = vld [vmem:[%s3913_s26 + $0x1a2] sm:$0xff] }
 0x11b   : > { %v664_v18 = vpop.f32.mrf.mxu1  ;;  %v2535_v39 = vpack.c.bf16 %v3345_v14, %v3344_v8 }
 0x11c   : > { %v4546_v36 = vadd.f32 %v3614_v48, %v673_v5  ;;  %v665_v54 = vadd.f32 %v664_v18, %v4363_v28  ;;  %v3617_v7 = vpop.f32.mrf.mxu0  ;;  %3820 = vmatmul.mubr.msk.bf16.gmra.mxu0 %vm298_vm1, %v4200_v2  ;;  %v3296_v28 = vld [vmem:[%s3913_s26 + $0x171] sm:$0xff]  ;;  %v3348_v48 = vld [vmem:[%s3913_s26 + $0x19a] sm:$0xff] }
 0x11d   : > { %v3583_v20 = vpop.f32.mrf.mxu1  ;;  %3786 = vmatmul.mubr.msk.bf16.gmra.mxu1 %vm298_vm1, %v2239_v27  ;;  %3823 = vmatprep.mubr.msk.bf16.mxu0 %vm298_vm1, %v2534_v51  ;;  %v2241_v31 = vpack.c.bf16 %v3296_v28, %v3295_v15  ;;  %v3300_v5 = vld [vmem:[%s3913_s26 + $0x1a1] sm:$0xff] }
 0x11e   : > { %v4555_v21 = vadd.f32 %v926_v29, %v665_v54  ;;  %v686_v55 = vadd.f32 %v3583_v20, %v4369_v44  ;;  %v939_v60 = vpop.f32.mrf.mxu0  ;;  %3789 = vmatprep.mubr.msk.bf16.mxu1 %vm298_vm1, %v2240_v50 }
 0x11f   : > { %v677_v16 = vpop.f32.mrf.mxu1 }
 0x120   : > { %v4561_v13 = vadd.f32 %v3617_v7, %v686_v55  ;;  %v678_v2 = vadd.f32 %v677_v16, %v4379_v62  ;;  %v3618_v25 = vpop.f32.mrf.mxu0  ;;  %v2537_v7 = vpack.c.bf16 %v3349_v42, %v3348_v48 }
 0x121   : > { %v3584_v12 = vpop.f32.mrf.mxu1 }
 0x122   : > { %v4564_v11 = vadd.f32 %v939_v60, %v678_v2  ;;  %v689_v44 = vadd.f32 %v3584_v12, %v4383_v19  ;;  %v942_v46 = vpop.f32.mrf.mxu0 }
 0x123   : > { %v680_v23 = vpop.f32.mrf.mxu1 }
 0x124   : > { %v4567_v30 = vadd.f32 %v3618_v25, %v689_v44  ;;  %v681_v40 = vadd.f32 %v680_v23, %v4387_v38  ;;  %v3621_v47 = vpop.f32.mrf.mxu0  ;;  %3824 = vmatmul.mubr.msk.bf16.gmra.mxu0 %vm298_vm1, %v2535_v39  ;;  %v3299_v38 = vld [vmem:[%s3913_s26 + $0x199] sm:$0xff] }
 0x125   : > { %v3587_v62 = vpop.f32.mrf.mxu1  ;;  %3790 = vmatmul.mubr.msk.bf16.gmra.mxu1 %vm298_vm1, %v2241_v31  ;;  %3827 = vmatprep.mubr.msk.bf16.mxu0 %vm298_vm1, %v4412_v3  ;;  %v2243_v20 = vpack.c.bf16 %v3300_v5, %v3299_v38 }
 0x126   : > { %v4576_v19 = vadd.f32 %v942_v46, %v681_v40  ;;  %v702_v27 = vadd.f32 %v3587_v62, %v4393_v41  ;;  %v955_v51 = vpop.f32.mrf.mxu0  ;;  %3793 = vmatprep.mubr.msk.bf16.mxu1 %vm298_vm1, %v4304_v37 }
 0x127   : > { %v693_v29 = vpop.f32.mrf.mxu1 }
 0x128   : > { %v4583_v50 = vadd.f32 %v3621_v47, %v702_v27  ;;  %v694_v18 = vadd.f32 %v693_v29, %v4406_v56  ;;  %v3622_v54 = vpop.f32.mrf.mxu0 }
 0x129   : > { %v3588_v3 = vpop.f32.mrf.mxu1 }
 0x12a   : > { %v4586_v8 = vadd.f32 %v955_v51, %v694_v18  ;;  %v705_v14 = vadd.f32 %v3588_v3, %v4410_v1  ;;  %v958_v41 = vpop.f32.mrf.mxu0 }
 0x12b   : > { %v696_v55 = vpop.f32.mrf.mxu1 }
 0x12c   : > { %v4589_v60 = vadd.f32 %v3622_v54, %v705_v14  ;;  %v697_v37 = vadd.f32 %v696_v55, %v4416_v6  ;;  %v3625_v15 = vpop.f32.mrf.mxu0  ;;  %3828 = vmatmul.mubr.msk.bf16.gmra.mxu0 %vm298_vm1, %v2537_v7 }
 0x12d   : > { %v3591_v28 = vpop.f32.mrf.mxu1  ;;  %3794 = vmatmul.mubr.msk.bf16.gmra.mxu1 %vm298_vm1, %v2243_v20 }
 0x12e   : > { %v4594_v56 = vadd.f32 %v958_v41, %v697_v37  ;;  %v718_v16 = vadd.f32 %v3591_v28, %v4421_v10  ;;  %v971_v2 = vpop.f32.mrf.mxu0 }
 0x12f   : > { %v709_v25 = vpop.f32.mrf.mxu1 }
 0x130   : > { %v4597_v39 = vadd.f32 %v3625_v15, %v718_v16  ;;  %v710_v1 = vadd.f32 %v709_v25, %v4431_v24  ;;  %v3626_v12 = vpop.f32.mrf.mxu0 }
 0x131   : > { %v3592_v31 = vpop.f32.mrf.mxu1 }
 0x132   : > { %v4600_v44 = vadd.f32 %v971_v2, %v710_v1  ;;  %v721_v6 = vadd.f32 %v3592_v31, %v4435_v26  ;;  %v974_v46 = vpop.f32.mrf.mxu0 }
 0x133   : > { %v712_v23 = vpop.f32.mrf.mxu1 }
 0x134   : > { %v4603_v40 = vadd.f32 %v3626_v12, %v721_v6  ;;  %v713_v47 = vadd.f32 %v712_v23, %v4439_v32  ;;  %v3665_v62 = vpop.f32.mrf.mxu0 }
 0x135   : > { %v3631_v10 = vpop.f32.mrf.mxu1 }
 0x136   : > { %v4606_v48 = vadd.f32 %v974_v46, %v713_v47  ;;  %v1283_v42 = vadd.f32 %v3631_v10, %v4451_v35  ;;  %v1448_v27 = vpop.f32.mrf.mxu0 }
 0x137   : > { %v1154_v24 = vpop.f32.mrf.mxu1 }
 0x138   : > { %v4609_v51 = vadd.f32 %v3665_v62, %v1283_v42  ;;  %v1281_v38 = vadd.f32 %v1154_v24, %v4453_v49  ;;  %v3666_v5 = vpop.f32.mrf.mxu0 }
 0x139   : > { %v3632_v26 = vpop.f32.mrf.mxu1 }
 0x13a   : > { %v4612_v29 = vadd.f32 %v1448_v27, %v1281_v38  ;;  %v1284_v18 = vadd.f32 %v3632_v26, %v4455_v52  ;;  %v1451_v54 = vpop.f32.mrf.mxu0 }
 0x13b   : > { %v1157_v32 = vpop.f32.mrf.mxu1 }
 0x13c   : > { %v4615_v7 = vadd.f32 %v3666_v5, %v1284_v18  ;;  %v1282_v3 = vadd.f32 %v1157_v32, %v4464_v9  ;;  %v3669_v20 = vpop.f32.mrf.mxu0 }
 0x13d   : > { %v3635_v35 = vpop.f32.mrf.mxu1 }
 0x13e   : > { %v4618_v14 = vadd.f32 %v1451_v54, %v1282_v3  ;;  %v1287_v41 = vadd.f32 %v3635_v35, %v4472_v43  ;;  %v1464_v55 = vpop.f32.mrf.mxu0 }
 0x13f   : > { %v1170_v49 = vpop.f32.mrf.mxu1 }
 0x140   : > { %v4621_v37 = vadd.f32 %v3669_v20, %v1287_v41  ;;  %v1285_v15 = vadd.f32 %v1170_v49, %v4475_v45  ;;  %v3670_v28 = vpop.f32.mrf.mxu0 }
 0x141   : > { %v3636_v52 = vpop.f32.mrf.mxu1 }
 0x142   : > { %v4624_v16 = vadd.f32 %v1464_v55, %v1285_v15  ;;  %v1288_v2 = vadd.f32 %v3636_v52, %v4478_v34  ;;  %v1467_v25 = vpop.f32.mrf.mxu0 }
 0x143   : > { %v1173_v9 = vpop.f32.mrf.mxu1 }
 0x144   : > { %v4627_v1 = vadd.f32 %v3670_v28, %v1288_v2  ;;  %v1286_v12 = vadd.f32 %v1173_v9, %v4486_v0  ;;  %v3673_v31 = vpop.f32.mrf.mxu0 }
 0x145   : > { %v3639_v43 = vpop.f32.mrf.mxu1 }
 0x146   : > { %v4630_v6 = vadd.f32 %v1467_v25, %v1286_v12  ;;  %v1291_v46 = vadd.f32 %v3639_v43, %v4494_v33  ;;  %v1480_v23 = vpop.f32.mrf.mxu0 }
 0x147   : > { %v1186_v45 = vpop.f32.mrf.mxu1 }
 0x148   : > { %v4633_v47 = vadd.f32 %v3673_v31, %v1291_v46  ;;  %v1289_v62 = vadd.f32 %v1186_v45, %v4497_v63  ;;  %v3674_v10 = vpop.f32.mrf.mxu0 }
 0x149   : > { %v3640_v34 = vpop.f32.mrf.mxu1 }
 0x14a   : > { %v4636_v42 = vadd.f32 %v1480_v23, %v1289_v62  ;;  %v1292_v27 = vadd.f32 %v3640_v34, %v4500_v17  ;;  %v1483_v24 = vpop.f32.mrf.mxu0 }
 0x14b   : > { %v1189_v0 = vpop.f32.mrf.mxu1 }
 0x14c   : > { %v4639_v38 = vadd.f32 %v3674_v10, %v1292_v27  ;;  %v1290_v5 = vadd.f32 %v1189_v0, %v4508_v57  ;;  %v3677_v26 = vpop.f32.mrf.mxu0 }
 0x14d   : > { %v3643_v33 = vpop.f32.mrf.mxu1 }
 0x14e   : > { %v4642_v18 = vadd.f32 %v1483_v24, %v1290_v5  ;;  %v1295_v54 = vadd.f32 %v3643_v33, %v4516_v58  ;;  %v1496_v32 = vpop.f32.mrf.mxu0 }
 0x14f   : > { %v1202_v63 = vpop.f32.mrf.mxu1 }
 0x150   : > { %v4645_v3 = vadd.f32 %v3677_v26, %v1295_v54  ;;  %v1293_v20 = vadd.f32 %v1202_v63, %v4519_v4  ;;  %v3678_v35 = vpop.f32.mrf.mxu0 }
 0x151   : > { %v3644_v17 = vpop.f32.mrf.mxu1 }
 0x152   : > { %v4648_v41 = vadd.f32 %v1496_v32, %v1293_v20  ;;  %v1296_v55 = vadd.f32 %v3644_v17, %v4522_v61  ;;  %v1499_v49 = vpop.f32.mrf.mxu0 }
 0x153   : > { %v1205_v57 = vpop.f32.mrf.mxu1 }
 0x154   : > { %v4651_v15 = vadd.f32 %v3678_v35, %v1296_v55  ;;  %v1294_v28 = vadd.f32 %v1205_v57, %v4531_v22  ;;  %v3681_v52 = vpop.f32.mrf.mxu0 }
 0x155   : > { %v3647_v58 = vpop.f32.mrf.mxu1 }
 0x156   : > { %v4654_v2 = vadd.f32 %v1499_v49, %v1294_v28  ;;  %v1299_v25 = vadd.f32 %v3647_v58, %v4540_v53  ;;  %v1512_v9 = vpop.f32.mrf.mxu0 }
 0x157   : > { %v1218_v4 = vpop.f32.mrf.mxu1 }
 0x158   : > { %v4657_v12 = vadd.f32 %v3681_v52, %v1299_v25  ;;  %v1297_v31 = vadd.f32 %v1218_v4, %v4543_v59  ;;  %v3682_v43 = vpop.f32.mrf.mxu0 }
 0x159   : > { %v3648_v61 = vpop.f32.mrf.mxu1 }
 0x15a   : > { %v4660_v46 = vadd.f32 %v1512_v9, %v1297_v31  ;;  %v1300_v23 = vadd.f32 %v3648_v61, %v4546_v36  ;;  %v1515_v45 = vpop.f32.mrf.mxu0 }
 0x15b   : > { %v1221_v22 = vpop.f32.mrf.mxu1 }
 0x15c   : > { %v4663_v62 = vadd.f32 %v3682_v43, %v1300_v23  ;;  %v1298_v10 = vadd.f32 %v1221_v22, %v4555_v21  ;;  %v3685_v34 = vpop.f32.mrf.mxu0 }
 0x15d   : > { %v3651_v53 = vpop.f32.mrf.mxu1 }
 0x15e   : > { %v4666_v27 = vadd.f32 %v1515_v45, %v1298_v10  ;;  %v1303_v24 = vadd.f32 %v3651_v53, %v4561_v13  ;;  %v1528_v0 = vpop.f32.mrf.mxu0 }
 0x15f   : > { %v1234_v59 = vpop.f32.mrf.mxu1 }
 0x160   : > { %v4669_v5 = vadd.f32 %v3685_v34, %v1303_v24  ;;  %v1301_v26 = vadd.f32 %v1234_v59, %v4564_v11  ;;  %v3686_v33 = vpop.f32.mrf.mxu0 }
 0x161   : > { %v3652_v36 = vpop.f32.mrf.mxu1 }
 0x162   : > { %v4672_v54 = vadd.f32 %v1528_v0, %v1301_v26  ;;  %v1304_v32 = vadd.f32 %v3652_v36, %v4567_v30  ;;  %v1531_v63 = vpop.f32.mrf.mxu0 }
 0x163   : > { %v1237_v21 = vpop.f32.mrf.mxu1 }
 0x164   : > { %v4675_v20 = vadd.f32 %v3686_v33, %v1304_v32  ;;  %v1302_v35 = vadd.f32 %v1237_v21, %v4576_v19  ;;  %v3689_v17 = vpop.f32.mrf.mxu0 }
 0x165   : > { %v3655_v13 = vpop.f32.mrf.mxu1 }
 0x166   : > { %v4678_v55 = vadd.f32 %v1531_v63, %v1302_v35  ;;  %v1307_v49 = vadd.f32 %v3655_v13, %v4583_v50  ;;  %v1544_v57 = vpop.f32.mrf.mxu0 }
 0x167   : > { %v1250_v11 = vpop.f32.mrf.mxu1 }
 0x168   : > { %v4681_v28 = vadd.f32 %v3689_v17, %v1307_v49  ;;  %v1305_v52 = vadd.f32 %v1250_v11, %v4586_v8  ;;  %v3690_v58 = vpop.f32.mrf.mxu0 }
 0x169   : > { %v3656_v30 = vpop.f32.mrf.mxu1 }
 0x16a   : > { %v4684_v25 = vadd.f32 %v1544_v57, %v1305_v52  ;;  %v1308_v9 = vadd.f32 %v3656_v30, %v4589_v60  ;;  %v1547_v4 = vpop.f32.mrf.mxu0 }
 0x16b   : > { %v1253_v19 = vpop.f32.mrf.mxu1 }
 0x16c   : > { %v4687_v31 = vadd.f32 %v3690_v58, %v1308_v9  ;;  %v1306_v43 = vadd.f32 %v1253_v19, %v4594_v56  ;;  %v3693_v61 = vpop.f32.mrf.mxu0 }
 0x16d   : > { %v3659_v50 = vpop.f32.mrf.mxu1 }
 0x16e   : > { %v4690_v23 = vadd.f32 %v1547_v4, %v1306_v43  ;;  %v1311_v45 = vadd.f32 %v3659_v50, %v4597_v39  ;;  %v1560_v22 = vpop.f32.mrf.mxu0 }
 0x16f   : > { %v1266_v8 = vpop.f32.mrf.mxu1 }
 0x170   : > { %v4693_v10 = vadd.f32 %v3693_v61, %v1311_v45  ;;  %v1309_v34 = vadd.f32 %v1266_v8, %v4600_v44  ;;  %v3694_v53 = vpop.f32.mrf.mxu0 }
 0x171   : > { %v3660_v60 = vpop.f32.mrf.mxu1 }
 0x172   : > { %v4696_v24 = vadd.f32 %v1560_v22, %v1309_v34  ;;  %v1312_v0 = vadd.f32 %v3660_v60, %v4603_v40  ;;  %v1563_v59 = vpop.f32.mrf.mxu0 }
 0x173   : > { %v1269_v56 = vpop.f32.mrf.mxu1 }
 0x174   : > { %v4699_v26 = vadd.f32 %v3694_v53, %v1312_v0  ;;  %v1310_v33 = vadd.f32 %v1269_v56, %v4606_v48  ;;  %v3733_v36 = vpop.f32.mrf.mxu0 }
 0x175   : > { %v3699_v39 = vpop.f32.mrf.mxu1 }
 0x176   : > { %v4702_v32 = vadd.f32 %v1563_v59, %v1310_v33  ;;  %v1871_v63 = vadd.f32 %v3699_v39, %v4609_v51  ;;  %v4705_v21 = vpop.f32.mrf.mxu0 }
 0x177   : > { %v4707_v44 = vpop.f32.mrf.mxu1 }
 0x178   : > { %v4709_v35 = vadd.f32 %v3733_v36, %v1871_v63  ;;  %v3734_v17 = vpop.f32.mrf.mxu0 }
 0x179   : > { %v3700_v40 = vpop.f32.mrf.mxu1 }
 0x17a   : > { %v1872_v13 = vadd.f32 %v3700_v40, %v4615_v7  ;;  %v4712_v49 = vpop.f32.mrf.mxu0 }
 0x17b   : > { %v4714_v57 = vpop.f32.mrf.mxu1 }
 0x17c   : > { %v4716_v48 = vadd.f32 %v3734_v17, %v1872_v13  ;;  %v3737_v11 = vpop.f32.mrf.mxu0 }
 0x17d   : > { %v3703_v52 = vpop.f32.mrf.mxu1 }
 0x17e   : > { %v1875_v51 = vadd.f32 %v3703_v52, %v4621_v37  ;;  %v2053_v58 = vpop.f32.mrf.mxu0 }
 0x17f   : > { %v1758_v30 = vpop.f32.mrf.mxu1 }
 0x180   : > { %v4719_v9 = vadd.f32 %v3737_v11, %v1875_v51  ;;  %v1873_v4 = vadd.f32 %v1758_v30, %v4624_v16  ;;  %v3738_v19 = vpop.f32.mrf.mxu0 }
 0x181   : > { %v3704_v43 = vpop.f32.mrf.mxu1 }
 0x182   : > { %v4722_v61 = vadd.f32 %v2053_v58, %v1873_v4  ;;  %v1876_v7 = vadd.f32 %v3704_v43, %v4627_v1  ;;  %v2056_v50 = vpop.f32.mrf.mxu0 }
 0x183   : > { %v1761_v45 = vpop.f32.mrf.mxu1 }
 0x184   : > { %v4725_v22 = vadd.f32 %v3738_v19, %v1876_v7  ;;  %v1874_v8 = vadd.f32 %v1761_v45, %v4630_v6  ;;  %v3741_v34 = vpop.f32.mrf.mxu0 }
 0x185   : > { %v3707_v37 = vpop.f32.mrf.mxu1 }
 0x186   : > { %v4728_v53 = vadd.f32 %v2056_v50, %v1874_v8  ;;  %v1879_v60 = vadd.f32 %v3707_v37, %v4633_v47  ;;  %v2069_v0 = vpop.f32.mrf.mxu0 }
 0x187   : > { %v1774_v16 = vpop.f32.mrf.mxu1 }
 0x188   : > { %v4731_v59 = vadd.f32 %v3741_v34, %v1879_v60  ;;  %v1877_v56 = vadd.f32 %v1774_v16, %v4636_v42  ;;  %v3742_v33 = vpop.f32.mrf.mxu0 }
 0x189   : > { %v3708_v1 = vpop.f32.mrf.mxu1 }
 0x18a   : > { %v4734_v36 = vadd.f32 %v2069_v0, %v1877_v56  ;;  %v1880_v39 = vadd.f32 %v3708_v1, %v4639_v38  ;;  %v2072_v63 = vpop.f32.mrf.mxu0 }
 0x18b   : > { %v1777_v6 = vpop.f32.mrf.mxu1 }
 0x18c   : > { %v4737_v17 = vadd.f32 %v3742_v33, %v1880_v39  ;;  %v1878_v40 = vadd.f32 %v1777_v6, %v4642_v18  ;;  %v3745_v13 = vpop.f32.mrf.mxu0 }
 0x18d   : > { %v3711_v47 = vpop.f32.mrf.mxu1 }
 0x18e   : > { %v4740_v11 = vadd.f32 %v2072_v63, %v1878_v40  ;;  %v1883_v52 = vadd.f32 %v3711_v47, %v4645_v3  ;;  %v2085_v51 = vpop.f32.mrf.mxu0 }
 0x18f   : > { %v1790_v42 = vpop.f32.mrf.mxu1 }
 0x190   : > { %v4743_v58 = vadd.f32 %v3745_v13, %v1883_v52  ;;  %v1881_v30 = vadd.f32 %v1790_v42, %v4648_v41  ;;  %v3746_v4 = vpop.f32.mrf.mxu0 }
 0x191   : > { %v3712_v38 = vpop.f32.mrf.mxu1 }
 0x192   : > { %v4746_v19 = vadd.f32 %v2085_v51, %v1881_v30  ;;  %v1884_v43 = vadd.f32 %v3712_v38, %v4651_v15  ;;  %v2088_v7 = vpop.f32.mrf.mxu0 }
 0x193   : > { %v1793_v18 = vpop.f32.mrf.mxu1 }
 0x194   : > { %v4749_v50 = vadd.f32 %v3746_v4, %v1884_v43  ;;  %v1882_v45 = vadd.f32 %v1793_v18, %v4654_v2  ;;  %v3749_v8 = vpop.f32.mrf.mxu0 }
 0x195   : > { %v3715_v3 = vpop.f32.mrf.mxu1 }
 0x196   : > { %v4752_v34 = vadd.f32 %v2088_v7, %v1882_v45  ;;  %v1887_v37 = vadd.f32 %v3715_v3, %v4657_v12  ;;  %v4755_v60 = vpop.f32.mrf.mxu0 }
 0x197   : > { %v4757_v41 = vpop.f32.mrf.mxu1 }
 0x198   : > { %v4759_v0 = vadd.f32 %v3749_v8, %v1887_v37  ;;  %v3750_v16 = vpop.f32.mrf.mxu0 }
 0x199   : > { %v3716_v15 = vpop.f32.mrf.mxu1 }
 0x19a   : > { %v1888_v56 = vadd.f32 %v3716_v15, %v4663_v62  ;;  %v4762_v33 = vpop.f32.mrf.mxu0 }
 0x19b   : > { %v4764_v1 = vpop.f32.mrf.mxu1 }
 0x19c   : > { %v4766_v2 = vadd.f32 %v3750_v16, %v1888_v56  ;;  %v3753_v39 = vpop.f32.mrf.mxu0 }
 0x19d   : > { %v3719_v63 = vpop.f32.mrf.mxu1 }
 0x19e   : > { %v1891_v12 = vadd.f32 %v3719_v63, %v4669_v5  ;;  %v2117_v6 = vpop.f32.mrf.mxu0 }
 0x19f   : > { %v1822_v40 = vpop.f32.mrf.mxu1 }
 0x1a0   : > { %v4769_v13 = vadd.f32 %v3753_v39, %v1891_v12  ;;  %v1889_v47 = vadd.f32 %v1822_v40, %v4672_v54  ;;  %v3754_v52 = vpop.f32.mrf.mxu0 }
 0x1a1   : > { %v3720_v51 = vpop.f32.mrf.mxu1 }
 0x1a2   : > { %v4772_v42 = vadd.f32 %v2117_v6, %v1889_v47  ;;  %v1892_v62 = vadd.f32 %v3720_v51, %v4675_v20  ;;  %v2120_v30 = vpop.f32.mrf.mxu0 }
 0x1a3   : > { %v1825_v4 = vpop.f32.mrf.mxu1 }
 0x1a4   : > { %v4775_v38 = vadd.f32 %v3754_v52, %v1892_v62  ;;  %v1890_v43 = vadd.f32 %v1825_v4, %v4678_v55  ;;  %v3757_v7 = vpop.f32.mrf.mxu0  ;;  %v1869_v4 = vadd.f32 %v4707_v44, %v4612_v29 }
 0x1a5   : > { %v3723_v5 = vpop.f32.mrf.mxu1 }
 0x1a6   : > { %v4778_v18 = vadd.f32 %v2120_v30, %v1890_v43  ;;  %v1895_v45 = vadd.f32 %v3723_v5, %v4681_v28  ;;  %v2133_v8 = vpop.f32.mrf.mxu0 }
 0x1a7   : > { %v1838_v54 = vpop.f32.mrf.mxu1 }
 0x1a8   : > { %v4781_v3 = vadd.f32 %v3757_v7, %v1895_v45  ;;  %v1893_v37 = vadd.f32 %v1838_v54, %v4684_v25  ;;  %v3758_v16 = vpop.f32.mrf.mxu0 }
 0x1a9   : > { %v3724_v20 = vpop.f32.mrf.mxu1 }
 0x1aa   : > { %v4784_v15 = vadd.f32 %v2133_v8, %v1893_v37  ;;  %v1896_v56 = vadd.f32 %v3724_v20, %v4687_v31  ;;  %v2136_v39 = vpop.f32.mrf.mxu0  ;;  %v2164_v37 = vadd.f32 %v4705_v21, %v1869_v4  ;;  %v4814_v21 = vld [vmem:[%s4957_s2] ss:$0 sm:$0xff] }
 0x1ab   : > { %v1841_v55 = vpop.f32.mrf.mxu1 }
 0x1ac   : > { %v4787_v63 = vadd.f32 %v3758_v16, %v1896_v56  ;;  %v1894_v12 = vadd.f32 %v1841_v55, %v4690_v23  ;;  %v3761_v6 = vpop.f32.mrf.mxu0 }
 0x1ad   : > { %v3727_v28 = vpop.f32.mrf.mxu1 }
 0x1ae   : > { %v4790_v40 = vadd.f32 %v2136_v39, %v1894_v12  ;;  %v1899_v47 = vadd.f32 %v3727_v28, %v4693_v10  ;;  %v2149_v52 = vpop.f32.mrf.mxu0 }
 0x1af   : > { %v1854_v25 = vpop.f32.mrf.mxu1 }
 0x1b0   : > { %v4793_v51 = vadd.f32 %v3761_v6, %v1899_v47  ;;  %v1897_v62 = vadd.f32 %v1854_v25, %v4696_v24  ;;  %v3762_v30 = vpop.f32.mrf.mxu0  ;;  %v1870_v24 = vadd.f32 %v4714_v57, %v4618_v14 }
 0x1b1   : > { %v3728_v31 = vpop.f32.mrf.mxu1 }
 0x1b2   : > { %v4798_v43 = vadd.f32 %v2149_v52, %v1897_v62  ;;  %v1900_v23 = vadd.f32 %v3728_v31, %v4699_v26  ;;  %v2152_v7 = vpop.f32.mrf.mxu0  ;;  %v2165_v55 = vadd.f32 %v4712_v49, %v1870_v24  ;;  %v4821_v49 = vld [vmem:[%s4958_s3] ss:$0 sm:$0xff] }
 0x1b3   : > { %v1857_v5 = vpop.f32.mrf.mxu1 }
 0x1b4   : > { %v4801_v45 = vadd.f32 %v3762_v30, %v1900_v23  ;;  %v1898_v10 = vadd.f32 %v1857_v5, %v4702_v32  ;;  %v3801_v8 = vpop.f32.mrf.mxu0 }
 0x1b5   : > { %v3767_v54 = vpop.f32.mrf.mxu1 }
 0x1b6   : > { %v4807_v16 = vadd.f32 %v2152_v7, %v1898_v10  ;;  %v2625_v29 = vpop.f32.mrf.mxu0  ;;  %v2460_v44 = vadd.f32 %v3767_v54, %v4709_v35 }
 0x1b7   : > { %v2331_v20 = vpop.f32.mrf.mxu1 }
 0x1b8   : > { %v2458_v26 = vadd.f32 %v2331_v20, %v2164_v37  ;;  %v3802_v56 = vpop.f32.mrf.mxu0  ;;  %v2754_v6 = vadd.f32 %v3801_v8, %v2460_v44 }
 0x1b9   : > { %v3768_v39 = vpop.f32.mrf.mxu1 }
 0x1ba   : > { %v2752_v12 = vadd.f32 %v2625_v29, %v2458_v26  ;;  %v2628_v32 = vpop.f32.mrf.mxu0  ;;  %v2461_v57 = vadd.f32 %v3768_v39, %v4716_v48  ;;  %v2793_v31 = vmul.f32 %v4814_v21, %v2754_v6 }
 0x1bb   : > { %v2334_v14 = vpop.f32.mrf.mxu1 }
 0x1bc   : > { %v2459_v28 = vadd.f32 %v2334_v14, %v2165_v55  ;;  %v3805_v47 = vpop.f32.mrf.mxu0  ;;  %v2791_v35 = vmul.f32 %v4814_v21, %v2752_v12  ;;  %v2755_v23 = vadd.f32 %v3802_v56, %v2461_v57  ;;  %v2832_v29 = vadd.f32 %v4821_v49, %v2793_v31 }
 0x1bd   : > { %v3771_v52 = vpop.f32.mrf.mxu1 }
 0x1be   : > { %v2753_v25 = vadd.f32 %v2628_v32, %v2459_v28  ;;  %v2641_v62 = vpop.f32.mrf.mxu0  ;;  %v2830_v30 = vadd.f32 %v4821_v49, %v2791_v35  ;;  %v2794_v44 = vmul.f32 %v4814_v21, %v2755_v23  ;;  %v2464_v12 = vadd.f32 %v3771_v52, %v4719_v9 }
 0x1bf   : > { %v2347_v4 = vpop.f32.mrf.mxu1  ;;  %v2864_v28 = vmax.f32 %v2832_v29, 0.0 }
 0x1c0   : > { %v2792_v48 = vmul.f32 %v4814_v21, %v2753_v25  ;;  %v2462_v7 = vadd.f32 %v2347_v4, %v4722_v61  ;;  %v3806_v5 = vpop.f32.mrf.mxu0  ;;  %v2862_v10 = vmax.f32 %v2830_v30, 0.0  ;;  %v2833_v35 = vadd.f32 %v4821_v49, %v2794_v44 }
 0x1c1   : > { %v3772_v8 = vpop.f32.mrf.mxu1  ;;  %v2758_v31 = vadd.f32 %v3805_v47, %v2464_v12  ;;  %v1885_v44 = vadd.f32 %v4757_v41, %v4660_v46 }
 0x1c2   : > { %2894 = vxpose.xlu0.b32.start [1/16] (narrow) %v2862_v10, 8  ;;  %v2644_v54 = vpop.f32.mrf.mxu0  ;;  %v2831_v37 = vadd.f32 %v4821_v49, %v2792_v48  ;;  %v2756_v20 = vadd.f32 %v2641_v62, %v2462_v7  ;;  %v2865_v9 = vmax.f32 %v2833_v35, 0.0  ;;  %v1886_v35 = vadd.f32 %v4764_v1, %v4666_v27 }
 0x1c3   : > { %v2350_v24 = vpop.f32.mrf.mxu1 }
 0x1c4   : > { %v2463_v26 = vadd.f32 %v2350_v24, %v4728_v53  ;;  %v3809_v56 = vpop.f32.mrf.mxu0  ;;  %v2863_v39 = vmax.f32 %v2831_v37, 0.0  ;;  %v2795_v6 = vmul.f32 %v4814_v21, %v2756_v20  ;;  %v2465_v53 = vadd.f32 %v3772_v8, %v4725_v22 }
 0x1c5   : > { %v3775_v55 = vpop.f32.mrf.mxu1  ;;  %v2797_v22 = vmul.f32 %v4814_v21, %v2758_v31 }
 0x1c6   : > { %2895 = vxpose.xlu0.b32.cont [2/16] (narrow) %v2863_v39, 8  ;;  %v2657_v61 = vpop.f32.mrf.mxu0  ;;  %v2757_v14 = vadd.f32 %v2644_v54, %v2463_v26  ;;  %v2834_v52 = vadd.f32 %v4821_v49, %v2795_v6  ;;  %v2759_v10 = vadd.f32 %v3806_v5, %v2465_v53  ;;  %v2468_v41 = vadd.f32 %v3775_v55, %v4731_v59 }
 0x1c7   : > { %v2363_v32 = vpop.f32.mrf.mxu1  ;;  %v2836_v6 = vadd.f32 %v4821_v49, %v2797_v22 }
 0x1c8   : > { %v4833_v57 = vpop.f32.mrf.mxu0  ;;  %v2796_v4 = vmul.f32 %v4814_v21, %v2757_v14  ;;  %v2466_v54 = vadd.f32 %v2363_v32, %v4734_v36  ;;  %v2866_v47 = vmax.f32 %v2834_v52, 0.0  ;;  %v2798_v5 = vmul.f32 %v4814_v21, %v2759_v10 }
 0x1c9   : > { %v3776_v25 = vpop.f32.mrf.mxu1  ;;  %v2868_v52 = vmax.f32 %v2836_v6, 0.0  ;;  %v2762_v1 = vadd.f32 %v3809_v56, %v2468_v41 }
 0x1ca   : > { %2896 = vxpose.xlu0.b32.cont [3/16] (narrow) %v2864_v28, 8  ;;  %v2660_v62 = vpop.f32.mrf.mxu0  ;;  %v2835_v24 = vadd.f32 %v4821_v49, %v2796_v4  ;;  %v2760_v26 = vadd.f32 %v2657_v61, %v2466_v54  ;;  %v2180_v28 = vadd.f32 %v4755_v60, %v1885_v44  ;;  %v2837_v31 = vadd.f32 %v4821_v49, %v2798_v5 }
 0x1cb   : > { %v2366_v30 = vpop.f32.mrf.mxu1  ;;  %v2181_v60 = vadd.f32 %v4762_v33, %v1886_v35  ;;  %v2469_v59 = vadd.f32 %v3776_v25, %v4737_v17  ;;  %v2801_v25 = vmul.f32 %v4814_v21, %v2762_v1 }
 0x1cc   : > { %v4838_v23 = vpop.f32.mrf.mxu0  ;;  %v2467_v39 = vadd.f32 %v2366_v30, %v4740_v11  ;;  %v2867_v32 = vmax.f32 %v2835_v24, 0.0  ;;  %v2799_v53 = vmul.f32 %v4814_v21, %v2760_v26  ;;  %v2869_v22 = vmax.f32 %v2837_v31, 0.0 }
 0x1cd   : > { %v4841_v48 = vpop.f32.mrf.mxu1 }
 0x1ce   : > { %2897 = vxpose.xlu0.b32.cont [4/16] (narrow) %v2865_v9, 8  ;;  %v4843_v7 = vpop.f32.mrf.mxu0  ;;  %v2761_v11 = vadd.f32 %v2660_v62, %v2467_v39 }
 0x1cf   : > { %v2379_v37 = vpop.f32.mrf.mxu1 }
 0x1d0   : > { %v4847_v8 = vpop.f32.mrf.mxu0  ;;  %v2800_v62 = vmul.f32 %v4814_v21, %v2761_v11  ;;  %v2470_v6 = vadd.f32 %v2379_v37, %v4746_v19 }
 0x1d1   : > { %v4850_v29 = vpop.f32.mrf.mxu1 }
 0x1d2   : > { %2898 = vxpose.xlu0.b32.cont [5/16] (narrow) %v2866_v47, 8  ;;  %v4854_v20 = vpop.f32.mrf.mxu0  ;;  %v2838_v47 = vadd.f32 %v4821_v49, %v2799_v53  ;;  %v2839_v41 = vadd.f32 %v4821_v49, %v2800_v62  ;;  %v2764_v37 = vadd.f32 %v4843_v7, %v2470_v6 }
 0x1d3   : > { %v2382_v36 = vpop.f32.mrf.mxu1 }
 0x1d4   : > { %v3817_v12 = vpop.f32.mrf.mxu0  ;;  %v2471_v11 = vadd.f32 %v2382_v36, %v4752_v34 }
 0x1d5   : > { %v3783_v14 = vpop.f32.mrf.mxu1 }
 0x1d6   : > { %2899 = vxpose.xlu0.b32.cont [6/16] (narrow) %v2867_v32, 8  ;;  %v2689_v46 = vpop.f32.mrf.mxu0  ;;  %v2476_v30 = vadd.f32 %v3783_v14, %v4759_v0  ;;  %v2763_v32 = vadd.f32 %v4833_v57, %v2469_v59  ;;  %v2870_v14 = vmax.f32 %v2838_v47, 0.0 }
 0x1d7   : > { %v2395_v61 = vpop.f32.mrf.mxu1 }
 0x1d8   : > { %v2474_v4 = vadd.f32 %v2395_v61, %v2180_v28  ;;  %v3818_v9 = vpop.f32.mrf.mxu0  ;;  %v2770_v24 = vadd.f32 %v3817_v12, %v2476_v30  ;;  %v2802_v19 = vmul.f32 %v4814_v21, %v2763_v32 }
 0x1d9   : > { %v3784_v10 = vpop.f32.mrf.mxu1 }
 0x1da   : > { %v2768_v54 = vadd.f32 %v2689_v46, %v2474_v4  ;;  %2900 = vxpose.xlu0.b32.cont [7/16] (narrow) %v2868_v52, 8  ;;  %v2692_v27 = vpop.f32.mrf.mxu0  ;;  %v2477_v33 = vadd.f32 %v3784_v10, %v4766_v2  ;;  %v2809_v28 = vmul.f32 %v4814_v21, %v2770_v24  ;;  %v2472_v52 = vadd.f32 %v4841_v48, %v4743_v58 }
 0x1db   : > { %v2398_v55 = vpop.f32.mrf.mxu1  ;;  %v2871_v10 = vmax.f32 %v2839_v41, 0.0  ;;  %v2765_v58 = vadd.f32 %v4854_v20, %v2471_v11  ;;  %v2841_v47 = vadd.f32 %v4821_v49, %v2802_v19 }
 0x1dc   : > { %v2475_v0 = vadd.f32 %v2398_v55, %v2181_v60  ;;  %v4870_v44 = vpop.f32.mrf.mxu0  ;;  %v2807_v5 = vmul.f32 %v4814_v21, %v2768_v54  ;;  %v2771_v53 = vadd.f32 %v3818_v9, %v2477_v33  ;;  %v2840_v60 = vadd.f32 %v4821_v49, %v2801_v25 }
 0x1dd   : > { %v3787_v26 = vpop.f32.mrf.mxu1  ;;  %v2803_v55 = vmul.f32 %v4814_v21, %v2764_v37  ;;  %v2766_v62 = vadd.f32 %v4838_v23, %v2472_v52  ;;  %v2804_v25 = vmul.f32 %v4814_v21, %v2765_v58 }
 0x1de   : > { %v2769_v39 = vadd.f32 %v2692_v27, %v2475_v0  ;;  %2901 = vxpose.xlu0.b32.cont [8/16] (narrow) %v2869_v22, 8  ;;  %v2705_v56 = vpop.f32.mrf.mxu0  ;;  %v2846_v17 = vadd.f32 %v4821_v49, %v2807_v5  ;;  %v2810_v54 = vmul.f32 %v4814_v21, %v2771_v53  ;;  %v2480_v48 = vadd.f32 %v3787_v26, %v4769_v13 }
 0x1df   : > { %v2411_v12 = vpop.f32.mrf.mxu1  ;;  %v2872_v0 = vmax.f32 %v2840_v60, 0.0  ;;  %v2473_v13 = vadd.f32 %v4850_v29, %v4749_v50  ;;  %v2805_v37 = vmul.f32 %v4814_v21, %v2766_v62  ;;  %v2843_v52 = vadd.f32 %v4821_v49, %v2804_v25 }
 0x1e0   : > { %v2808_v35 = vmul.f32 %v4814_v21, %v2769_v39  ;;  %v2878_v46 = vmax.f32 %v2846_v17, 0.0  ;;  %v4880_v2 = vpop.f32.mrf.mxu0  ;;  %v2478_v61 = vadd.f32 %v2411_v12, %v4772_v42  ;;  %v2848_v42 = vadd.f32 %v4821_v49, %v2809_v28 }
 0x1e1   : > { %v3788_v31 = vpop.f32.mrf.mxu1  ;;  %v2849_v20 = vadd.f32 %v4821_v49, %v2810_v54  ;;  %v2774_v32 = vadd.f32 %v4870_v44, %v2480_v48  ;;  %v2873_v12 = vmax.f32 %v2841_v47, 0.0  ;;  %v2767_v11 = vadd.f32 %v4847_v8, %v2473_v13 }
 0x1e2   : > { %2926 = vxpose.xlu1.b32.start [1/16] (narrow) %v2878_v46, 8  ;;  %2902 = vxpose.xlu0.b32.cont [9/16] (narrow) %v2870_v14, 8  ;;  %v2708_v57 = vpop.f32.mrf.mxu0  ;;  %v2847_v4 = vadd.f32 %v4821_v49, %v2808_v35  ;;  %v2772_v27 = vadd.f32 %v2705_v56, %v2478_v61  ;;  %v2880_v56 = vmax.f32 %v2848_v42, 0.0  ;;  %v2842_v14 = vadd.f32 %v4821_v49, %v2803_v55 }
 0x1e3   : > { %v2414_v30 = vpop.f32.mrf.mxu1  ;;  %v2481_v28 = vadd.f32 %v3788_v31, %v4775_v38  ;;  %v2881_v53 = vmax.f32 %v2849_v20, 0.0 }
 0x1e4   : > { %v3825_v9 = vpop.f32.mrf.mxu0  ;;  %v2479_v1 = vadd.f32 %v2414_v30, %v4778_v18  ;;  %v2879_v59 = vmax.f32 %v2847_v4, 0.0  ;;  %v2874_v4 = vmax.f32 %v2842_v14, 0.0 }
 0x1e5   : > { %v3791_v7 = vpop.f32.mrf.mxu1  ;;  %v2775_v54 = vadd.f32 %v4880_v2, %v2481_v28  ;;  %v2844_v2 = vadd.f32 %v4821_v49, %v2805_v37 }
 0x1e6   : > { %v2484_v34 = vadd.f32 %v3791_v7, %v4781_v3  ;;  %2903 = vxpose.xlu0.b32.cont [10/16] (narrow) %v2871_v10, 8  ;;  %v2721_v36 = vpop.f32.mrf.mxu0  ;;  %2927 = vxpose.xlu1.b32.cont [2/16] (narrow) %v2879_v59, 8  ;;  %v2811_v3 = vmul.f32 %v4814_v21, %v2772_v27  ;;  %v2773_v33 = vadd.f32 %v2708_v57, %v2479_v1 }
 0x1e7   : > { %v2427_v22 = vpop.f32.mrf.mxu1  ;;  %v2813_v10 = vmul.f32 %v4814_v21, %v2774_v32  ;;  %v2876_v20 = vmax.f32 %v2844_v2, 0.0 }
 0x1e8   : > { %v2482_v18 = vadd.f32 %v2427_v22, %v4784_v15  ;;  %v2778_v24 = vadd.f32 %v3825_v9, %v2484_v34  ;;  %v3826_v5 = vpop.f32.mrf.mxu0  ;;  %v2812_v46 = vmul.f32 %v4814_v21, %v2773_v33  ;;  %v2850_v61 = vadd.f32 %v4821_v49, %v2811_v3 }
 0x1e9   : > { %v3792_v39 = vpop.f32.mrf.mxu1 }
 0x1ea   : > { %v2817_v26 = vmul.f32 %v4814_v21, %v2778_v24  ;;  %v2485_v17 = vadd.f32 %v3792_v39, %v4787_v63  ;;  %v2776_v23 = vadd.f32 %v2721_v36, %v2482_v18  ;;  %2904 = vxpose.xlu0.b32.cont [11/16] (narrow) %v2872_v0, 8  ;;  %v2724_v15 = vpop.f32.mrf.mxu0  ;;  %2928 = vxpose.xlu1.b32.cont [3/16] (narrow) %v2880_v56, 8  ;;  %v2882_v1 = vmax.f32 %v2850_v61, 0.0 }
 0x1eb   : > { %v2430_v6 = vpop.f32.mrf.mxu1  ;;  %v2851_v7 = vadd.f32 %v4821_v49, %v2812_v46  ;;  %v2875_v18 = vmax.f32 %v2843_v52, 0.0  ;;  %v2814_v24 = vmul.f32 %v4814_v21, %v2775_v54  ;;  %v2852_v0 = vadd.f32 %v4821_v49, %v2813_v10 }
 0x1ec   : > { %v2815_v50 = vmul.f32 %v4814_v21, %v2776_v23  ;;  %v2483_v29 = vadd.f32 %v2430_v6, %v4790_v40  ;;  %v2779_v35 = vadd.f32 %v3826_v5, %v2485_v17  ;;  %v3829_v63 = vpop.f32.mrf.mxu0  ;;  %v4916_v44 = vadd.f32 %v4821_v49, %v2817_v26 }
 0x1ed   : > { %v3795_v41 = vpop.f32.mrf.mxu1  ;;  %v2884_v26 = vmax.f32 %v2852_v0, 0.0  ;;  %v2853_v17 = vadd.f32 %v4821_v49, %v2814_v24 }
 0x1ee   : > { %v2818_v57 = vmul.f32 %v4814_v21, %v2779_v35  ;;  %v2488_v19 = vadd.f32 %v3795_v41, %v4793_v51  ;;  %v2777_v38 = vadd.f32 %v2724_v15, %v2483_v29  ;;  %2905 = vxpose.xlu0.b32.cont [12/16] (narrow) %v2873_v12, 8  ;;  %v2737_v31 = vpop.f32.mrf.mxu0  ;;  %v2854_v40 = vadd.f32 %v4821_v49, %v2815_v50 }
 0x1ef   : > { %2929 = vxpose.xlu1.b32.cont [4/16] (narrow) %v2881_v53, 8  ;;  %v2443_v30 = vpop.f32.mrf.mxu1  ;;  %v2885_v25 = vmax.f32 %v2853_v17, 0.0  ;;  %v2888_v6 = vmax.f32 %v4916_v44, 0.0 }
 0x1f0   : > { %v2816_v9 = vmul.f32 %v4814_v21, %v2777_v38  ;;  %v2486_v51 = vadd.f32 %v2443_v30, %v4798_v43  ;;  %v2782_v42 = vadd.f32 %v3829_v63, %v2488_v19  ;;  %v3830_v60 = vpop.f32.mrf.mxu0  ;;  %v2857_v8 = vadd.f32 %v4821_v49, %v2818_v57 }
 0x1f1   : > { %v3796_v27 = vpop.f32.mrf.mxu1  ;;  %v2806_v43 = vmul.f32 %v4814_v21, %v2767_v11  ;;  %v2886_v32 = vmax.f32 %v2854_v40, 0.0 }
 0x1f2   : > { %v2821_v59 = vmul.f32 %v4814_v21, %v2782_v42  ;;  %v2489_v34 = vadd.f32 %v3796_v27, %v4801_v45  ;;  %v2780_v36 = vadd.f32 %v2737_v31, %v2486_v51  ;;  %2906 = vxpose.xlu0.b32.cont [13/16] (narrow) %v2874_v4, 8  ;;  %v2855_v55 = vadd.f32 %v4821_v49, %v2816_v9  ;;  %v2740_v48 = vpop.f32.mrf.mxu0 }
 0x1f3   : > { %2930 = vxpose.xlu1.b32.cont [5/16] (narrow) %v2882_v1, 8  ;;  %v2446_v58 = vpop.f32.mrf.mxu1  ;;  %v2883_v45 = vmax.f32 %v2851_v7, 0.0  ;;  %v2889_v12 = vmax.f32 %v2857_v8, 0.0 }
 0x1f4   : > { %v2819_v22 = vmul.f32 %v4814_v21, %v2780_v36  ;;  %v2487_v47 = vadd.f32 %v2446_v58, %v4807_v16  ;;  %v2783_v62 = vadd.f32 %v3830_v60, %v2489_v34  ;;  %v2860_v5 = vadd.f32 %v4821_v49, %v2821_v59 }
 0x1f5   : > { %v2845_v16 = vadd.f32 %v4821_v49, %v2806_v43 }
 0x1f6   : > { %v2822_v3 = vmul.f32 %v4814_v21, %v2783_v62  ;;  %v2781_v33 = vadd.f32 %v2740_v48, %v2487_v47  ;;  %2907 = vxpose.xlu0.b32.cont [14/16] (narrow) %v2875_v18, 8  ;;  %v2858_v39 = vadd.f32 %v4821_v49, %v2819_v22 }
 0x1f7   : > { %2931 = vxpose.xlu1.b32.cont [6/16] (narrow) %v2883_v45, 8  ;;  %v2877_v15 = vmax.f32 %v2845_v16, 0.0 }
 0x1f8   : > { %v2820_v56 = vmul.f32 %v4814_v21, %v2781_v33  ;;  %v2861_v13 = vadd.f32 %v4821_v49, %v2822_v3  ;;  %v2887_v21 = vmax.f32 %v2855_v55, 0.0  ;;  %v2890_v14 = vmax.f32 %v2858_v39, 0.0 }
 0x1fa   : > { %2908 = vxpose.xlu0.b32.cont [15/16] (narrow) %v2876_v20, 8  ;;  %v2859_v23 = vadd.f32 %v4821_v49, %v2820_v56  ;;  %v2892_v49 = vmax.f32 %v2860_v5, 0.0  ;;  %v2893_v50 = vmax.f32 %v2861_v13, 0.0 }
 0x1fb   : > { %2932 = vxpose.xlu1.b32.cont [7/16] (narrow) %v2884_v26, 8 }
 0x1fc   : > { %v2891_v28 = vmax.f32 %v2859_v23, 0.0 }
 0x1fe   : > { %2909 = vxpose.xlu0.b32.end [16/16] (narrow) %v2877_v15, 8 }
 0x1ff   : > { %2933 = vxpose.xlu1.b32.cont [8/16] (narrow) %v2885_v25, 8 }
 0x203   : > { %2934 = vxpose.xlu1.b32.cont [9/16] (narrow) %v2886_v32, 8 }
 0x207   : > { %2935 = vxpose.xlu1.b32.cont [10/16] (narrow) %v2887_v21, 8 }
 0x20b   : > { %2936 = vxpose.xlu1.b32.cont [11/16] (narrow) %v2888_v6, 8 }
 0x20f   : > { %2937 = vxpose.xlu1.b32.cont [12/16] (narrow) %v2889_v12, 8 }
 0x213   : > { %2938 = vxpose.xlu1.b32.cont [13/16] (narrow) %v2890_v14, 8 }
 0x217   : > { %2939 = vxpose.xlu1.b32.cont [14/16] (narrow) %v2891_v28, 8 }
 0x21b   : > { %2940 = vxpose.xlu1.b32.cont [15/16] (narrow) %v2892_v49, 8 }
 0x21f   : > { %2941 = vxpose.xlu1.b32.end [16/16] (narrow) %v2893_v50, 8 }
 0x23e   : > { %v2910_v29 = vpop.trf.xlu0 }
 0x23f   : > { %2958 = vst [vmem:[%s197_s22] sm:$0xff] %v2910_v29 }
 0x25f   : > { %v2942_v35 = vpop.trf.xlu1 }
 0x260   : > { %2959 = vst [vmem:[%s197_s22 + $0x8] sm:$0xff] %v2942_v35 }
 0x261 PF: > { %s14_s15 = sadd.s32 1, %s3858_s15  }
 0x262   : > { %p11_p4 = scmp.ge.s32.totalorder %s14_s15, 4  }
 0x264   :  { %13 = sbr.rel (!%p11_p4) target bundleno = 1 (0x1), region = 76 }

// kernel: basic_conv_forward.2
= control target key start
LH: loop header
LB: loop body
LE: loop exit
PB: predicated region body
PF: predicated region fallthrough
CT: control target
= control target key end

     0   :  { %s3754_s12 = smov 0   ;;  %s4755_s0 = inlined_call_operand.vmem [shape: f32[2,18,18,4], index: 0, kind: input, shape index: {}]   ;;  %s4756_s1 = inlined_call_operand.vmem [shape: bf16[9,4,128], index: 1, kind: input, shape index: {}]   ;;  %s4757_s2 = inlined_call_operand.vmem [shape: f32[1,128], index: 2, kind: output, shape index: {0}]   ;;  %s4758_s3 = inlined_call_operand.vmem [shape: f32[1,128], index: 3, kind: output, shape index: {1}]  }
   0x1 LB: > { %s2892_s13 = sadd.s32 4294967295, %s3731_s12   ;;  %p2895_p0 = scmp.ge.s32.totalorder %s3731_s12, 1  ;;  %s3731_s12 = sphi %s3754_s12, %s14_s12  }
   0x2   : > { %p130_p1 = scmp.lt.s32.totalorder %s3731_s12, 3 }
   0x4   : > { %p131_p2 = pnand %p2895_p0, %p130_p1 }
   0x6   : > { %134 = sbr.rel (%p131_p2) target bundleno = 534 (0x216), region = 28 }
   0xb   : > { %p149_p3 = scmp.lt.s32.totalorder %s2892_s13, 1  ;;  %p2897_p4 = scmp.ne.s32.totalorder %s2892_s13, 0 }
   0xd   : > { %s150_s14 = scalar_select %p149_p3, %s2892_s13, 1 }
   0xe   : > { %158 = sbr.rel (%p2897_p4) target bundleno = 21 (0x15), region = 32 }
   0xf   : > { %s3715_s15 = smul.u32 432, %s150_s14 }
  0x11   : > { %s3765_s18 = scalar_lea.vmem %s4755_s0, %s3715_s15 }
  0x13   : > { %v3733_v0 = vmov 0.0  }
  0x14   : > { %159 = vst [vmem:[%s4757_s2] sm:$0x1] %v3733_v0  ;;  %160 = vst [vmem:[%s4758_s3] sm:$0x1] %v3733_v0 }
  0x15 PF: > { %v2898_v1 = vld [vmem:[%s4756_s1 + $0x2] sm:$0x3]  ;;  %vm309_vm0 = vcmask 1041408   ;;  %v211_v3 = vld [vmem:[%s3765_s18 + $0x9] sm:$0xff]  ;;  %vm260_vm1 = vcmask 31744   ;;  %v212_v8 = vld [vmem:[%s3765_s18 + $0x19] sm:$0xff] }
  0x16   : > { %v210_v2 = vld [vmem:[%s3765_s18 + $0x1] sm:$0xff]  ;;  %3705 = vmatprep.subr.msk.bf16.mxu0 %vm309_vm0, %v2898_v1  ;;  %3706 = vmatprep.subr.msk.bf16.mxu1 %vm309_vm0, %v2898_v1  ;;  %v311_v4 = vsel %vm309_vm0, %v2898_v1, 0  ;;  %v227_v7 = vld [vmem:[%s3765_s18 + $0xc9] sm:$0xff]  ;;  %v228_v11 = vld [vmem:[%s3765_s18 + $0xd9] sm:$0xff] }
  0x17   : > { %v242_v5 = vpack.c.bf16 %v211_v3, %v210_v2  ;;  %v226_v6 = vld [vmem:[%s3765_s18 + $0xc1] sm:$0xff]  ;;  %3398 = vmatpush3.bf16.msra.mxu0 %v311_v4  ;;  %3704 = vmatpush3.bf16.msra.mxu1 %v311_v4  ;;  %v214_v17 = vld [vmem:[%s3765_s18 + $0x31] sm:$0xff]  ;;  %v215_v20 = vld [vmem:[%s3765_s18 + $0x39] sm:$0xff] }
  0x18   : > { %v3784_v9 = vpack.c.bf16 %v227_v7, %v226_v6  ;;  %v213_v10 = vld [vmem:[%s3765_s18 + $0x21] sm:$0xff]  ;;  %v230_v21 = vld [vmem:[%s3765_s18 + $0xf1] sm:$0xff]  ;;  %v231_v22 = vld [vmem:[%s3765_s18 + $0xf9] sm:$0xff]  ;;  %v3813_v23 = vpack.c.bf16 %v215_v20, %v214_v17 }
  0x19   : > { %v229_v12 = vld [vmem:[%s3765_s18 + $0xe1] sm:$0xff]  ;;  %3399 = vmatprep.mubr.msk.bf16.mxu0 %vm260_vm1, %v242_v5  ;;  %v3790_v13 = vpack.c.bf16 %v213_v10, %v212_v8  ;;  %v3815_v24 = vpack.c.bf16 %v231_v22, %v230_v21  ;;  %v216_v25 = vld [vmem:[%s3765_s18 + $0x49] sm:$0xff]  ;;  %v217_v26 = vld [vmem:[%s3765_s18 + $0x51] sm:$0xff] }
  0x1a   : > { %v3792_v14 = vpack.c.bf16 %v229_v12, %v228_v11  ;;  %v209_v15 = vld [vmem:[%s4756_s1] sm:$0x3]  ;;  %v2931_v16 = vld [vmem:[%s4756_s1 + $0x4] sm:$0x3]  ;;  %3415 = vmatprep.mubr.msk.bf16.mxu1 %vm260_vm1, %v3784_v9  ;;  %v232_v27 = vld [vmem:[%s3765_s18 + $0x109] sm:$0xff]  ;;  %v3830_v33 = vpack.c.bf16 %v217_v26, %v216_v25 }
  0x1b   : > { %3707 = vmatprep.subr.msk.bf16.mxu1 %vm309_vm0, %v209_v15  ;;  %v523_v18 = vsel %vm309_vm0, %v209_v15, 0  ;;  %v785_v19 = vsel %vm309_vm0, %v2931_v16, 0  ;;  %3400 = vmatmul.mubr.msk.bf16.vlgmr.msra.gmra.mxu0 %vm260_vm1, %v3790_v13  ;;  %v233_v28 = vld [vmem:[%s3765_s18 + $0x111] sm:$0xff]  ;;  %v218_v29 = vld [vmem:[%s3765_s18 + $0x61] sm:$0xff]  ;;  %v219_v30 = vld [vmem:[%s3765_s18 + $0x69] sm:$0xff] }
  0x1c   : > { %3416 = vmatmul.mubr.msk.bf16.vlgmr.msra.gmra.mxu1 %vm260_vm1, %v3792_v14  ;;  %3708 = vmatprep.subr.msk.bf16.mxu0 %vm309_vm0, %v2931_v16  ;;  %v234_v31 = vld [vmem:[%s3765_s18 + $0x121] sm:$0xff]  ;;  %v235_v32 = vld [vmem:[%s3765_s18 + $0x129] sm:$0xff]  ;;  %v3832_v34 = vpack.c.bf16 %v233_v28, %v232_v27  ;;  %v3834_v35 = vpack.c.bf16 %v219_v30, %v218_v29  ;;  %v220_v37 = vld [vmem:[%s3765_s18 + $0x79] sm:$0xff] }
  0x1d   : > { %3432 = vmatpush3.bf16.msra.mxu1 %v523_v18  ;;  %3466 = vmatpush3.bf16.msra.mxu0 %v785_v19  ;;  %v3836_v36 = vpack.c.bf16 %v235_v32, %v234_v31  ;;  %v221_v38 = vld [vmem:[%s3765_s18 + $0x81] sm:$0xff]  ;;  %v236_v39 = vld [vmem:[%s3765_s18 + $0x139] sm:$0xff]  ;;  %v222_v41 = vld [vmem:[%s3765_s18 + $0x91] sm:$0xff] }
  0x1e   : > { %3403 = vmatprep.mubr.msk.bf16.mxu0 %vm260_vm1, %v3813_v23  ;;  %3419 = vmatprep.mubr.msk.bf16.mxu1 %vm260_vm1, %v3815_v24  ;;  %v237_v40 = vld [vmem:[%s3765_s18 + $0x141] sm:$0xff]  ;;  %v223_v44 = vld [vmem:[%s3765_s18 + $0x99] sm:$0xff]  ;;  %v238_v45 = vld [vmem:[%s3765_s18 + $0x151] sm:$0xff]  ;;  %v3862_v47 = vpack.c.bf16 %v221_v38, %v220_v37 }
  0x1f   : > { %v2980_v42 = vld [vmem:[%s4756_s1 + $0x6] sm:$0x3]  ;;  %v3029_v43 = vld [vmem:[%s4756_s1 + $0x8] sm:$0x3]  ;;  %v239_v46 = vld [vmem:[%s3765_s18 + $0x159] sm:$0xff]  ;;  %v3864_v48 = vpack.c.bf16 %v237_v40, %v236_v39  ;;  %v3866_v49 = vpack.c.bf16 %v223_v44, %v222_v41 }
  0x20   : > { %3709 = vmatprep.subr.msk.bf16.mxu1 %vm309_vm0, %v2980_v42  ;;  %3710 = vmatprep.subr.msk.bf16.mxu0 %vm309_vm0, %v3029_v43  ;;  %v3868_v50 = vpack.c.bf16 %v239_v46, %v238_v45  ;;  %v224_v51 = vld [vmem:[%s3765_s18 + $0xa9] sm:$0xff]  ;;  %v225_v52 = vld [vmem:[%s3765_s18 + $0xb1] sm:$0xff]  ;;  %v161_v55 = vld [vmem:[%s3765_s18] sm:$0xff]  ;;  %v1080_v10 = vsel %vm309_vm0, %v2980_v42, 0  ;;  %v1374_v11 = vsel %vm309_vm0, %v3029_v43, 0 }
  0x21   : > { %v240_v53 = vld [vmem:[%s3765_s18 + $0x169] sm:$0xff]  ;;  %v241_v54 = vld [vmem:[%s3765_s18 + $0x171] sm:$0xff]  ;;  %v3886_v59 = vpack.c.bf16 %v225_v52, %v224_v51  ;;  %v164_v0 = vld [vmem:[%s3765_s18 + $0x20] sm:$0xff] }
  0x22   : > { %v162_v56 = vld [vmem:[%s3765_s18 + $0x8] sm:$0xff]  ;;  %v3888_v60 = vpack.c.bf16 %v241_v54, %v240_v53  ;;  %v163_v63 = vld [vmem:[%s3765_s18 + $0x18] sm:$0xff]  ;;  %v165_v3 = vld [vmem:[%s3765_s18 + $0x30] sm:$0xff] }
  0x23   : > { %3404 = vmatmul.mubr.msk.bf16.gmra.mxu0 %vm260_vm1, %v3830_v33  ;;  %v686_v57 = vld [vmem:[%s3765_s18 + $0x2] sm:$0xff]  ;;  %v687_v58 = vld [vmem:[%s3765_s18 + $0xa] sm:$0xff]  ;;  %v193_v61 = vpack.c.bf16 %v162_v56, %v161_v55  ;;  %v688_v1 = vld [vmem:[%s3765_s18 + $0x1a] sm:$0xff]  ;;  %v3904_v7 = vpack.c.bf16 %v164_v0, %v163_v63 }
  0x24   : > { %3420 = vmatmul.mubr.msk.bf16.gmra.mxu1 %vm260_vm1, %v3832_v34  ;;  %3407 = vmatprep.mubr.msk.bf16.mxu0 %vm260_vm1, %v3834_v35  ;;  %v718_v62 = vpack.c.bf16 %v687_v58, %v686_v57  ;;  %v689_v2 = vld [vmem:[%s3765_s18 + $0x22] sm:$0xff]  ;;  %v166_v4 = vld [vmem:[%s3765_s18 + $0x38] sm:$0xff]  ;;  %v168_v17 = vld [vmem:[%s3765_s18 + $0x50] sm:$0xff] }
  0x25   : > { %3423 = vmatprep.mubr.msk.bf16.mxu1 %vm260_vm1, %v3836_v36  ;;  %v690_v5 = vld [vmem:[%s3765_s18 + $0x32] sm:$0xff]  ;;  %v691_v6 = vld [vmem:[%s3765_s18 + $0x3a] sm:$0xff]  ;;  %v3906_v8 = vpack.c.bf16 %v689_v2, %v688_v1  ;;  %v3910_v12 = vpack.c.bf16 %v166_v4, %v165_v3  ;;  %v167_v16 = vld [vmem:[%s3765_s18 + $0x48] sm:$0xff] }
  0x26   : > { %v3912_v15 = vpack.c.bf16 %v691_v6, %v690_v5  ;;  %v3923_v18 = vld [vmem:[%s4756_s1 + $0xa] sm:$0x3]  ;;  %v3928_v19 = vld [vmem:[%s4756_s1 + $0xc] sm:$0x3]  ;;  %v693_v21 = vld [vmem:[%s3765_s18 + $0x52] sm:$0xff]  ;;  %v3944_v28 = vpack.c.bf16 %v168_v17, %v167_v16 }
  0x27   : > { %v692_v20 = vld [vmem:[%s3765_s18 + $0x4a] sm:$0xff]  ;;  %v169_v22 = vld [vmem:[%s3765_s18 + $0x60] sm:$0xff]  ;;  %v171_v32 = vld [vmem:[%s3765_s18 + $0x78] sm:$0xff] }
  0x28   : > { %v170_v25 = vld [vmem:[%s3765_s18 + $0x68] sm:$0xff]  ;;  %v3946_v29 = vpack.c.bf16 %v693_v21, %v692_v20  ;;  %v172_v37 = vld [vmem:[%s3765_s18 + $0x80] sm:$0xff]  ;;  %v173_v40 = vld [vmem:[%s3765_s18 + $0x90] sm:$0xff] }
  0x29   : > { %v694_v26 = vld [vmem:[%s3765_s18 + $0x62] sm:$0xff]  ;;  %v695_v27 = vld [vmem:[%s3765_s18 + $0x6a] sm:$0xff]  ;;  %v3948_v30 = vpack.c.bf16 %v170_v25, %v169_v22  ;;  %v696_v38 = vld [vmem:[%s3765_s18 + $0x7a] sm:$0xff]  ;;  %v3968_v44 = vpack.c.bf16 %v172_v37, %v171_v32 }
  0x2a   : > { %v3950_v31 = vpack.c.bf16 %v695_v27, %v694_v26  ;;  %v697_v39 = vld [vmem:[%s3765_s18 + $0x82] sm:$0xff]  ;;  %v174_v41 = vld [vmem:[%s3765_s18 + $0x98] sm:$0xff]  ;;  %v176_v53 = vld [vmem:[%s3765_s18 + $0xb0] sm:$0xff] }
  0x2b   : > { %3408 = vmatmul.mubr.msk.bf16.gmra.mxu0 %vm260_vm1, %v3862_v47  ;;  %v698_v42 = vld [vmem:[%s3765_s18 + $0x92] sm:$0xff]  ;;  %v699_v43 = vld [vmem:[%s3765_s18 + $0x9a] sm:$0xff]  ;;  %v3970_v45 = vpack.c.bf16 %v697_v39, %v696_v38  ;;  %v3972_v46 = vpack.c.bf16 %v174_v41, %v173_v40  ;;  %v175_v52 = vld [vmem:[%s3765_s18 + $0xa8] sm:$0xff] }
  0x2c   : > { %3424 = vmatmul.mubr.msk.bf16.gmra.mxu1 %vm260_vm1, %v3864_v48  ;;  %3411 = vmatprep.mubr.msk.bf16.mxu0 %vm260_vm1, %v3866_v49  ;;  %v3974_v51 = vpack.c.bf16 %v699_v43, %v698_v42  ;;  %v700_v54 = vld [vmem:[%s3765_s18 + $0xaa] sm:$0xff]  ;;  %v701_v55 = vld [vmem:[%s3765_s18 + $0xb2] sm:$0xff]  ;;  %v177_v56 = vld [vmem:[%s3765_s18 + $0xc0] sm:$0xff] }
  0x2d   : > { %3427 = vmatprep.mubr.msk.bf16.mxu1 %vm260_vm1, %v3868_v50  ;;  %v178_v57 = vld [vmem:[%s3765_s18 + $0xc8] sm:$0xff]  ;;  %v3994_v63 = vpack.c.bf16 %v701_v55, %v700_v54  ;;  %v179_v2 = vld [vmem:[%s3765_s18 + $0xd8] sm:$0xff]  ;;  %v180_v3 = vld [vmem:[%s3765_s18 + $0xe0] sm:$0xff] }
  0x2e   : > { %v702_v58 = vld [vmem:[%s3765_s18 + $0xc2] sm:$0xff]  ;;  %v3996_v0 = vpack.c.bf16 %v178_v57, %v177_v56  ;;  %v704_v4 = vld [vmem:[%s3765_s18 + $0xda] sm:$0xff]  ;;  %v181_v6 = vld [vmem:[%s3765_s18 + $0xf0] sm:$0xff]  ;;  %v4016_v17 = vpack.c.bf16 %v180_v3, %v179_v2 }
  0x2f   : > { %v705_v5 = vld [vmem:[%s3765_s18 + $0xe2] sm:$0xff]  ;;  %v707_v16 = vld [vmem:[%s3765_s18 + $0xfa] sm:$0xff]  ;;  %v184_v26 = vld [vmem:[%s3765_s18 + $0x110] sm:$0xff] }
  0x30   : > { %v4018_v20 = vpack.c.bf16 %v705_v5, %v704_v4  ;;  %v183_v25 = vld [vmem:[%s3765_s18 + $0x108] sm:$0xff]  ;;  %v709_v32 = vld [vmem:[%s3765_s18 + $0x112] sm:$0xff]  ;;  %v185_v37 = vld [vmem:[%s3765_s18 + $0x120] sm:$0xff] }
  0x31   : > { %v708_v27 = vld [vmem:[%s3765_s18 + $0x10a] sm:$0xff]  ;;  %v710_v39 = vld [vmem:[%s3765_s18 + $0x122] sm:$0xff]  ;;  %v4040_v41 = vpack.c.bf16 %v184_v26, %v183_v25  ;;  %v712_v55 = vld [vmem:[%s3765_s18 + $0x13a] sm:$0xff] }
  0x32   : > { %v186_v38 = vld [vmem:[%s3765_s18 + $0x128] sm:$0xff]  ;;  %v4042_v42 = vpack.c.bf16 %v709_v32, %v708_v27  ;;  %v188_v54 = vld [vmem:[%s3765_s18 + $0x140] sm:$0xff]  ;;  %v189_v57 = vld [vmem:[%s3765_s18 + $0x150] sm:$0xff]  ;;  %v1668_v32 = vsel %vm309_vm0, %v3923_v18, 0 }
  0x33   : > { %3412 = vmatmul.mubr.msk.bf16.gmra.mxu0 %vm260_vm1, %v3886_v59  ;;  %v711_v40 = vld [vmem:[%s3765_s18 + $0x12a] sm:$0xff]  ;;  %v4044_v43 = vpack.c.bf16 %v186_v38, %v185_v37  ;;  %v713_v56 = vld [vmem:[%s3765_s18 + $0x142] sm:$0xff]  ;;  %v715_v2 = vld [vmem:[%s3765_s18 + $0x15a] sm:$0xff]  ;;  %v1963_v37 = vsel %vm309_vm0, %v3928_v19, 0 }
  0x34   : > { %3428 = vmatmul.mubr.msk.bf16.gmra.mxu1 %vm260_vm1, %v3888_v60  ;;  %3467 = vmatprep.mubr.msk.bf16.mxu0 %vm260_vm1, %v718_v62  ;;  %v3992_v62 = vpack.c.bf16 %v176_v53, %v175_v52  ;;  %v4046_v52 = vpack.c.bf16 %v711_v40, %v710_v39  ;;  %v187_v53 = vld [vmem:[%s3765_s18 + $0x138] sm:$0xff]  ;;  %v4066_v4 = vpack.c.bf16 %v713_v56, %v712_v55  ;;  %v3176_v38 = vld [vmem:[%s4756_s1 + $0xe] sm:$0x3]  ;;  %v3126_v55 = vld [vmem:[%s3765_s18 + $0x1a0] sm:$0xff] }
  0x35   : > { %3433 = vmatprep.mubr.msk.bf16.mxu1 %vm260_vm1, %v193_v61  ;;  %v703_v61 = vld [vmem:[%s3765_s18 + $0xca] sm:$0xff]  ;;  %v4064_v3 = vpack.c.bf16 %v188_v54, %v187_v53  ;;  %v717_v25 = vld [vmem:[%s3765_s18 + $0x172] sm:$0xff] }
  0x36   : > { %v3998_v1 = vpack.c.bf16 %v703_v61, %v702_v58  ;;  %v190_v58 = vld [vmem:[%s3765_s18 + $0x158] sm:$0xff]  ;;  %v3077_v53 = vld [vmem:[%s3765_s18 + $0x18a] sm:$0xff] }
  0x37   : > { %v714_v61 = vld [vmem:[%s3765_s18 + $0x152] sm:$0xff]  ;;  %v4068_v5 = vpack.c.bf16 %v190_v58, %v189_v57 }
  0x38   : > { %v3125_v54 = vld [vmem:[%s3765_s18 + $0x198] sm:$0xff] }
  0x3b   : > { %3468 = vmatmul.mubr.msk.bf16.vlgmr.msra.gmra.mxu0 %vm260_vm1, %v3906_v8 }
  0x3c   : > { %3434 = vmatmul.mubr.msk.bf16.vlgmr.msra.gmra.mxu1 %vm260_vm1, %v3904_v7  ;;  %3534 = vmatpush3.bf16.msra.mxu0 %v1374_v11  ;;  %v706_v11 = vld [vmem:[%s3765_s18 + $0xf2] sm:$0xff] }
  0x3d   : > { %3500 = vmatpush3.bf16.msra.mxu1 %v1080_v10  ;;  %3437 = vmatprep.mubr.msk.bf16.mxu1 %vm260_vm1, %v3910_v12  ;;  %v182_v10 = vld [vmem:[%s3765_s18 + $0xf8] sm:$0xff]  ;;  %v4022_v22 = vpack.c.bf16 %v707_v16, %v706_v11  ;;  %v192_v11 = vld [vmem:[%s3765_s18 + $0x170] sm:$0xff] }
  0x3e   : > { %3471 = vmatprep.mubr.msk.bf16.mxu0 %vm260_vm1, %v3912_v15  ;;  %3711 = vmatprep.subr.msk.bf16.mxu1 %vm309_vm0, %v3923_v18  ;;  %v4020_v21 = vpack.c.bf16 %v182_v10, %v181_v6  ;;  %v4070_v6 = vpack.c.bf16 %v715_v2, %v714_v61  ;;  %v191_v10 = vld [vmem:[%s3765_s18 + $0x168] sm:$0xff] }
  0x3f   : > { %3712 = vmatprep.subr.msk.bf16.mxu0 %vm309_vm0, %v3928_v19  ;;  %v716_v16 = vld [vmem:[%s3765_s18 + $0x16a] sm:$0xff]  ;;  %v4084_v26 = vpack.c.bf16 %v192_v11, %v191_v10 }
  0x40   : > { %v4086_v27 = vpack.c.bf16 %v717_v25, %v716_v16 }
  0x43   : > { %3472 = vmatmul.mubr.msk.bf16.gmra.mxu0 %vm260_vm1, %v3946_v29 }
  0x44   : > { %3438 = vmatmul.mubr.msk.bf16.gmra.mxu1 %vm260_vm1, %v3944_v28  ;;  %3475 = vmatprep.mubr.msk.bf16.mxu0 %vm260_vm1, %v3950_v31 }
  0x45   : > { %3441 = vmatprep.mubr.msk.bf16.mxu1 %vm260_vm1, %v3948_v30 }
  0x4b   : > { %3476 = vmatmul.mubr.msk.bf16.gmra.mxu0 %vm260_vm1, %v3970_v45 }
  0x4c   : > { %3442 = vmatmul.mubr.msk.bf16.gmra.mxu1 %vm260_vm1, %v3968_v44  ;;  %3479 = vmatprep.mubr.msk.bf16.mxu0 %vm260_vm1, %v3974_v51 }
  0x4d   : > { %3445 = vmatprep.mubr.msk.bf16.mxu1 %vm260_vm1, %v3972_v46 }
  0x53   : > { %3480 = vmatmul.mubr.msk.bf16.gmra.mxu0 %vm260_vm1, %v3994_v63 }
  0x54   : > { %3446 = vmatmul.mubr.msk.bf16.gmra.mxu1 %vm260_vm1, %v3992_v62  ;;  %3483 = vmatprep.mubr.msk.bf16.mxu0 %vm260_vm1, %v3998_v1 }
  0x55   : > { %3449 = vmatprep.mubr.msk.bf16.mxu1 %vm260_vm1, %v3996_v0 }
  0x5b   : > { %3484 = vmatmul.mubr.msk.bf16.gmra.mxu0 %vm260_vm1, %v4018_v20 }
  0x5c   : > { %3450 = vmatmul.mubr.msk.bf16.gmra.mxu1 %vm260_vm1, %v4016_v17  ;;  %3487 = vmatprep.mubr.msk.bf16.mxu0 %vm260_vm1, %v4022_v22 }
  0x5d   : > { %3453 = vmatprep.mubr.msk.bf16.mxu1 %vm260_vm1, %v4020_v21 }
  0x63   : > { %3488 = vmatmul.mubr.msk.bf16.gmra.mxu0 %vm260_vm1, %v4042_v42 }
  0x64   : > { %3454 = vmatmul.mubr.msk.bf16.gmra.mxu1 %vm260_vm1, %v4040_v41  ;;  %3491 = vmatprep.mubr.msk.bf16.mxu0 %vm260_vm1, %v4046_v52 }
  0x65   : > { %3457 = vmatprep.mubr.msk.bf16.mxu1 %vm260_vm1, %v4044_v43 }
  0x6b   : > { %3492 = vmatmul.mubr.msk.bf16.gmra.mxu0 %vm260_vm1, %v4066_v4 }
  0x6c   : > { %3458 = vmatmul.mubr.msk.bf16.gmra.mxu1 %vm260_vm1, %v4064_v3  ;;  %3495 = vmatprep.mubr.msk.bf16.mxu0 %vm260_vm1, %v4070_v6 }
  0x6d   : > { %3461 = vmatprep.mubr.msk.bf16.mxu1 %vm260_vm1, %v4068_v5 }
  0x73   : > { %3496 = vmatmul.mubr.msk.bf16.gmra.mxu0 %vm260_vm1, %v4086_v27 }
  0x74   : > { %3462 = vmatmul.mubr.msk.bf16.gmra.mxu1 %vm260_vm1, %v4084_v26  ;;  %3535 = vmatprep.mubr.msk.bf16.mxu0 %vm260_vm1, %v3790_v13  ;;  %v3225_v13 = vld [vmem:[%s4756_s1 + $0x10] sm:$0x3] }
  0x75   : > { %3501 = vmatprep.mubr.msk.bf16.mxu1 %vm260_vm1, %v3904_v7 }
  0x7b   : > { %3536 = vmatmul.mubr.msk.bf16.vlgmr.msra.gmra.mxu0 %vm260_vm1, %v3813_v23 }
  0x7c   : > { %3502 = vmatmul.mubr.msk.bf16.vlgmr.msra.gmra.mxu1 %vm260_vm1, %v3910_v12  ;;  %3602 = vmatpush3.bf16.msra.mxu0 %v1963_v37 }
  0x7d   : > { %3568 = vmatpush3.bf16.msra.mxu1 %v1668_v32  ;;  %3505 = vmatprep.mubr.msk.bf16.mxu1 %vm260_vm1, %v3944_v28 }
  0x7e   : > { %3539 = vmatprep.mubr.msk.bf16.mxu0 %vm260_vm1, %v3830_v33  ;;  %3713 = vmatprep.subr.msk.bf16.mxu1 %vm309_vm0, %v3176_v38 }
  0x7f   : > { %3714 = vmatprep.subr.msk.bf16.mxu0 %vm309_vm0, %v3225_v13 }
  0x83   : > { %3540 = vmatmul.mubr.msk.bf16.gmra.mxu0 %vm260_vm1, %v3834_v35 }
  0x84   : > { %3506 = vmatmul.mubr.msk.bf16.gmra.mxu1 %vm260_vm1, %v3948_v30  ;;  %3543 = vmatprep.mubr.msk.bf16.mxu0 %vm260_vm1, %v3862_v47 }
  0x85   : > { %3509 = vmatprep.mubr.msk.bf16.mxu1 %vm260_vm1, %v3968_v44 }
  0x8b   : > { %3544 = vmatmul.mubr.msk.bf16.gmra.mxu0 %vm260_vm1, %v3866_v49 }
  0x8c   : > { %3510 = vmatmul.mubr.msk.bf16.gmra.mxu1 %vm260_vm1, %v3972_v46  ;;  %3547 = vmatprep.mubr.msk.bf16.mxu0 %vm260_vm1, %v3886_v59 }
  0x8d   : > { %3513 = vmatprep.mubr.msk.bf16.mxu1 %vm260_vm1, %v3992_v62 }
  0x93   : > { %3548 = vmatmul.mubr.msk.bf16.gmra.mxu0 %vm260_vm1, %v3784_v9  ;;  %v2978_v9 = vld [vmem:[%s3765_s18 + $0x180] sm:$0xff] }
  0x94   : > { %3514 = vmatmul.mubr.msk.bf16.gmra.mxu1 %vm260_vm1, %v3996_v0  ;;  %3551 = vmatprep.mubr.msk.bf16.mxu0 %vm260_vm1, %v3792_v14  ;;  %v2979_v14 = vld [vmem:[%s3765_s18 + $0x188] sm:$0xff] }
  0x95   : > { %3517 = vmatprep.mubr.msk.bf16.mxu1 %vm260_vm1, %v4016_v17 }
  0x9b   : > { %3552 = vmatmul.mubr.msk.bf16.gmra.mxu0 %vm260_vm1, %v3815_v24  ;;  %v3027_v24 = vld [vmem:[%s3765_s18 + $0x181] sm:$0xff] }
  0x9c   : > { %3518 = vmatmul.mubr.msk.bf16.gmra.mxu1 %vm260_vm1, %v4020_v21  ;;  %3555 = vmatprep.mubr.msk.bf16.mxu0 %vm260_vm1, %v3832_v34  ;;  %v3028_v34 = vld [vmem:[%s3765_s18 + $0x189] sm:$0xff] }
  0x9d   : > { %3521 = vmatprep.mubr.msk.bf16.mxu1 %vm260_vm1, %v4040_v41  ;;  %v4168_v49 = vpack.c.bf16 %v3028_v34, %v3027_v24  ;;  %v3152_v24 = vld [vmem:[%s3765_s18 + $0x91] sm:$0xff]  ;;  %v3153_v34 = vld [vmem:[%s3765_s18 + $0x99] sm:$0xff] }
  0xa3   : > { %3556 = vmatmul.mubr.msk.bf16.gmra.mxu0 %vm260_vm1, %v3836_v36  ;;  %v1028_v36 = vpack.c.bf16 %v2979_v14, %v2978_v9 }
  0xa4   : > { %3522 = vmatmul.mubr.msk.bf16.gmra.mxu1 %vm260_vm1, %v4044_v43  ;;  %3559 = vmatprep.mubr.msk.bf16.mxu0 %vm260_vm1, %v3864_v48  ;;  %v2257_v48 = vsel %vm309_vm0, %v3176_v38, 0 }
  0xa5   : > { %3525 = vmatprep.mubr.msk.bf16.mxu1 %vm260_vm1, %v4064_v3 }
  0xab   : > { %3560 = vmatmul.mubr.msk.bf16.gmra.mxu0 %vm260_vm1, %v3868_v50  ;;  %v2551_v50 = vsel %vm309_vm0, %v3225_v13, 0 }
  0xac   : > { %3526 = vmatmul.mubr.msk.bf16.gmra.mxu1 %vm260_vm1, %v4068_v5  ;;  %3563 = vmatprep.mubr.msk.bf16.mxu0 %vm260_vm1, %v3888_v60 }
  0xad   : > { %3529 = vmatprep.mubr.msk.bf16.mxu1 %vm260_vm1, %v4084_v26 }
  0xb3   : > { %3564 = vmatmul.mubr.msk.bf16.gmra.mxu0 %vm260_vm1, %v4168_v49 }
  0xb4   : > { %3530 = vmatmul.mubr.msk.bf16.gmra.mxu1 %vm260_vm1, %v1028_v36  ;;  %3603 = vmatprep.mubr.msk.bf16.mxu0 %vm260_vm1, %v3910_v12 }
  0xb5   : > { %3569 = vmatprep.mubr.msk.bf16.mxu1 %vm260_vm1, %v3906_v8 }
  0xbb   : > { %3604 = vmatmul.mubr.msk.bf16.vlgmr.msra.gmra.mxu0 %vm260_vm1, %v3944_v28 }
  0xbc   : > { %3570 = vmatmul.mubr.msk.bf16.vlgmr.msra.gmra.mxu1 %vm260_vm1, %v3912_v15  ;;  %3670 = vmatpush3.bf16.msra.mxu0 %v2551_v50 }
  0xbd   : > { %3636 = vmatpush3.bf16.msra.mxu1 %v2257_v48  ;;  %3573 = vmatprep.mubr.msk.bf16.mxu1 %vm260_vm1, %v3946_v29 }
  0xbe   : > { %3607 = vmatprep.mubr.msk.bf16.mxu0 %vm260_vm1, %v3948_v30 }
  0xc3   : > { %3608 = vmatmul.mubr.msk.bf16.gmra.mxu0 %vm260_vm1, %v3968_v44 }
  0xc4   : > { %3574 = vmatmul.mubr.msk.bf16.gmra.mxu1 %vm260_vm1, %v3950_v31  ;;  %3611 = vmatprep.mubr.msk.bf16.mxu0 %vm260_vm1, %v3972_v46 }
  0xc5   : > { %3577 = vmatprep.mubr.msk.bf16.mxu1 %vm260_vm1, %v3970_v45 }
  0xcb   : > { %3612 = vmatmul.mubr.msk.bf16.gmra.mxu0 %vm260_vm1, %v3992_v62 }
  0xcc   : > { %3578 = vmatmul.mubr.msk.bf16.gmra.mxu1 %vm260_vm1, %v3974_v51  ;;  %3615 = vmatprep.mubr.msk.bf16.mxu0 %vm260_vm1, %v3996_v0 }
  0xcd   : > { %3581 = vmatprep.mubr.msk.bf16.mxu1 %vm260_vm1, %v3994_v63 }
  0xd3   : > { %3616 = vmatmul.mubr.msk.bf16.gmra.mxu0 %vm260_vm1, %v4016_v17 }
  0xd4   : > { %3582 = vmatmul.mubr.msk.bf16.gmra.mxu1 %vm260_vm1, %v3998_v1  ;;  %3619 = vmatprep.mubr.msk.bf16.mxu0 %vm260_vm1, %v4020_v21 }
  0xd5   : > { %3585 = vmatprep.mubr.msk.bf16.mxu1 %vm260_vm1, %v4018_v20 }
  0xdb   : > { %v3401_v59 = vpop.f32.mrf.mxu0  ;;  %3620 = vmatmul.mubr.msk.bf16.gmra.mxu0 %vm260_vm1, %v4040_v41 }
  0xdc   : > { %v4211_v60 = vpop.f32.mrf.mxu1  ;;  %3586 = vmatmul.mubr.msk.bf16.gmra.mxu1 %vm260_vm1, %v4022_v22  ;;  %3623 = vmatprep.mubr.msk.bf16.mxu0 %vm260_vm1, %v4044_v43  ;;  %v3076_v43 = vld [vmem:[%s3765_s18 + $0x182] sm:$0xff] }
  0xdd   : > { %3589 = vmatprep.mubr.msk.bf16.mxu1 %vm260_vm1, %v4042_v42  ;;  %v347_v7 = vpop.f32.mrf.mxu0  ;;  %v4276_v2 = vpack.c.bf16 %v3077_v53, %v3076_v43 }
  0xde   : > { %v4221_v8 = vpop.f32.mrf.mxu1 }
  0xdf   : > { %v3402_v12 = vpop.f32.mrf.mxu0 }
  0xe0   : > { %v4223_v18 = vpop.f32.mrf.mxu1 }
  0xe1   : > { %v4225_v19 = vpop.f32.mrf.mxu0 }
  0xe2   : > { %v4227_v28 = vpop.f32.mrf.mxu1 }
  0xe3   : > { %v4229_v30 = vpop.f32.mrf.mxu0  ;;  %3624 = vmatmul.mubr.msk.bf16.gmra.mxu0 %vm260_vm1, %v4064_v3  ;;  %v1911_v3 = vpack.c.bf16 %v3126_v55, %v3125_v54 }
  0xe4   : > { %v4231_v44 = vpop.f32.mrf.mxu1  ;;  %3590 = vmatmul.mubr.msk.bf16.gmra.mxu1 %vm260_vm1, %v4046_v52  ;;  %3627 = vmatprep.mubr.msk.bf16.mxu0 %vm260_vm1, %v4068_v5 }
  0xe5   : > { %3593 = vmatprep.mubr.msk.bf16.mxu1 %vm260_vm1, %v4066_v4  ;;  %v4241_v46 = vpop.f32.mrf.mxu0 }
  0xe6   : > { %v4243_v62 = vpop.f32.mrf.mxu1 }
  0xe7   : > { %v4245_v0 = vpop.f32.mrf.mxu0 }
  0xe8   : > { %v4247_v17 = vpop.f32.mrf.mxu1 }
  0xe9   : > { %v4249_v21 = vpop.f32.mrf.mxu0 }
  0xea   : > { %v4251_v39 = vpop.f32.mrf.mxu1 }
  0xeb   : > { %v4253_v40 = vpop.f32.mrf.mxu0  ;;  %3628 = vmatmul.mubr.msk.bf16.gmra.mxu0 %vm260_vm1, %v4084_v26 }
  0xec   : > { %v4255_v41 = vpop.f32.mrf.mxu1  ;;  %3594 = vmatmul.mubr.msk.bf16.gmra.mxu1 %vm260_vm1, %v4070_v6  ;;  %3631 = vmatprep.mubr.msk.bf16.mxu0 %vm260_vm1, %v1028_v36 }
  0xed   : > { %3597 = vmatprep.mubr.msk.bf16.mxu1 %vm260_vm1, %v4086_v27  ;;  %v4268_v56 = vpop.f32.mrf.mxu0 }
  0xee   : > { %v4270_v57 = vpop.f32.mrf.mxu1 }
  0xef   : > { %v4272_v58 = vpop.f32.mrf.mxu0 }
  0xf0   : > { %v4274_v61 = vpop.f32.mrf.mxu1 }
  0xf1   : > { %v4278_v5 = vpop.f32.mrf.mxu0 }
  0xf2   : > { %v4280_v10 = vpop.f32.mrf.mxu1 }
  0xf3   : > { %v4282_v11 = vpop.f32.mrf.mxu0  ;;  %3632 = vmatmul.mubr.msk.bf16.gmra.mxu0 %vm260_vm1, %v1911_v3 }
  0xf4   : > { %v4284_v16 = vpop.f32.mrf.mxu1  ;;  %3598 = vmatmul.mubr.msk.bf16.gmra.mxu1 %vm260_vm1, %v4276_v2  ;;  %3671 = vmatprep.mubr.msk.bf16.mxu0 %vm260_vm1, %v3912_v15 }
  0xf5   : > { %3637 = vmatprep.mubr.msk.bf16.mxu1 %vm260_vm1, %v3813_v23  ;;  %v4293_v25 = vpop.f32.mrf.mxu0 }
  0xf6   : > { %v4295_v26 = vpop.f32.mrf.mxu1 }
  0xf7   : > { %v4297_v27 = vpop.f32.mrf.mxu0 }
  0xf8   : > { %v4299_v32 = vpop.f32.mrf.mxu1 }
  0xf9   : > { %v4301_v37 = vpop.f32.mrf.mxu0 }
  0xfa   : > { %v4303_v38 = vpop.f32.mrf.mxu1 }
  0xfb   : > { %v3469_v9 = vpop.f32.mrf.mxu0  ;;  %3672 = vmatmul.mubr.msk.bf16.vlgmr.msra.gmra.mxu0 %vm260_vm1, %v3946_v29 }
  0xfc   : > { %v3435_v13 = vpop.f32.mrf.mxu1  ;;  %3638 = vmatmul.mubr.msk.bf16.vlgmr.msra.gmra.mxu1 %vm260_vm1, %v3830_v33  ;;  %3675 = vmatprep.mubr.msk.bf16.mxu0 %vm260_vm1, %v3950_v31 }
  0xfd   : > { %v568_v23 = vadd.f32 %v3435_v13, %v3401_v59  ;;  %3641 = vmatprep.mubr.msk.bf16.mxu1 %vm260_vm1, %v3834_v35  ;;  %v821_v14 = vpop.f32.mrf.mxu0  ;;  %v2194_v59 = vpack.c.bf16 %v3153_v34, %v3152_v24  ;;  %v3154_v13 = vld [vmem:[%s3765_s18 + $0xa9] sm:$0xff] }
  0xfe   : > { %v559_v15 = vpop.f32.mrf.mxu1 }
  0xff   : > { %v4315_v36 = vadd.f32 %v3469_v9, %v568_v23  ;;  %v560_v48 = vadd.f32 %v559_v15, %v347_v7  ;;  %v3470_v43 = vpop.f32.mrf.mxu0  ;;  %v3155_v9 = vld [vmem:[%s3765_s18 + $0xb1] sm:$0xff]  ;;  %v3156_v15 = vld [vmem:[%s3765_s18 + $0xc1] sm:$0xff] }
 0x100   : > { %v3436_v50 = vpop.f32.mrf.mxu1 }
 0x101   : > { %v4317_v33 = vadd.f32 %v821_v14, %v560_v48  ;;  %v571_v29 = vadd.f32 %v3436_v50, %v3402_v12  ;;  %v824_v35 = vpop.f32.mrf.mxu0  ;;  %v3157_v14 = vld [vmem:[%s3765_s18 + $0xc9] sm:$0xff]  ;;  %v2195_v48 = vpack.c.bf16 %v3155_v9, %v3154_v13  ;;  %v3160_v13 = vld [vmem:[%s3765_s18 + $0xf1] sm:$0xff]  ;;  %v3161_v9 = vld [vmem:[%s3765_s18 + $0xf9] sm:$0xff] }
 0x102   : > { %v562_v53 = vpop.f32.mrf.mxu1 }
 0x103   : > { %v4319_v31 = vadd.f32 %v3470_v43, %v571_v29  ;;  %v563_v54 = vadd.f32 %v562_v53, %v4225_v19  ;;  %v3473_v3 = vpop.f32.mrf.mxu0  ;;  %3676 = vmatmul.mubr.msk.bf16.gmra.mxu0 %vm260_vm1, %v3970_v45 }
 0x104   : > { %v3439_v55 = vpop.f32.mrf.mxu1  ;;  %3642 = vmatmul.mubr.msk.bf16.gmra.mxu1 %vm260_vm1, %v3862_v47  ;;  %3679 = vmatprep.mubr.msk.bf16.mxu0 %vm260_vm1, %v3974_v51  ;;  %v2196_v51 = vpack.c.bf16 %v3157_v14, %v3156_v15 }
 0x105   : > { %v4326_v7 = vadd.f32 %v824_v35, %v563_v54  ;;  %v584_v12 = vadd.f32 %v3439_v55, %v4229_v30  ;;  %3645 = vmatprep.mubr.msk.bf16.mxu1 %vm260_vm1, %v2194_v59  ;;  %v837_v23 = vpop.f32.mrf.mxu0  ;;  %v3158_v55 = vld [vmem:[%s3765_s18 + $0xd9] sm:$0xff] }
 0x106   : > { %v575_v19 = vpop.f32.mrf.mxu1 }
 0x107   : > { %v4336_v24 = vadd.f32 %v3473_v3, %v584_v12  ;;  %v576_v47 = vadd.f32 %v575_v19, %v4241_v46  ;;  %v3474_v34 = vpop.f32.mrf.mxu0  ;;  %v3159_v3 = vld [vmem:[%s3765_s18 + $0xe1] sm:$0xff] }
 0x108   : > { %v3440_v45 = vpop.f32.mrf.mxu1  ;;  %v2197_v14 = vpack.c.bf16 %v3159_v3, %v3158_v55 }
 0x109   : > { %v4339_v30 = vadd.f32 %v837_v23, %v576_v47  ;;  %v587_v50 = vadd.f32 %v3440_v45, %v4245_v0  ;;  %v840_v29 = vpop.f32.mrf.mxu0 }
 0x10a   : > { %v578_v43 = vpop.f32.mrf.mxu1 }
 0x10b   : > { %v4342_v59 = vadd.f32 %v3474_v34, %v587_v50  ;;  %v579_v53 = vadd.f32 %v578_v43, %v4249_v21  ;;  %v3477_v46 = vpop.f32.mrf.mxu0  ;;  %3680 = vmatmul.mubr.msk.bf16.gmra.mxu0 %vm260_vm1, %v3994_v63 }
 0x10c   : > { %v3443_v35 = vpop.f32.mrf.mxu1  ;;  %3646 = vmatmul.mubr.msk.bf16.gmra.mxu1 %vm260_vm1, %v2195_v48  ;;  %3683 = vmatprep.mubr.msk.bf16.mxu0 %vm260_vm1, %v3998_v1  ;;  %v2198_v1 = vpack.c.bf16 %v3161_v9, %v3160_v13 }
 0x10d   : > { %v4348_v54 = vadd.f32 %v840_v29, %v579_v53  ;;  %v600_v0 = vadd.f32 %v3443_v35, %v4253_v40  ;;  %3649 = vmatprep.mubr.msk.bf16.mxu1 %vm260_vm1, %v2196_v51  ;;  %v853_v21 = vpop.f32.mrf.mxu0  ;;  %v3162_v29 = vld [vmem:[%s3765_s18 + $0x109] sm:$0xff]  ;;  %v3163_v53 = vld [vmem:[%s3765_s18 + $0x111] sm:$0xff] }
 0x10e   : > { %v591_v12 = vpop.f32.mrf.mxu1 }
 0x10f   : > { %v4358_v19 = vadd.f32 %v3477_v46, %v600_v0  ;;  %v592_v23 = vadd.f32 %v591_v12, %v4268_v56  ;;  %v3478_v15 = vpop.f32.mrf.mxu0  ;;  %v3164_v46 = vld [vmem:[%s3765_s18 + $0x121] sm:$0xff]  ;;  %v3165_v0 = vld [vmem:[%s3765_s18 + $0x129] sm:$0xff] }
 0x110   : > { %v3444_v63 = vpop.f32.mrf.mxu1 }
 0x111   : > { %v4361_v40 = vadd.f32 %v853_v21, %v592_v23  ;;  %v603_v47 = vadd.f32 %v3444_v63, %v4272_v58  ;;  %v856_v34 = vpop.f32.mrf.mxu0  ;;  %v2199_v21 = vpack.c.bf16 %v3163_v53, %v3162_v29 }
 0x112   : > { %v594_v45 = vpop.f32.mrf.mxu1 }
 0x113   : > { %v4364_v48 = vadd.f32 %v3478_v15, %v603_v47  ;;  %v595_v50 = vadd.f32 %v594_v45, %v4278_v5  ;;  %v3481_v56 = vpop.f32.mrf.mxu0  ;;  %3684 = vmatmul.mubr.msk.bf16.gmra.mxu0 %vm260_vm1, %v4018_v20  ;;  %v3167_v45 = vld [vmem:[%s3765_s18 + $0x141] sm:$0xff] }
 0x114   : > { %v3447_v51 = vpop.f32.mrf.mxu1  ;;  %3650 = vmatmul.mubr.msk.bf16.gmra.mxu1 %vm260_vm1, %v2197_v14  ;;  %3687 = vmatprep.mubr.msk.bf16.mxu0 %vm260_vm1, %v4022_v22  ;;  %v2200_v22 = vpack.c.bf16 %v3165_v0, %v3164_v46 }
 0x115   : > { %v4370_v43 = vadd.f32 %v856_v34, %v595_v50  ;;  %v616_v58 = vadd.f32 %v3447_v51, %v4282_v11  ;;  %3653 = vmatprep.mubr.msk.bf16.mxu1 %vm260_vm1, %v2198_v1  ;;  %v869_v5 = vpop.f32.mrf.mxu0  ;;  %v3166_v1 = vld [vmem:[%s3765_s18 + $0x139] sm:$0xff]  ;;  %v3168_v50 = vld [vmem:[%s3765_s18 + $0x151] sm:$0xff] }
 0x116   : > { %v607_v35 = vpop.f32.mrf.mxu1  ;;  %v3169_v51 = vld [vmem:[%s3765_s18 + $0x159] sm:$0xff]  ;;  %v2201_v53 = vpack.c.bf16 %v3167_v45, %v3166_v1 }
 0x117   : > { %v4380_v55 = vadd.f32 %v3481_v56, %v616_v58  ;;  %v608_v3 = vadd.f32 %v607_v35, %v4293_v25  ;;  %v3482_v12 = vpop.f32.mrf.mxu0 }
 0x118   : > { %v3448_v20 = vpop.f32.mrf.mxu1 }
 0x119   : > { %v4383_v11 = vadd.f32 %v869_v5, %v608_v3  ;;  %v619_v13 = vadd.f32 %v3448_v20, %v4297_v27  ;;  %v872_v23 = vpop.f32.mrf.mxu0 }
 0x11a   : > { %v610_v9 = vpop.f32.mrf.mxu1 }
 0x11b   : > { %v4386_v63 = vadd.f32 %v3482_v12, %v619_v13  ;;  %v611_v15 = vadd.f32 %v610_v9, %v4301_v37  ;;  %v3485_v25 = vpop.f32.mrf.mxu0  ;;  %3688 = vmatmul.mubr.msk.bf16.gmra.mxu0 %vm260_vm1, %v4042_v42  ;;  %v3171_v13 = vld [vmem:[%s3765_s18 + $0x171] sm:$0xff] }
 0x11c   : > { %v3451_v14 = vpop.f32.mrf.mxu1  ;;  %3654 = vmatmul.mubr.msk.bf16.gmra.mxu1 %vm260_vm1, %v2199_v21  ;;  %3691 = vmatprep.mubr.msk.bf16.mxu0 %vm260_vm1, %v4046_v52  ;;  %v2202_v52 = vpack.c.bf16 %v3169_v51, %v3168_v50 }
 0x11d   : > { %v4392_v47 = vadd.f32 %v872_v23, %v611_v15  ;;  %v632_v27 = vadd.f32 %v3451_v14, %v4211_v60  ;;  %3657 = vmatprep.mubr.msk.bf16.mxu1 %vm260_vm1, %v2200_v22  ;;  %v885_v37 = vpop.f32.mrf.mxu0  ;;  %v3219_v22 = vld [vmem:[%s3765_s18 + $0x16a] sm:$0xff] }
 0x11e   : > { %v623_v34 = vpop.f32.mrf.mxu1 }
 0x11f   : > { %v4402_v56 = vadd.f32 %v3485_v25, %v632_v27  ;;  %v624_v42 = vadd.f32 %v623_v34, %v4221_v8  ;;  %v3486_v29 = vpop.f32.mrf.mxu0  ;;  %v3170_v8 = vld [vmem:[%s3765_s18 + $0x169] sm:$0xff] }
 0x120   : > { %v3452_v58 = vpop.f32.mrf.mxu1  ;;  %v2203_v27 = vpack.c.bf16 %v3171_v13, %v3170_v8 }
 0x121   : > { %v4405_v60 = vadd.f32 %v885_v37, %v624_v42  ;;  %v635_v35 = vadd.f32 %v3452_v58, %v4223_v18  ;;  %v888_v46 = vpop.f32.mrf.mxu0 }
 0x122   : > { %v626_v5 = vpop.f32.mrf.mxu1 }
 0x123   : > { %v4408_v0 = vadd.f32 %v3486_v29, %v635_v35  ;;  %v627_v3 = vadd.f32 %v626_v5, %v4227_v28  ;;  %v3489_v12 = vpop.f32.mrf.mxu0  ;;  %3692 = vmatmul.mubr.msk.bf16.gmra.mxu0 %vm260_vm1, %v4066_v4  ;;  %v3220_v28 = vld [vmem:[%s3765_s18 + $0x172] sm:$0xff] }
 0x124   : > { %v3455_v20 = vpop.f32.mrf.mxu1  ;;  %3658 = vmatmul.mubr.msk.bf16.gmra.mxu1 %vm260_vm1, %v2201_v53  ;;  %3695 = vmatprep.mubr.msk.bf16.mxu0 %vm260_vm1, %v4070_v6  ;;  %v2497_v1 = vpack.c.bf16 %v3220_v28, %v3219_v22  ;;  %v3223_v53 = vld [vmem:[%s3765_s18 + $0x19a] sm:$0xff] }
 0x125   : > { %v4415_v21 = vadd.f32 %v888_v46, %v627_v3  ;;  %v648_v18 = vadd.f32 %v3455_v20, %v4231_v44  ;;  %3661 = vmatprep.mubr.msk.bf16.mxu1 %vm260_vm1, %v2202_v52  ;;  %v901_v23 = vpop.f32.mrf.mxu0 }
 0x126   : > { %v639_v9 = vpop.f32.mrf.mxu1 }
 0x127   : > { %v4424_v15 = vadd.f32 %v3489_v12, %v648_v18  ;;  %v640_v4 = vadd.f32 %v639_v9, %v4243_v62  ;;  %v3490_v25 = vpop.f32.mrf.mxu0  ;;  %v3174_v62 = vld [vmem:[%s3765_s18 + $0x199] sm:$0xff] }
 0x128   : > { %v3456_v14 = vpop.f32.mrf.mxu1 }
 0x129   : > { %v4427_v44 = vadd.f32 %v901_v23, %v640_v4  ;;  %v651_v6 = vadd.f32 %v3456_v14, %v4247_v17  ;;  %v904_v34 = vpop.f32.mrf.mxu0  ;;  %v3175_v17 = vld [vmem:[%s3765_s18 + $0x1a1] sm:$0xff] }
 0x12a   : > { %v642_v45 = vpop.f32.mrf.mxu1  ;;  %v2205_v12 = vpack.c.bf16 %v3175_v17, %v3174_v62 }
 0x12b   : > { %v4430_v37 = vadd.f32 %v3490_v25, %v651_v6  ;;  %v643_v50 = vadd.f32 %v642_v45, %v4251_v39  ;;  %v3493_v42 = vpop.f32.mrf.mxu0  ;;  %3696 = vmatmul.mubr.msk.bf16.gmra.mxu0 %vm260_vm1, %v2497_v1  ;;  %v3224_v39 = vld [vmem:[%s3765_s18 + $0x1a2] sm:$0xff] }
 0x12c   : > { %v3459_v51 = vpop.f32.mrf.mxu1  ;;  %3662 = vmatmul.mubr.msk.bf16.gmra.mxu1 %vm260_vm1, %v2203_v27  ;;  %3699 = vmatprep.mubr.msk.bf16.mxu0 %vm260_vm1, %v4276_v2  ;;  %v2499_v8 = vpack.c.bf16 %v3224_v39, %v3223_v53 }
 0x12d   : > { %v4436_v58 = vadd.f32 %v904_v34, %v643_v50  ;;  %v664_v29 = vadd.f32 %v3459_v51, %v4255_v41  ;;  %3665 = vmatprep.mubr.msk.bf16.mxu1 %vm260_vm1, %v4168_v49  ;;  %v917_v52 = vpop.f32.mrf.mxu0 }
 0x12e   : > { %v655_v35 = vpop.f32.mrf.mxu1 }
 0x12f   : > { %v4446_v5 = vadd.f32 %v3493_v42, %v664_v29  ;;  %v656_v46 = vadd.f32 %v655_v35, %v4270_v57  ;;  %v3494_v20 = vpop.f32.mrf.mxu0 }
 0x130   : > { %v3460_v3 = vpop.f32.mrf.mxu1 }
 0x131   : > { %v4449_v41 = vadd.f32 %v917_v52, %v656_v46  ;;  %v667_v49 = vadd.f32 %v3460_v3, %v4274_v61  ;;  %v920_v13 = vpop.f32.mrf.mxu0 }
 0x132   : > { %v658_v18 = vpop.f32.mrf.mxu1 }
 0x133   : > { %v4452_v2 = vadd.f32 %v3494_v20, %v667_v49  ;;  %v659_v22 = vadd.f32 %v658_v18, %v4280_v10  ;;  %v3497_v9 = vpop.f32.mrf.mxu0  ;;  %3700 = vmatmul.mubr.msk.bf16.gmra.mxu0 %vm260_vm1, %v2499_v8 }
 0x134   : > { %v3463_v28 = vpop.f32.mrf.mxu1  ;;  %3666 = vmatmul.mubr.msk.bf16.gmra.mxu1 %vm260_vm1, %v2205_v12 }
 0x135   : > { %v4457_v57 = vadd.f32 %v920_v13, %v659_v22  ;;  %v680_v23 = vadd.f32 %v3463_v28, %v4284_v16  ;;  %v933_v14 = vpop.f32.mrf.mxu0 }
 0x136   : > { %v671_v4 = vpop.f32.mrf.mxu1 }
 0x137   : > { %v4460_v25 = vadd.f32 %v3497_v9, %v680_v23  ;;  %v672_v61 = vadd.f32 %v671_v4, %v4295_v26  ;;  %v3498_v1 = vpop.f32.mrf.mxu0 }
 0x138   : > { %v3464_v27 = vpop.f32.mrf.mxu1 }
 0x139   : > { %v4463_v6 = vadd.f32 %v933_v14, %v672_v61  ;;  %v683_v10 = vadd.f32 %v3464_v27, %v4299_v32  ;;  %v936_v34 = vpop.f32.mrf.mxu0 }
 0x13a   : > { %v674_v45 = vpop.f32.mrf.mxu1 }
 0x13b   : > { %v4466_v50 = vadd.f32 %v3498_v1, %v683_v10  ;;  %v675_v51 = vadd.f32 %v674_v45, %v4303_v38  ;;  %v3537_v16 = vpop.f32.mrf.mxu0 }
 0x13c   : > { %v3503_v42 = vpop.f32.mrf.mxu1 }
 0x13d   : > { %v4469_v62 = vadd.f32 %v936_v34, %v675_v51  ;;  %v1245_v29 = vadd.f32 %v3503_v42, %v4315_v36  ;;  %v1410_v26 = vpop.f32.mrf.mxu0 }
 0x13e   : > { %v1116_v17 = vpop.f32.mrf.mxu1 }
 0x13f   : > { %v4472_v53 = vadd.f32 %v3537_v16, %v1245_v29  ;;  %v1243_v39 = vadd.f32 %v1116_v17, %v4317_v33  ;;  %v3538_v32 = vpop.f32.mrf.mxu0 }
 0x140   : > { %v3504_v35 = vpop.f32.mrf.mxu1 }
 0x141   : > { %v4475_v52 = vadd.f32 %v1410_v26, %v1243_v39  ;;  %v1246_v46 = vadd.f32 %v3504_v35, %v4319_v31  ;;  %v1413_v38 = vpop.f32.mrf.mxu0 }
 0x142   : > { %v1119_v3 = vpop.f32.mrf.mxu1 }
 0x143   : > { %v4478_v20 = vadd.f32 %v3538_v32, %v1246_v46  ;;  %v1244_v12 = vadd.f32 %v1119_v3, %v4326_v7  ;;  %v3541_v36 = vpop.f32.mrf.mxu0 }
 0x144   : > { %v3507_v8 = vpop.f32.mrf.mxu1 }
 0x145   : > { %v4481_v49 = vadd.f32 %v1413_v38, %v1244_v12  ;;  %v1249_v18 = vadd.f32 %v3507_v8, %v4336_v24  ;;  %v1426_v33 = vpop.f32.mrf.mxu0 }
 0x146   : > { %v1132_v13 = vpop.f32.mrf.mxu1 }
 0x147   : > { %v4484_v22 = vadd.f32 %v3541_v36, %v1249_v18  ;;  %v1247_v28 = vadd.f32 %v1132_v13, %v4339_v30  ;;  %v3542_v31 = vpop.f32.mrf.mxu0 }
 0x148   : > { %v3508_v9 = vpop.f32.mrf.mxu1 }
 0x149   : > { %v4487_v23 = vadd.f32 %v1426_v33, %v1247_v28  ;;  %v1250_v4 = vadd.f32 %v3508_v9, %v4342_v59  ;;  %v1429_v7 = vpop.f32.mrf.mxu0 }
 0x14a   : > { %v1135_v14 = vpop.f32.mrf.mxu1 }
 0x14b   : > { %v4490_v61 = vadd.f32 %v3542_v31, %v1250_v4  ;;  %v1248_v27 = vadd.f32 %v1135_v14, %v4348_v54  ;;  %v3545_v24 = vpop.f32.mrf.mxu0 }
 0x14c   : > { %v3511_v1 = vpop.f32.mrf.mxu1 }
 0x14d   : > { %v4493_v10 = vadd.f32 %v1429_v7, %v1248_v27  ;;  %v1253_v45 = vadd.f32 %v3511_v1, %v4358_v19  ;;  %v1442_v30 = vpop.f32.mrf.mxu0 }
 0x14e   : > { %v1148_v34 = vpop.f32.mrf.mxu1 }
 0x14f   : > { %v4496_v51 = vadd.f32 %v3545_v24, %v1253_v45  ;;  %v1251_v42 = vadd.f32 %v1148_v34, %v4361_v40  ;;  %v3546_v59 = vpop.f32.mrf.mxu0 }
 0x150   : > { %v3512_v16 = vpop.f32.mrf.mxu1 }
 0x151   : > { %v4499_v29 = vadd.f32 %v1442_v30, %v1251_v42  ;;  %v1254_v17 = vadd.f32 %v3512_v16, %v4364_v48  ;;  %v1445_v54 = vpop.f32.mrf.mxu0 }
 0x152   : > { %v1151_v26 = vpop.f32.mrf.mxu1 }
 0x153   : > { %v4502_v39 = vadd.f32 %v3546_v59, %v1254_v17  ;;  %v1252_v35 = vadd.f32 %v1151_v26, %v4370_v43  ;;  %v3549_v19 = vpop.f32.mrf.mxu0 }
 0x154   : > { %v3515_v32 = vpop.f32.mrf.mxu1 }
 0x155   : > { %v4505_v46 = vadd.f32 %v1445_v54, %v1252_v35  ;;  %v1257_v3 = vadd.f32 %v3515_v32, %v4380_v55  ;;  %v1458_v40 = vpop.f32.mrf.mxu0 }
 0x156   : > { %v1164_v38 = vpop.f32.mrf.mxu1 }
 0x157   : > { %v4508_v12 = vadd.f32 %v3549_v19, %v1257_v3  ;;  %v1255_v8 = vadd.f32 %v1164_v38, %v4383_v11  ;;  %v3550_v48 = vpop.f32.mrf.mxu0 }
 0x158   : > { %v3516_v36 = vpop.f32.mrf.mxu1 }
 0x159   : > { %v4511_v18 = vadd.f32 %v1458_v40, %v1255_v8  ;;  %v1258_v13 = vadd.f32 %v3516_v36, %v4386_v63  ;;  %v1461_v43 = vpop.f32.mrf.mxu0 }
 0x15a   : > { %v1167_v33 = vpop.f32.mrf.mxu1 }
 0x15b   : > { %v4514_v28 = vadd.f32 %v3550_v48, %v1258_v13  ;;  %v1256_v9 = vadd.f32 %v1167_v33, %v4392_v47  ;;  %v3553_v55 = vpop.f32.mrf.mxu0 }
 0x15c   : > { %v3519_v31 = vpop.f32.mrf.mxu1 }
 0x15d   : > { %v4517_v4 = vadd.f32 %v1461_v43, %v1256_v9  ;;  %v1261_v14 = vadd.f32 %v3519_v31, %v4402_v56  ;;  %v1474_v11 = vpop.f32.mrf.mxu0 }
 0x15e   : > { %v1180_v7 = vpop.f32.mrf.mxu1 }
 0x15f   : > { %v4520_v27 = vadd.f32 %v3553_v55, %v1261_v14  ;;  %v1259_v1 = vadd.f32 %v1180_v7, %v4405_v60  ;;  %v3554_v63 = vpop.f32.mrf.mxu0 }
 0x160   : > { %v3520_v24 = vpop.f32.mrf.mxu1 }
 0x161   : > { %v4523_v45 = vadd.f32 %v1474_v11, %v1259_v1  ;;  %v1262_v34 = vadd.f32 %v3520_v24, %v4408_v0  ;;  %v1477_v47 = vpop.f32.mrf.mxu0 }
 0x162   : > { %v1183_v30 = vpop.f32.mrf.mxu1 }
 0x163   : > { %v4526_v42 = vadd.f32 %v3554_v63, %v1262_v34  ;;  %v1260_v16 = vadd.f32 %v1183_v30, %v4415_v21  ;;  %v3557_v56 = vpop.f32.mrf.mxu0 }
 0x164   : > { %v3523_v59 = vpop.f32.mrf.mxu1 }
 0x165   : > { %v4529_v17 = vadd.f32 %v1477_v47, %v1260_v16  ;;  %v1265_v26 = vadd.f32 %v3523_v59, %v4424_v15  ;;  %v1490_v60 = vpop.f32.mrf.mxu0 }
 0x166   : > { %v1196_v54 = vpop.f32.mrf.mxu1 }
 0x167   : > { %v4532_v35 = vadd.f32 %v3557_v56, %v1265_v26  ;;  %v1263_v32 = vadd.f32 %v1196_v54, %v4427_v44  ;;  %v3558_v0 = vpop.f32.mrf.mxu0 }
 0x168   : > { %v3524_v19 = vpop.f32.mrf.mxu1 }
 0x169   : > { %v4535_v3 = vadd.f32 %v1490_v60, %v1263_v32  ;;  %v1266_v38 = vadd.f32 %v3524_v19, %v4430_v37  ;;  %v1493_v21 = vpop.f32.mrf.mxu0 }
 0x16a   : > { %v1199_v40 = vpop.f32.mrf.mxu1 }
 0x16b   : > { %v4538_v8 = vadd.f32 %v3558_v0, %v1266_v38  ;;  %v1264_v36 = vadd.f32 %v1199_v40, %v4436_v58  ;;  %v3561_v15 = vpop.f32.mrf.mxu0 }
 0x16c   : > { %v3527_v48 = vpop.f32.mrf.mxu1 }
 0x16d   : > { %v4541_v13 = vadd.f32 %v1493_v21, %v1264_v36  ;;  %v1269_v33 = vadd.f32 %v3527_v48, %v4446_v5  ;;  %v1506_v44 = vpop.f32.mrf.mxu0 }
 0x16e   : > { %v1212_v43 = vpop.f32.mrf.mxu1 }
 0x16f   : > { %v4544_v9 = vadd.f32 %v3561_v15, %v1269_v33  ;;  %v1267_v31 = vadd.f32 %v1212_v43, %v4449_v41  ;;  %v3562_v37 = vpop.f32.mrf.mxu0 }
 0x170   : > { %v3528_v55 = vpop.f32.mrf.mxu1 }
 0x171   : > { %v4547_v14 = vadd.f32 %v1506_v44, %v1267_v31  ;;  %v1270_v7 = vadd.f32 %v3528_v55, %v4452_v2  ;;  %v1509_v58 = vpop.f32.mrf.mxu0 }
 0x172   : > { %v1215_v11 = vpop.f32.mrf.mxu1 }
 0x173   : > { %v4550_v1 = vadd.f32 %v3562_v37, %v1270_v7  ;;  %v1268_v24 = vadd.f32 %v1215_v11, %v4457_v57  ;;  %v3565_v5 = vpop.f32.mrf.mxu0 }
 0x174   : > { %v3531_v63 = vpop.f32.mrf.mxu1 }
 0x175   : > { %v4553_v34 = vadd.f32 %v1509_v58, %v1268_v24  ;;  %v1273_v30 = vadd.f32 %v3531_v63, %v4460_v25  ;;  %v1522_v41 = vpop.f32.mrf.mxu0 }
 0x176   : > { %v1228_v47 = vpop.f32.mrf.mxu1 }
 0x177   : > { %4759 = vst [vmem:[#allocation2_spill] sm:$0xff] %v4553_v34  ;;  %v4556_v16 = vadd.f32 %v3565_v5, %v1273_v30  ;;  %v1271_v59 = vadd.f32 %v1228_v47, %v4463_v6  ;;  %v3566_v2 = vpop.f32.mrf.mxu0 }
 0x178   : > { %v3532_v56 = vpop.f32.mrf.mxu1 }
 0x179   : > { %v4559_v26 = vadd.f32 %v1522_v41, %v1271_v59  ;;  %v1274_v54 = vadd.f32 %v3532_v56, %v4466_v50  ;;  %v1525_v57 = vpop.f32.mrf.mxu0 }
 0x17a   : > { %v1231_v60 = vpop.f32.mrf.mxu1 }
 0x17b   : > { %4760 = vst [vmem:[#allocation3_spill] sm:$0xff] %v4559_v26  ;;  %v4562_v32 = vadd.f32 %v3566_v2, %v1274_v54  ;;  %v1272_v19 = vadd.f32 %v1231_v60, %v4469_v62  ;;  %v3605_v25 = vpop.f32.mrf.mxu0 }
 0x17c   : > { %v3571_v0 = vpop.f32.mrf.mxu1 }
 0x17d   : > { %v4565_v38 = vadd.f32 %v1525_v57, %v1272_v19  ;;  %v1833_v40 = vadd.f32 %v3571_v0, %v4472_v53  ;;  %v1999_v6 = vpop.f32.mrf.mxu0 }
 0x17e   : > { %v1704_v21 = vpop.f32.mrf.mxu1 }
 0x17f   : > { %4761 = vst [vmem:[#allocation4_spill] sm:$0xff] %v4565_v38  ;;  %v4568_v36 = vadd.f32 %v3605_v25, %v1833_v40  ;;  %v1831_v48 = vadd.f32 %v1704_v21, %v4475_v52  ;;  %v3606_v50 = vpop.f32.mrf.mxu0 }
 0x180   : > { %v3572_v15 = vpop.f32.mrf.mxu1 }
 0x181   : > { %v4571_v33 = vadd.f32 %v1999_v6, %v1831_v48  ;;  %v1834_v43 = vadd.f32 %v3572_v15, %v4478_v20  ;;  %v4576_v62 = vpop.f32.mrf.mxu0 }
 0x182   : > { %v4574_v44 = vpop.f32.mrf.mxu1 }
 0x183   : > { %v4578_v31 = vadd.f32 %v3606_v50, %v1834_v43  ;;  %v3609_v53 = vpop.f32.mrf.mxu0 }
 0x184   : > { %v3575_v55 = vpop.f32.mrf.mxu1 }
 0x185   : > { %v1837_v37 = vadd.f32 %v3575_v55, %v4484_v22  ;;  %v4583_v11 = vpop.f32.mrf.mxu0 }
 0x186   : > { %v4581_v7 = vpop.f32.mrf.mxu1 }
 0x187   : > { %v4585_v52 = vadd.f32 %v3609_v53, %v1837_v37  ;;  %v3610_v24 = vpop.f32.mrf.mxu0 }
 0x188   : > { %v3576_v58 = vpop.f32.mrf.mxu1 }
 0x189   : > { %v1838_v20 = vadd.f32 %v3576_v58, %v4490_v61  ;;  %v4590_v5 = vpop.f32.mrf.mxu0 }
 0x18a   : > { %v4588_v63 = vpop.f32.mrf.mxu1 }
 0x18b   : > { %v4592_v30 = vadd.f32 %v3610_v24, %v1838_v20  ;;  %v3613_v41 = vpop.f32.mrf.mxu0 }
 0x18c   : > { %v3579_v47 = vpop.f32.mrf.mxu1 }
 0x18d   : > { %v1841_v22 = vadd.f32 %v3579_v47, %v4496_v51  ;;  %v4597_v56 = vpop.f32.mrf.mxu0 }
 0x18e   : > { %v4595_v59 = vpop.f32.mrf.mxu1 }
 0x18f   : > { %v4599_v2 = vadd.f32 %v3613_v41, %v1841_v22  ;;  %v3614_v60 = vpop.f32.mrf.mxu0 }
 0x190   : > { %v3580_v54 = vpop.f32.mrf.mxu1 }
 0x191   : > { %v1842_v61 = vadd.f32 %v3580_v54, %v4502_v39  ;;  %v4604_v19 = vpop.f32.mrf.mxu0 }
 0x192   : > { %v4602_v57 = vpop.f32.mrf.mxu1 }
 0x193   : > { %v4606_v0 = vadd.f32 %v3614_v60, %v1842_v61  ;;  %v3617_v40 = vpop.f32.mrf.mxu0 }
 0x194   : > { %v3583_v25 = vpop.f32.mrf.mxu1 }
 0x195   : > { %v1845_v51 = vadd.f32 %v3583_v25, %v4508_v12  ;;  %v4611_v6 = vpop.f32.mrf.mxu0 }
 0x196   : > { %v4609_v21 = vpop.f32.mrf.mxu1 }
 0x197   : > { %v4613_v48 = vadd.f32 %v3617_v40, %v1845_v51  ;;  %v3618_v50 = vpop.f32.mrf.mxu0 }
 0x198   : > { %v3584_v15 = vpop.f32.mrf.mxu1 }
 0x199   : > { %v1846_v39 = vadd.f32 %v3584_v15, %v4514_v28  ;;  %v4618_v55 = vpop.f32.mrf.mxu0 }
 0x19a   : > { %v4616_v43 = vpop.f32.mrf.mxu1 }
 0x19b   : > { %v4620_v53 = vadd.f32 %v3618_v50, %v1846_v39  ;;  %v3621_v58 = vpop.f32.mrf.mxu0 }
 0x19c   : > { %v3587_v37 = vpop.f32.mrf.mxu1 }
 0x19d   : > { %v1849_v12 = vadd.f32 %v3587_v37, %v4520_v27  ;;  %v4625_v20 = vpop.f32.mrf.mxu0 }
 0x19e   : > { %v4623_v24 = vpop.f32.mrf.mxu1 }
 0x19f   : > { %v4627_v47 = vadd.f32 %v3621_v58, %v1849_v12  ;;  %v3622_v22 = vpop.f32.mrf.mxu0 }
 0x1a0   : > { %v3588_v41 = vpop.f32.mrf.mxu1 }
 0x1a1   : > { %v1850_v28 = vadd.f32 %v3588_v41, %v4526_v42  ;;  %v4632_v60 = vpop.f32.mrf.mxu0 }
 0x1a2   : > { %v4630_v54 = vpop.f32.mrf.mxu1 }
 0x1a3   : > { %v4634_v61 = vadd.f32 %v3622_v22, %v1850_v28  ;;  %v3625_v40 = vpop.f32.mrf.mxu0 }
 0x1a4   : > { %v3591_v25 = vpop.f32.mrf.mxu1 }
 0x1a5   : > { %v1853_v27 = vadd.f32 %v3591_v25, %v4532_v35  ;;  %v4639_v15 = vpop.f32.mrf.mxu0 }
 0x1a6   : > { %v4637_v51 = vpop.f32.mrf.mxu1 }
 0x1a7   : > { %v4641_v50 = vadd.f32 %v3625_v40, %v1853_v27  ;;  %v3626_v37 = vpop.f32.mrf.mxu0 }
 0x1a8   : > { %v3592_v39 = vpop.f32.mrf.mxu1 }
 0x1a9   : > { %4762 = vst [vmem:[#allocation5_spill] sm:$0xff] %v4641_v50  ;;  %v1854_v42 = vadd.f32 %v3592_v39, %v4538_v8  ;;  %v4646_v12 = vpop.f32.mrf.mxu0 }
 0x1aa   : > { %v4644_v58 = vpop.f32.mrf.mxu1 }
 0x1ab   : > { %v4648_v41 = vadd.f32 %v3626_v37, %v1854_v42  ;;  %v3629_v28 = vpop.f32.mrf.mxu0 }
 0x1ac   : > { %v3595_v22 = vpop.f32.mrf.mxu1 }
 0x1ad   : > { %4763 = vst [vmem:[#allocation6_spill] sm:$0xff] %v4648_v41  ;;  %v1857_v35 = vadd.f32 %v3595_v22, %v4544_v9  ;;  %v4653_v38 = vpop.f32.mrf.mxu0 }
 0x1ae   : > { %v4651_v25 = vpop.f32.mrf.mxu1  ;;  %4765 = vst [vmem:[#allocation8_spill] sm:$0xff] %v4653_v38 }
 0x1af   : > { %4764 = vst [vmem:[#allocation7_spill] sm:$0xff] %v4651_v25  ;;  %v4655_v40 = vadd.f32 %v3629_v28, %v1857_v35  ;;  %v3630_v26 = vpop.f32.mrf.mxu0 }
 0x1b0   : > { %v3596_v27 = vpop.f32.mrf.mxu1 }
 0x1b1   : > { %4766 = vst [vmem:[#allocation9_spill] sm:$0xff] %v4655_v40  ;;  %v1858_v8 = vadd.f32 %v3596_v27, %v4550_v1  ;;  %v4660_v34 = vpop.f32.mrf.mxu0 }
 0x1b2   : > { %v4658_v39 = vpop.f32.mrf.mxu1  ;;  %4768 = vst [vmem:[#allocation11_spill] sm:$0xff] %v4660_v34 }
 0x1b3   : > { %4767 = vst [vmem:[#allocation10_spill] sm:$0xff] %v4658_v39  ;;  %v4662_v37 = vadd.f32 %v3630_v26, %v1858_v8  ;;  %v3633_v41 = vpop.f32.mrf.mxu0 }
 0x1b4   : > { %v3599_v42 = vpop.f32.mrf.mxu1 }
 0x1b5   : > { %4769 = vst [vmem:[#allocation12_spill] sm:$0xff] %v4662_v37  ;;  %v1861_v9 = vadd.f32 %v3599_v42, %v4556_v16  ;;  %v4667_v50 = vpop.f32.mrf.mxu0  ;;  %v1832_v16 = vadd.f32 %v4574_v44, %v4481_v49  ;;  %v1836_v49 = vadd.f32 %v4588_v63, %v4493_v10 }
 0x1b6   : > { %v4665_v22 = vpop.f32.mrf.mxu1  ;;  %4771 = vst [vmem:[#allocation14_spill] sm:$0xff] %v4667_v50 }
 0x1b7   : > { %4770 = vst [vmem:[#allocation13_spill] sm:$0xff] %v4665_v22  ;;  %v4669_v28 = vadd.f32 %v3633_v41, %v1861_v9  ;;  %v3634_v40 = vpop.f32.mrf.mxu0  ;;  %v2127_v50 = vadd.f32 %v4576_v62, %v1832_v16 }
 0x1b8   : > { %v3600_v35 = vpop.f32.mrf.mxu1 }
 0x1b9   : > { %4772 = vst [vmem:[#allocation15_spill] sm:$0xff] %v4669_v28  ;;  %v1862_v1 = vadd.f32 %v3600_v35, %v4562_v32  ;;  %v4674_v39 = vpop.f32.mrf.mxu0  ;;  %v1835_v32 = vadd.f32 %v4581_v7, %v4487_v23 }
 0x1ba   : > { %v4672_v27 = vpop.f32.mrf.mxu1  ;;  %4774 = vst [vmem:[#allocation17_spill] sm:$0xff] %v4674_v39 }
 0x1bb   : > { %4773 = vst [vmem:[#allocation16_spill] sm:$0xff] %v4672_v27  ;;  %v4676_v26 = vadd.f32 %v3634_v40, %v1862_v1  ;;  %v3673_v37 = vpop.f32.mrf.mxu0 }
 0x1bc   : > { %v3639_v8 = vpop.f32.mrf.mxu1 }
 0x1bd   : > { %4775 = vst [vmem:[#allocation18_spill] sm:$0xff] %v4676_v26  ;;  %v2587_v22 = vpop.f32.mrf.mxu0  ;;  %v2422_v35 = vadd.f32 %v3639_v8, %v4568_v36 }
 0x1be   : > { %v2293_v42 = vpop.f32.mrf.mxu1 }
 0x1bf   : > { %v2420_v41 = vadd.f32 %v2293_v42, %v4571_v33  ;;  %v3674_v28 = vpop.f32.mrf.mxu0  ;;  %v2130_v42 = vadd.f32 %v4583_v11, %v1835_v32  ;;  %v2716_v34 = vadd.f32 %v3673_v37, %v2422_v35  ;;  %v1839_v11 = vadd.f32 %v4595_v59, %v4499_v29 }
 0x1c0   : > { %v3640_v9 = vpop.f32.mrf.mxu1 }
 0x1c1   : > { %v2423_v40 = vadd.f32 %v3640_v9, %v4578_v31  ;;  %v2590_v26 = vpop.f32.mrf.mxu0  ;;  %v2714_v39 = vadd.f32 %v2587_v22, %v2420_v41  ;;  %v2131_v9 = vadd.f32 %v4590_v5, %v1836_v49  ;;  %v2789_v10 = vmul.f32 %v2716_v34, %v2716_v34 }
 0x1c2   : > { %v2296_v1 = vpop.f32.mrf.mxu1  ;;  %v2134_v29 = vadd.f32 %v4597_v56, %v1839_v11 }
 0x1c3   : > { %v2421_v27 = vadd.f32 %v2296_v1, %v2127_v50  ;;  %v3677_v33 = vpop.f32.mrf.mxu0  ;;  %v2717_v16 = vadd.f32 %v3674_v28, %v2423_v40  ;;  %v2787_v7 = vmul.f32 %v2714_v39, %v2714_v39 }
 0x1c4   : > { %v3643_v44 = vpop.f32.mrf.mxu1 }
 0x1c5   : > { %v2715_v62 = vadd.f32 %v2590_v26, %v2421_v27  ;;  %v2603_v23 = vpop.f32.mrf.mxu0  ;;  %v2426_v50 = vadd.f32 %v3643_v44, %v4585_v52  ;;  %v2790_v37 = vmul.f32 %v2717_v16, %v2717_v16  ;;  %v1840_v52 = vadd.f32 %v4602_v57, %v4505_v46 }
 0x1c6   : > { %v2309_v38 = vpop.f32.mrf.mxu1 }
 0x1c7   : > { %v2747_v36 = vadd.f32 %v2715_v62, %v2714_v39  ;;  %v2788_v8 = vmul.f32 %v2715_v62, %v2715_v62  ;;  %v2424_v31 = vadd.f32 %v2309_v38, %v2130_v42  ;;  %v3678_v41 = vpop.f32.mrf.mxu0  ;;  %v2720_v5 = vadd.f32 %v3677_v33, %v2426_v50 }
 0x1c8   : > { %v3644_v22 = vpop.f32.mrf.mxu1 }
 0x1c9   : > { %v2748_v63 = vadd.f32 %v2747_v36, %v2716_v34  ;;  %v2819_v1 = vadd.f32 %v2788_v8, %v2787_v7  ;;  %v2718_v25 = vadd.f32 %v2603_v23, %v2424_v31  ;;  %v2606_v27 = vpop.f32.mrf.mxu0  ;;  %v2427_v38 = vadd.f32 %v3644_v22, %v4592_v30 }
 0x1ca   : > { %v2312_v28 = vpop.f32.mrf.mxu1  ;;  %v1843_v30 = vadd.f32 %v4609_v21, %v4511_v18  ;;  %v2793_v31 = vmul.f32 %v2720_v5, %v2720_v5 }
 0x1cb   : > { %v2820_v26 = vadd.f32 %v2819_v1, %v2789_v10  ;;  %v2749_v39 = vadd.f32 %v2748_v63, %v2717_v16  ;;  %v2425_v32 = vadd.f32 %v2312_v28, %v2131_v9  ;;  %v3681_v40 = vpop.f32.mrf.mxu0  ;;  %v2791_v49 = vmul.f32 %v2718_v25, %v2718_v25 }
 0x1cc   : > { %v3647_v35 = vpop.f32.mrf.mxu1  ;;  %v2721_v7 = vadd.f32 %v3678_v41, %v2427_v38  ;;  %v2138_v18 = vadd.f32 %v4611_v6, %v1843_v30  ;;  %v1844_v38 = vadd.f32 %v4616_v43, %v4517_v4  ;;  %v1847_v6 = vadd.f32 %v4623_v24, %v4523_v45 }
 0x1cd   : > { %v2750_v34 = vadd.f32 %v2749_v39, %v2718_v25  ;;  %v2821_v44 = vadd.f32 %v2820_v26, %v2790_v37  ;;  %v2719_v42 = vadd.f32 %v2606_v27, %v2425_v32  ;;  %v2619_v62 = vpop.f32.mrf.mxu0  ;;  %v2430_v46 = vadd.f32 %v3647_v35, %v4599_v2 }
 0x1ce   : > { %v2325_v59 = vpop.f32.mrf.mxu1  ;;  %v2135_v25 = vadd.f32 %v4604_v19, %v1840_v52  ;;  %v2794_v63 = vmul.f32 %v2721_v7, %v2721_v7 }
 0x1cf   : > { %v2822_v23 = vadd.f32 %v2821_v44, %v2791_v49  ;;  %v2751_v16 = vadd.f32 %v2750_v34, %v2719_v42  ;;  %v2792_v36 = vmul.f32 %v2719_v42, %v2719_v42  ;;  %v2428_v57 = vadd.f32 %v2325_v59, %v2134_v29  ;;  %v3682_v8 = vpop.f32.mrf.mxu0 }
 0x1d0   : > { %v3648_v33 = vpop.f32.mrf.mxu1  ;;  %v2724_v2 = vadd.f32 %v3681_v40, %v2430_v46  ;;  %v2142_v46 = vadd.f32 %v4625_v20, %v1847_v6 }
 0x1d1   : > { %v2752_v9 = vadd.f32 %v2751_v16, %v2720_v5  ;;  %v2823_v50 = vadd.f32 %v2822_v23, %v2792_v36  ;;  %v2722_v56 = vadd.f32 %v2619_v62, %v2428_v57  ;;  %v2431_v22 = vadd.f32 %v3648_v33, %v4606_v0  ;;  %v2622_v41 = vpop.f32.mrf.mxu0 }
 0x1d2   : > { %v2328_v10 = vpop.f32.mrf.mxu1  ;;  %v2797_v42 = vmul.f32 %v2724_v2, %v2724_v2  ;;  %v2139_v23 = vadd.f32 %v4618_v55, %v1844_v38 }
 0x1d3   : > { %v2824_v1 = vadd.f32 %v2823_v50, %v2793_v31  ;;  %v2753_v11 = vadd.f32 %v2752_v9, %v2721_v7  ;;  %v2429_v37 = vadd.f32 %v2328_v10, %v2135_v25  ;;  %v3685_v28 = vpop.f32.mrf.mxu0  ;;  %v2795_v26 = vmul.f32 %v2722_v56, %v2722_v56 }
 0x1d4   : > { %v3651_v21 = vpop.f32.mrf.mxu1  ;;  %v2725_v32 = vadd.f32 %v3682_v8, %v2431_v22  ;;  %v1848_v8 = vadd.f32 %v4630_v54, %v4529_v17 }
 0x1d5   : > { %v2754_v27 = vadd.f32 %v2753_v11, %v2722_v56  ;;  %v2825_v19 = vadd.f32 %v2824_v1, %v2794_v63  ;;  %v2723_v39 = vadd.f32 %v2622_v41, %v2429_v37  ;;  %v2635_v52 = vpop.f32.mrf.mxu0  ;;  %v2434_v4 = vadd.f32 %v3651_v21, %v4613_v48 }
 0x1d6   : > { %v2341_v0 = vpop.f32.mrf.mxu1  ;;  %v2798_v16 = vmul.f32 %v2725_v32, %v2725_v32  ;;  %v2143_v11 = vadd.f32 %v4632_v60, %v1848_v8  ;;  %v1851_v37 = vadd.f32 %v4637_v51, %v4535_v3  ;;  %v1852_v3 = vadd.f32 %v4644_v58, %v4541_v13  ;;  %v4778_v8 = vld [vmem:[#allocation6_spill] sm:$0xff] }
 0x1d7   : > { %v2826_v5 = vadd.f32 %v2825_v19, %v2795_v26  ;;  %v2755_v35 = vadd.f32 %v2754_v27, %v2723_v39  ;;  %v2796_v34 = vmul.f32 %v2723_v39, %v2723_v39  ;;  %v2432_v49 = vadd.f32 %v2341_v0, %v2138_v18  ;;  %v3686_v44 = vpop.f32.mrf.mxu0 }
 0x1d8   : > { %v3652_v40 = vpop.f32.mrf.mxu1  ;;  %v2728_v9 = vadd.f32 %v3685_v28, %v2434_v4  ;;  %v2146_v60 = vadd.f32 %v4639_v15, %v1851_v37  ;;  %v4776_v15 = vld [vmem:[#allocation7_spill] sm:$0xff] }
 0x1d9   : > { %v2756_v29 = vadd.f32 %v2755_v35, %v2724_v2  ;;  %v2827_v59 = vadd.f32 %v2826_v5, %v2796_v34  ;;  %v2726_v62 = vadd.f32 %v2635_v52, %v2432_v49  ;;  %v2638_v7 = vpop.f32.mrf.mxu0  ;;  %v2435_v57 = vadd.f32 %v3652_v40, %v4620_v53 }
 0x1da   : > { %v2344_v43 = vpop.f32.mrf.mxu1  ;;  %v2801_v54 = vmul.f32 %v2728_v9, %v2728_v9  ;;  %v1855_v4 = vadd.f32 %v4776_v15, %v4547_v14  ;;  %v4781_v14 = vld [vmem:[#allocation10_spill] sm:$0xff] }
 0x1db   : > { %v2828_v36 = vadd.f32 %v2827_v59, %v2797_v42  ;;  %v2757_v30 = vadd.f32 %v2756_v29, %v2725_v32  ;;  %v2433_v45 = vadd.f32 %v2344_v43, %v2139_v23  ;;  %v3689_v33 = vpop.f32.mrf.mxu0  ;;  %v2799_v31 = vmul.f32 %v2726_v62, %v2726_v62 }
 0x1dc   : > { %v3655_v24 = vpop.f32.mrf.mxu1  ;;  %v2729_v41 = vadd.f32 %v3686_v44, %v2435_v57  ;;  %v2147_v23 = vadd.f32 %v4646_v12, %v1852_v3  ;;  %v4779_v12 = vld [vmem:[#allocation8_spill] sm:$0xff] }
 0x1dd   : > { %v2758_v25 = vadd.f32 %v2757_v30, %v2726_v62  ;;  %v2829_v55 = vadd.f32 %v2828_v36, %v2798_v16  ;;  %v2727_v48 = vadd.f32 %v2638_v7, %v2433_v45  ;;  %v2651_v56 = vpop.f32.mrf.mxu0  ;;  %v2438_v17 = vadd.f32 %v3655_v24, %v4627_v47  ;;  %v4777_v7 = vld [vmem:[#allocation5_spill] sm:$0xff] }
 0x1de   : > { %v2357_v50 = vpop.f32.mrf.mxu1  ;;  %v2802_v19 = vmul.f32 %v2729_v41, %v2729_v41 }
 0x1df   : > { %v2830_v22 = vadd.f32 %v2829_v55, %v2799_v31  ;;  %v2436_v10 = vadd.f32 %v2357_v50, %v2142_v46  ;;  %v2759_v63 = vadd.f32 %v2758_v25, %v2727_v48  ;;  %v2800_v20 = vmul.f32 %v2727_v48, %v2727_v48  ;;  %v3690_v53 = vpop.f32.mrf.mxu0  ;;  %v4780_v48 = vld [vmem:[#allocation2_spill] sm:$0xff] }
 0x1e0   : > { %v3656_v1 = vpop.f32.mrf.mxu1  ;;  %v2732_v47 = vadd.f32 %v3689_v33, %v2438_v17  ;;  %v1856_v50 = vadd.f32 %v4781_v14, %v4780_v48 }
 0x1e1   : > { %v2760_v18 = vadd.f32 %v2759_v63, %v2728_v9  ;;  %v2831_v2 = vadd.f32 %v2830_v22, %v2800_v20  ;;  %v2730_v21 = vadd.f32 %v2651_v56, %v2436_v10  ;;  %v2654_v27 = vpop.f32.mrf.mxu0  ;;  %v2439_v32 = vadd.f32 %v3656_v1, %v4634_v61 }
 0x1e2   : > { %v2360_v28 = vpop.f32.mrf.mxu1  ;;  %v2805_v13 = vmul.f32 %v2732_v47, %v2732_v47  ;;  %v2150_v9 = vadd.f32 %v4779_v12, %v1855_v4 }
 0x1e3   : > { %v2437_v26 = vadd.f32 %v2360_v28, %v2143_v11  ;;  %v2832_v39 = vadd.f32 %v2831_v2, %v2801_v54  ;;  %v2761_v38 = vadd.f32 %v2760_v18, %v2729_v41  ;;  %v3693_v52 = vpop.f32.mrf.mxu0  ;;  %v2803_v35 = vmul.f32 %v2730_v21, %v2730_v21 }
 0x1e4   : > { %v3659_v0 = vpop.f32.mrf.mxu1  ;;  %v2733_v29 = vadd.f32 %v3690_v53, %v2439_v32 }
 0x1e5   : > { %v2731_v51 = vadd.f32 %v2654_v27, %v2437_v26  ;;  %v2762_v5 = vadd.f32 %v2761_v38, %v2730_v21  ;;  %v2833_v34 = vadd.f32 %v2832_v39, %v2802_v19  ;;  %v2667_v6 = vpop.f32.mrf.mxu0  ;;  %v2442_v16 = vadd.f32 %v3659_v0, %v4777_v7  ;;  %v4782_v21 = vld [vmem:[#allocation11_spill] sm:$0xff]  ;;  %v4784_v26 = vld [vmem:[#allocation13_spill] sm:$0xff] }
 0x1e6   : > { %v2373_v49 = vpop.f32.mrf.mxu1  ;;  %v2806_v45 = vmul.f32 %v2733_v29, %v2733_v29  ;;  %v2151_v28 = vadd.f32 %v4782_v21, %v1856_v50  ;;  %v4783_v27 = vld [vmem:[#allocation3_spill] sm:$0xff]  ;;  %v4785_v39 = vld [vmem:[#allocation9_spill] sm:$0xff] }
 0x1e7   : > { %v2804_v40 = vmul.f32 %v2731_v51, %v2731_v51  ;;  %v2440_v44 = vadd.f32 %v2373_v49, %v2146_v60  ;;  %v2834_v42 = vadd.f32 %v2833_v34, %v2803_v35  ;;  %v2763_v59 = vadd.f32 %v2762_v5, %v2731_v51  ;;  %v3694_v62 = vpop.f32.mrf.mxu0  ;;  %v4786_v49 = vld [vmem:[#allocation12_spill] sm:$0xff] }
 0x1e8   : > { %v3660_v61 = vpop.f32.mrf.mxu1  ;;  %v2736_v22 = vadd.f32 %v3693_v52, %v2442_v16  ;;  %v1859_v19 = vadd.f32 %v4784_v26, %v4783_v27 }
 0x1e9   : > { %v2764_v58 = vadd.f32 %v2763_v59, %v2732_v47  ;;  %v2835_v43 = vadd.f32 %v2834_v42, %v2804_v40  ;;  %v2734_v36 = vadd.f32 %v2667_v6, %v2440_v44  ;;  %v2670_v46 = vpop.f32.mrf.mxu0  ;;  %v2443_v25 = vadd.f32 %v3660_v61, %v4778_v8  ;;  %v4787_v42 = vld [vmem:[#allocation14_spill] sm:$0xff]  ;;  %v4788_v59 = vld [vmem:[#allocation4_spill] sm:$0xff] }
 0x1ea   : > { %v2376_v30 = vpop.f32.mrf.mxu1  ;;  %v2809_v32 = vmul.f32 %v2736_v22, %v2736_v22  ;;  %v4789_v61 = vld [vmem:[#allocation16_spill] sm:$0xff] }
 0x1eb   : > { %v2441_v57 = vadd.f32 %v2376_v30, %v2147_v23  ;;  %v2836_v24 = vadd.f32 %v2835_v43, %v2805_v13  ;;  %v2765_v33 = vadd.f32 %v2764_v58, %v2733_v29  ;;  %v3697_v55 = vpop.f32.mrf.mxu0  ;;  %v2807_v41 = vmul.f32 %v2734_v36, %v2734_v36 }
 0x1ec   : > { %v3663_v31 = vpop.f32.mrf.mxu1  ;;  %v2737_v17 = vadd.f32 %v3694_v62, %v2443_v25  ;;  %v2154_v29 = vadd.f32 %v4787_v42, %v1859_v19  ;;  %v1860_v62 = vadd.f32 %v4789_v61, %v4788_v59 }
 0x1ed   : > { %v2735_v56 = vadd.f32 %v2670_v46, %v2441_v57  ;;  %v2766_v10 = vadd.f32 %v2765_v33, %v2734_v36  ;;  %v2837_v63 = vadd.f32 %v2836_v24, %v2806_v45  ;;  %v2683_v1 = vpop.f32.mrf.mxu0  ;;  %v2446_v38 = vadd.f32 %v3663_v31, %v4785_v39  ;;  %v4790_v33 = vld [vmem:[#allocation17_spill] sm:$0xff] }
 0x1ee   : > { %v2389_v20 = vpop.f32.mrf.mxu1  ;;  %v2810_v5 = vmul.f32 %v2737_v17, %v2737_v17  ;;  %v2155_v8 = vadd.f32 %v4790_v33, %v1860_v62 }
 0x1ef   : > { %v2808_v53 = vmul.f32 %v2735_v56, %v2735_v56  ;;  %v2444_v11 = vadd.f32 %v2389_v20, %v2150_v9  ;;  %v2838_v37 = vadd.f32 %v2837_v63, %v2807_v41  ;;  %v2767_v54 = vadd.f32 %v2766_v10, %v2735_v56  ;;  %v3698_v2 = vpop.f32.mrf.mxu0  ;;  %v4791_v9 = vld [vmem:[#allocation15_spill] sm:$0xff]  ;;  %v4792_v41 = vld [vmem:[#allocation18_spill] sm:$0xff] }
 0x1f0   : > { %v3664_v18 = vpop.f32.mrf.mxu1  ;;  %v2740_v23 = vadd.f32 %v3697_v55, %v2446_v38 }
 0x1f1   : > { %v2768_v0 = vadd.f32 %v2767_v54, %v2736_v22  ;;  %v2839_v52 = vadd.f32 %v2838_v37, %v2808_v53  ;;  %v2738_v60 = vadd.f32 %v2683_v1, %v2444_v11  ;;  %v2686_v47 = vpop.f32.mrf.mxu0  ;;  %v2447_v6 = vadd.f32 %v3664_v18, %v4786_v49  ;;  %v2746_v49 = vld [vmem:[%s4757_s2] sm:$0x1] }
 0x1f2   : > { %v2392_v3 = vpop.f32.mrf.mxu1  ;;  %v2813_v25 = vmul.f32 %v2740_v23, %v2740_v23 }
 0x1f3   : > { %v2445_v51 = vadd.f32 %v2392_v3, %v2151_v28  ;;  %v2840_v35 = vadd.f32 %v2839_v52, %v2809_v32  ;;  %v2769_v34 = vadd.f32 %v2768_v0, %v2737_v17  ;;  %v3701_v44 = vpop.f32.mrf.mxu0  ;;  %v2811_v13 = vmul.f32 %v2738_v60, %v2738_v60 }
 0x1f4   : > { %v3667_v40 = vpop.f32.mrf.mxu1  ;;  %v2741_v46 = vadd.f32 %v3698_v2, %v2447_v6 }
 0x1f5   : > { %v2739_v15 = vadd.f32 %v2686_v47, %v2445_v51  ;;  %v2770_v4 = vadd.f32 %v2769_v34, %v2738_v60  ;;  %v2841_v58 = vadd.f32 %v2840_v35, %v2810_v5  ;;  %v2699_v7 = vpop.f32.mrf.mxu0  ;;  %v2450_v55 = vadd.f32 %v3667_v40, %v4791_v9 }
 0x1f6   : > { %v2405_v43 = vpop.f32.mrf.mxu1  ;;  %v2814_v56 = vmul.f32 %v2741_v46, %v2741_v46 }
 0x1f7   : > { %v2812_v16 = vmul.f32 %v2739_v15, %v2739_v15  ;;  %v2448_v36 = vadd.f32 %v2405_v43, %v2154_v29  ;;  %v2842_v30 = vadd.f32 %v2841_v58, %v2811_v13  ;;  %v2771_v57 = vadd.f32 %v2770_v4, %v2739_v15  ;;  %v3702_v24 = vpop.f32.mrf.mxu0 }
 0x1f8   : > { %v3668_v45 = vpop.f32.mrf.mxu1  ;;  %v2744_v53 = vadd.f32 %v3701_v44, %v2450_v55  ;;  %v2786_v44 = vld [vmem:[%s4758_s3] sm:$0x1] }
 0x1f9   : > { %v2772_v31 = vadd.f32 %v2771_v57, %v2740_v23  ;;  %v2843_v12 = vadd.f32 %v2842_v30, %v2812_v16  ;;  %v2742_v48 = vadd.f32 %v2699_v7, %v2448_v36  ;;  %v2451_v63 = vadd.f32 %v3668_v45, %v4792_v41  ;;  %v2702_v20 = vpop.f32.mrf.mxu0 }
 0x1fa   : > { %v2408_v14 = vpop.f32.mrf.mxu1  ;;  %v2817_v28 = vmul.f32 %v2744_v53, %v2744_v53 }
 0x1fb   : > { %v2449_v50 = vadd.f32 %v2408_v14, %v2155_v8  ;;  %v2844_v22 = vadd.f32 %v2843_v12, %v2813_v25  ;;  %v2773_v10 = vadd.f32 %v2772_v31, %v2741_v46  ;;  %v2815_v37 = vmul.f32 %v2742_v48, %v2742_v48 }
 0x1fc   : > { %v2745_v2 = vadd.f32 %v3702_v24, %v2451_v63 }
 0x1fd   : > { %v2743_v1 = vadd.f32 %v2702_v20, %v2449_v50  ;;  %v2774_v11 = vadd.f32 %v2773_v10, %v2742_v48  ;;  %v2845_v17 = vadd.f32 %v2844_v22, %v2814_v56 }
 0x1fe   : > { %v2818_v19 = vmul.f32 %v2745_v2, %v2745_v2 }
 0x1ff   : > { %v2816_v54 = vmul.f32 %v2743_v1, %v2743_v1  ;;  %v2846_v18 = vadd.f32 %v2845_v17, %v2815_v37  ;;  %v2775_v21 = vadd.f32 %v2774_v11, %v2743_v1 }
 0x201   : > { %v2776_v27 = vadd.f32 %v2775_v21, %v2744_v53  ;;  %v2847_v26 = vadd.f32 %v2846_v18, %v2816_v54 }
 0x203   : > { %v2777_v39 = vadd.f32 %v2776_v27, %v2745_v2  ;;  %v2848_v38 = vadd.f32 %v2847_v26, %v2817_v28 }
 0x205   : > { %v2778_v32 = vrot.slane %v2777_v39, 4  ;;  %v2849_v0 = vadd.f32 %v2848_v38, %v2818_v19 }
 0x207   : > { %v2779_v52 = vadd.f32 %v2778_v32, %v2777_v39  ;;  %v2850_v60 = vrot.slane %v2849_v0, 4 }
 0x209   : > { %v2780_v3 = vrot.slane %v2779_v52, 2  ;;  %v2851_v47 = vadd.f32 %v2850_v60, %v2849_v0 }
 0x20b   : > { %v2781_v51 = vadd.f32 %v2780_v3, %v2779_v52  ;;  %v2852_v5 = vrot.slane %v2851_v47, 2 }
 0x20d   : > { %v2782_v35 = vrot.slane %v2781_v51, 1  ;;  %v2853_v34 = vadd.f32 %v2852_v5, %v2851_v47 }
 0x20f   : > { %v2783_v6 = vadd.f32 %v2782_v35, %v2781_v51  ;;  %v2854_v40 = vrot.slane %v2853_v34, 1 }
 0x211   : > { %v2784_v42 = vadd.f32 %v2783_v6, %v2746_v49  ;;  %v2855_v29 = vadd.f32 %v2854_v40, %v2853_v34 }
 0x213   : > { %2785 = vst [vmem:[%s4757_s2] sm:$0x1] %v2784_v42  ;;  %v2856_v59 = vadd.f32 %v2855_v29, %v2786_v44 }
 0x215   : > { %2857 = vst [vmem:[%s4758_s3] sm:$0x1] %v2856_v59 }
 0x216 PF: > { %s14_s12 = sadd.s32 1, %s3731_s12  }
 0x217   : > { %p11_p5 = scmp.ge.s32.totalorder %s14_s12, 4  }
 0x219   :  { %13 = sbr.rel (!%p11_p5) target bundleno = 1 (0x1), region = 76 }

</bundles_post_ra>
